<compile_context>
chip_gen: v7x
topology: tpu7x:2x2x1
jax: 0.10.0
libtpu: 0.0.40
codegen_flags: <defaults>
</compile_context>

<pallas_src>
import jax
import jax.numpy as jnp
from jax import lax
from jax.experimental import pallas as pl
from jax.experimental.pallas import tpu as pltpu

INPUT_SIZE = 4
HIDDEN = 175          # HIDDEN_LAYER_SIZE in the PyTorch module
OUTPUT = 4
H_PAD = 256           # next multiple of 128 >= HIDDEN (padding is exact, see header)
UNROLL_T_MAX = 16     # fully unroll the recurrent loop up to this length

# Gate order is PyTorch-native [i, f, g, o].  The 0.5 pre-scale implements
# sigmoid(x) = 0.5 * tanh(x/2) + 0.5 for the i/f/o gates (g keeps plain tanh),
# so the whole 4*H_PAD gate vector goes through a single tanh per step.
GATE_SCALE = (0.5, 0.5, 1.0, 0.5)


def lstm_kernel(x_ref, wih_ref, whh_hbm, b_ref, wlin_ref, blin_ref,
                out_ref, xg_ref, whh_vmem, dma_sem):
    T = x_ref.shape[0]
    H = H_PAD

    # Kick off the ~512 KiB bf16 W_hh HBM->VMEM copy; grid=(1,) gives no
    # auto-pipelining, so hide it behind the input projection + peeled step 0.
    whh_cp = pltpu.make_async_copy(whh_hbm, whh_vmem, dma_sem)
    whh_cp.start()

    # Input projections + fused bias for all timesteps in one MXU matmul,
    # parked in VMEM scratch (per-step row loads keep the vreg file free).
    xg = (jnp.dot(x_ref[...], wih_ref[...], preferred_element_type=jnp.float32)
          + b_ref[...])
    xg_ref[...] = xg

    def gates(g, c):
        # One EUP stream: tanh over all 4*H_PAD lanes.  Pad lanes have zero
        # pre-activations -> i/f/o pad = 0.5, g pad = 0 -> c/h pad stay 0.
        t = jnp.tanh(g)
        i = 0.5 * t[:, 0:H] + 0.5
        f = 0.5 * t[:, H:2 * H] + 0.5
        gg = t[:, 2 * H:3 * H]
        o = 0.5 * t[:, 3 * H:4 * H] + 0.5
        c_new = f * c + i * gg
        h_new = o * jnp.tanh(c_new)
        return h_new, c_new

    # ---- Peeled step 0: h0 = c0 = 0, so the h @ W_hh term vanishes. ----
    h, c = gates(xg[0:1, :], jnp.zeros((1, H), jnp.float32))

    # Recurrent weights are only needed from step 1 onward.
    whh_cp.wait()
    whh = whh_vmem[...]                    # bf16, resident for the whole loop

    def step(h, c, g_row):
        g = g_row + jnp.dot(h.astype(jnp.bfloat16), whh,
                            preferred_element_type=jnp.float32)
        return gates(g, c)

    if T <= UNROLL_T_MAX:
        # Fully unrolled: static xg row loads, full LLO scheduler visibility.
        for t in range(1, T):
            h, c = step(h, c, xg_ref[t:t + 1, :])
    else:
        def body(t, carry):
            hh, cc = carry
            return step(hh, cc, xg_ref[pl.ds(t, 1), :])
        h, c = lax.fori_loop(1, T, body, (h, c), unroll=8)

    # Final Linear on the last hidden state == predictions[-1] in PyTorch code.
    out_ref[...] = (jnp.dot(h, wlin_ref[...], preferred_element_type=jnp.float32)
                    + blin_ref[...])


def lstm_forward(x, packed_params):
    """x: (T, INPUT_SIZE) f32 -> (OUTPUT,) f32."""
    T = x.shape[0]
    wih_p, whh_p, b_p, wlin_p, blin_p = packed_params
    out = pl.pallas_call(
        lstm_kernel,
        out_shape=jax.ShapeDtypeStruct((1, OUTPUT), jnp.float32),
        grid=(1,),
        in_specs=[
            pl.BlockSpec((T, INPUT_SIZE), lambda i: (0, 0)),
            pl.BlockSpec((INPUT_SIZE, 4 * H_PAD), lambda i: (0, 0)),
            pl.BlockSpec(memory_space=pl.ANY),          # W_hh: manual DMA in-kernel
            pl.BlockSpec((1, 4 * H_PAD), lambda i: (0, 0)),
            pl.BlockSpec((H_PAD, OUTPUT), lambda i: (0, 0)),
            pl.BlockSpec((1, OUTPUT), lambda i: (0, 0)),
        ],
        out_specs=pl.BlockSpec((1, OUTPUT), lambda i: (0, 0)),
        scratch_shapes=[
            pltpu.VMEM((T, 4 * H_PAD), jnp.float32),        # xg rows
            pltpu.VMEM((H_PAD, 4 * H_PAD), jnp.bfloat16),   # W_hh landing buffer
            pltpu.SemaphoreType.DMA,
        ],
        compiler_params=pltpu.CompilerParams(
            dimension_semantics=("arbitrary",)),
    )(x, wih_p, whh_p, b_p, wlin_p, blin_p)
    return out[0]


def init_params(key):
    """Deterministic params with PyTorch-like shapes / uniform(-1/sqrt(H), 1/sqrt(H)) init."""
    k = 1.0 / jnp.sqrt(jnp.float32(HIDDEN))
    ks = jax.random.split(key, 6)
    w_ih = jax.random.uniform(ks[0], (4 * HIDDEN, INPUT_SIZE), jnp.float32, -k, k)
    w_hh = jax.random.uniform(ks[1], (4 * HIDDEN, HIDDEN), jnp.float32, -k, k)
    b_ih = jax.random.uniform(ks[2], (4 * HIDDEN,), jnp.float32, -k, k)
    b_hh = jax.random.uniform(ks[3], (4 * HIDDEN,), jnp.float32, -k, k)
    w_lin = jax.random.uniform(ks[4], (OUTPUT, HIDDEN), jnp.float32, -k, k)
    b_lin = jax.random.uniform(ks[5], (OUTPUT,), jnp.float32, -k, k)
    return w_ih, w_hh, b_ih, b_hh, w_lin, b_lin


def pack_params(w_ih, w_hh, b_ih, b_hh, w_lin, b_lin):
    """Transpose + zero-pad PyTorch-layout params into kernel layout.

    Gate order stays PyTorch-native [i|f|g|o]; the 0.5 sigmoid-via-tanh
    pre-scale (exact in bf16) is baked into the i/f/o columns of W_ih, W_hh
    and the fused bias.  W_hh is shipped as bf16 (recurrent matmul dtype)."""
    wih_p = jnp.zeros((INPUT_SIZE, 4 * H_PAD), jnp.float32)
    whh_p = jnp.zeros((H_PAD, 4 * H_PAD), jnp.float32)
    b_p = jnp.zeros((1, 4 * H_PAD), jnp.float32)
    for g in range(4):
        s = GATE_SCALE[g]
        sl_src = slice(g * HIDDEN, (g + 1) * HIDDEN)
        sl_dst = slice(g * H_PAD, g * H_PAD + HIDDEN)
        wih_p = wih_p.at[:, sl_dst].set(s * w_ih[sl_src, :].T)
        whh_p = whh_p.at[:HIDDEN, sl_dst].set(s * w_hh[sl_src, :].T)
        b_p = b_p.at[0, sl_dst].set(s * (b_ih[sl_src] + b_hh[sl_src]))
    whh_p = whh_p.astype(jnp.bfloat16)
    wlin_p = jnp.zeros((H_PAD, OUTPUT), jnp.float32).at[:HIDDEN, :].set(w_lin.T)
    blin_p = b_lin.reshape(1, OUTPUT)
    return wih_p, whh_p, b_p, wlin_p, blin_p


def reference_forward(x, w_ih, w_hh, b_ih, b_hh, w_lin, b_lin):
    """Pure-JAX f32 reference matching torch.nn.LSTM + Linear (eval)."""
    H = HIDDEN

    def step(carry, xt):
        h, c = carry
        g = xt @ w_ih.T + b_ih + h @ w_hh.T + b_hh
        i = jax.nn.sigmoid(g[0:H])
        f = jax.nn.sigmoid(g[H:2 * H])
        gg = jnp.tanh(g[2 * H:3 * H])
        o = jax.nn.sigmoid(g[3 * H:4 * H])
        c = f * c + i * gg
        h = o * jnp.tanh(c)
        return (h, c), h

    (_, _), hs = lax.scan(step, (jnp.zeros(H, jnp.float32), jnp.zeros(H, jnp.float32)), x)
    preds = hs @ w_lin.T + b_lin
    return preds[-1]


if __name__ == "__main__":
    key = jax.random.PRNGKey(0)
    k_x, k_p = jax.random.split(key)

    T = 8
    x = jax.random.normal(k_x, (T, INPUT_SIZE), jnp.float32)

    params = init_params(k_p)
    packed = pack_params(*params)

    out = jax.jit(lstm_forward)(x, packed)
    out = jax.block_until_ready(out)

    ref = reference_forward(x, *params)
    assert out.shape == (OUTPUT,)
    # Tolerance relaxed vs the pure-f32 version: W_hh and the per-step h operand
    # of the recurrent matmul are bf16 (accumulation in f32), per review.
    assert jnp.allclose(out, ref, atol=3e-2, rtol=3e-2), (out, ref)

    print("KERNEL_OK")
</pallas_src>

<mosaic_0001>
module attributes {stable_mosaic.version = 11 : i64} {
  func.func @lstm_kernel(%arg0: i32, %arg1: memref<8x4xf32, #tpu.memory_space<vmem>>, %arg2: memref<4x1024xf32, #tpu.memory_space<vmem>>, %arg3: memref<256x1024xbf16, #tpu.memory_space<any>>, %arg4: memref<1x1024xf32, #tpu.memory_space<vmem>>, %arg5: memref<256x4xf32, #tpu.memory_space<vmem>>, %arg6: memref<1x4xf32, #tpu.memory_space<vmem>>, %arg7: memref<1x4xf32, #tpu.memory_space<vmem>>, %arg8: memref<8x1024xf32, #tpu.memory_space<vmem>>, %arg9: memref<256x1024xbf16, #tpu.memory_space<vmem>>, %arg10: memref<!tpu.dma_semaphore, #tpu.memory_space<semaphore_mem>>) attributes {dimension_semantics = [#tpu.dimension_semantics<arbitrary>], iteration_bounds = array<i64: 1>, scalar_prefetch = 0 : i64, scratch_operands = 3 : i64, tpu.core_type = #tpu.core_type<tc>, window_params = [{pipeline_mode = #tpu.pipeline_mode<synchronous>, transform_indices = @transform_0, window_bounds = array<i64: 8, 4>}, {pipeline_mode = #tpu.pipeline_mode<synchronous>, transform_indices = @transform_1, window_bounds = array<i64: 4, 1024>}, {}, {pipeline_mode = #tpu.pipeline_mode<synchronous>, transform_indices = @transform_3, window_bounds = array<i64: 1, 1024>}, {pipeline_mode = #tpu.pipeline_mode<synchronous>, transform_indices = @transform_4, window_bounds = array<i64: 256, 4>}, {pipeline_mode = #tpu.pipeline_mode<synchronous>, transform_indices = @transform_5, window_bounds = array<i64: 1, 4>}, {pipeline_mode = #tpu.pipeline_mode<synchronous>, transform_indices = @transform_6, window_bounds = array<i64: 1, 4>}]} {
    tpu.enqueue_dma source(%arg3 : memref<256x1024xbf16, #tpu.memory_space<any>>) target(%arg9 : memref<256x1024xbf16, #tpu.memory_space<vmem>>) target_semaphore(%arg10 : memref<!tpu.dma_semaphore, #tpu.memory_space<semaphore_mem>>)
    %c0 = arith.constant 0 : index
    %c0_0 = arith.constant 0 : index
    %0 = vector.load %arg1[%c0, %c0_0] : memref<8x4xf32, #tpu.memory_space<vmem>>, vector<8x4xf32>
    %c0_1 = arith.constant 0 : index
    %c0_2 = arith.constant 0 : index
    %1 = vector.load %arg2[%c0_1, %c0_2] : memref<4x1024xf32, #tpu.memory_space<vmem>>, vector<4x1024xf32>
    %cst = arith.constant dense<0.000000e+00> : vector<8x1024xf32>
    %2 = tpu.matmul %0, %1, %cst {dimension_numbers = #tpu.dot_dimension_numbers<[1], [0], [0], [1], [0, 0, 1, 1], [], []>} : vector<8x4xf32>, vector<4x1024xf32>, vector<8x1024xf32> -> vector<8x1024xf32>
    %c0_3 = arith.constant 0 : index
    %c0_4 = arith.constant 0 : index
    %3 = vector.load %arg4[%c0_3, %c0_4] : memref<1x1024xf32, #tpu.memory_space<vmem>>, vector<1x1024xf32>
    %4 = vector.broadcast %3 : vector<1x1024xf32> to vector<8x1024xf32>
    %5 = arith.addf %2, %4 : vector<8x1024xf32>
    %c0_5 = arith.constant 0 : index
    %c0_6 = arith.constant 0 : index
    %6 = vector.load %arg8[%c0_5, %c0_6] : memref<8x1024xf32, #tpu.memory_space<vmem>>, vector<8x1024xf32>
    tpu.vector_store %arg8[%c0_5, %c0_6], %5 {strides = array<i32>} : memref<8x1024xf32, #tpu.memory_space<vmem>>, vector<8x1024xf32>,
    %7 = vector.extract_strided_slice %5 {offsets = [0, 0], sizes = [1, 1024], strides = [1, 1]} : vector<8x1024xf32> to vector<1x1024xf32>
    %cst_7 = arith.constant 0.000000e+00 : f32
    %8 = vector.broadcast %cst_7 : f32 to vector<1x256xf32>
    %9 = math.tanh %7 : vector<1x1024xf32>
    %10 = vector.extract_strided_slice %9 {offsets = [0, 0], sizes = [1, 256], strides = [1, 1]} : vector<1x1024xf32> to vector<1x256xf32>
    %cst_8 = arith.constant 5.000000e-01 : f32
    %11 = vector.broadcast %cst_8 : f32 to vector<1x256xf32>
    %12 = arith.mulf %11, %10 : vector<1x256xf32>
    %cst_9 = arith.constant 5.000000e-01 : f32
    %13 = vector.broadcast %cst_9 : f32 to vector<1x256xf32>
    %14 = arith.addf %12, %13 : vector<1x256xf32>
    %15 = vector.extract_strided_slice %9 {offsets = [0, 256], sizes = [1, 256], strides = [1, 1]} : vector<1x1024xf32> to vector<1x256xf32>
    %cst_10 = arith.constant 5.000000e-01 : f32
    %16 = vector.broadcast %cst_10 : f32 to vector<1x256xf32>
    %17 = arith.mulf %16, %15 : vector<1x256xf32>
    %cst_11 = arith.constant 5.000000e-01 : f32
    %18 = vector.broadcast %cst_11 : f32 to vector<1x256xf32>
    %19 = arith.addf %17, %18 : vector<1x256xf32>
    %20 = vector.extract_strided_slice %9 {offsets = [0, 512], sizes = [1, 256], strides = [1, 1]} : vector<1x1024xf32> to vector<1x256xf32>
    %21 = vector.extract_strided_slice %9 {offsets = [0, 768], sizes = [1, 256], strides = [1, 1]} : vector<1x1024xf32> to vector<1x256xf32>
    %cst_12 = arith.constant 5.000000e-01 : f32
    %22 = vector.broadcast %cst_12 : f32 to vector<1x256xf32>
    %23 = arith.mulf %22, %21 : vector<1x256xf32>
    %cst_13 = arith.constant 5.000000e-01 : f32
    %24 = vector.broadcast %cst_13 : f32 to vector<1x256xf32>
    %25 = arith.addf %23, %24 : vector<1x256xf32>
    %26 = arith.mulf %19, %8 : vector<1x256xf32>
    %27 = arith.mulf %14, %20 : vector<1x256xf32>
    %28 = arith.addf %26, %27 : vector<1x256xf32>
    %29 = math.tanh %28 : vector<1x256xf32>
    %30 = arith.mulf %25, %29 : vector<1x256xf32>
    tpu.wait_dma2 semaphore(%arg10 : memref<!tpu.dma_semaphore, #tpu.memory_space<semaphore_mem>>) src(%arg3 : memref<256x1024xbf16, #tpu.memory_space<any>>) dst(%arg9 : memref<256x1024xbf16, #tpu.memory_space<vmem>>)
    %c0_14 = arith.constant 0 : index
    %c0_15 = arith.constant 0 : index
    %31 = vector.load %arg9[%c0_14, %c0_15] : memref<256x1024xbf16, #tpu.memory_space<vmem>>, vector<256x1024xbf16>
    %c1 = arith.constant 1 : index
    %c0_16 = arith.constant 0 : index
    %32 = vector.load %arg8[%c1, %c0_16] : memref<8x1024xf32, #tpu.memory_space<vmem>>, vector<1x1024xf32>
    %33 = arith.truncf %30 : vector<1x256xf32> to vector<1x256xbf16>
    %cst_17 = arith.constant dense<0.000000e+00> : vector<1x1024xf32>
    %34 = tpu.matmul %33, %31, %cst_17 {dimension_numbers = #tpu.dot_dimension_numbers<[1], [0], [0], [1], [0, 0, 1, 1], [], []>} : vector<1x256xbf16>, vector<256x1024xbf16>, vector<1x1024xf32> -> vector<1x1024xf32>
    %35 = arith.addf %32, %34 : vector<1x1024xf32>
    %36 = math.tanh %35 : vector<1x1024xf32>
    %37 = vector.extract_strided_slice %36 {offsets = [0, 0], sizes = [1, 256], strides = [1, 1]} : vector<1x1024xf32> to vector<1x256xf32>
    %cst_18 = arith.constant 5.000000e-01 : f32
    %38 = vector.broadcast %cst_18 : f32 to vector<1x256xf32>
    %39 = arith.mulf %38, %37 : vector<1x256xf32>
    %cst_19 = arith.constant 5.000000e-01 : f32
    %40 = vector.broadcast %cst_19 : f32 to vector<1x256xf32>
    %41 = arith.addf %39, %40 : vector<1x256xf32>
    %42 = vector.extract_strided_slice %36 {offsets = [0, 256], sizes = [1, 256], strides = [1, 1]} : vector<1x1024xf32> to vector<1x256xf32>
    %cst_20 = arith.constant 5.000000e-01 : f32
    %43 = vector.broadcast %cst_20 : f32 to vector<1x256xf32>
    %44 = arith.mulf %43, %42 : vector<1x256xf32>
    %cst_21 = arith.constant 5.000000e-01 : f32
    %45 = vector.broadcast %cst_21 : f32 to vector<1x256xf32>
    %46 = arith.addf %44, %45 : vector<1x256xf32>
    %47 = vector.extract_strided_slice %36 {offsets = [0, 512], sizes = [1, 256], strides = [1, 1]} : vector<1x1024xf32> to vector<1x256xf32>
    %48 = vector.extract_strided_slice %36 {offsets = [0, 768], sizes = [1, 256], strides = [1, 1]} : vector<1x1024xf32> to vector<1x256xf32>
    %cst_22 = arith.constant 5.000000e-01 : f32
    %49 = vector.broadcast %cst_22 : f32 to vector<1x256xf32>
    %50 = arith.mulf %49, %48 : vector<1x256xf32>
    %cst_23 = arith.constant 5.000000e-01 : f32
    %51 = vector.broadcast %cst_23 : f32 to vector<1x256xf32>
    %52 = arith.addf %50, %51 : vector<1x256xf32>
    %53 = arith.mulf %46, %28 : vector<1x256xf32>
    %54 = arith.mulf %41, %47 : vector<1x256xf32>
    %55 = arith.addf %53, %54 : vector<1x256xf32>
    %56 = math.tanh %55 : vector<1x256xf32>
    %57 = arith.mulf %52, %56 : vector<1x256xf32>
    %c2 = arith.constant 2 : index
    %c0_24 = arith.constant 0 : index
    %58 = vector.load %arg8[%c2, %c0_24] : memref<8x1024xf32, #tpu.memory_space<vmem>>, vector<1x1024xf32>
    %59 = arith.truncf %57 : vector<1x256xf32> to vector<1x256xbf16>
    %cst_25 = arith.constant dense<0.000000e+00> : vector<1x1024xf32>
    %60 = tpu.matmul %59, %31, %cst_25 {dimension_numbers = #tpu.dot_dimension_numbers<[1], [0], [0], [1], [0, 0, 1, 1], [], []>} : vector<1x256xbf16>, vector<256x1024xbf16>, vector<1x1024xf32> -> vector<1x1024xf32>
    %61 = arith.addf %58, %60 : vector<1x1024xf32>
    %62 = math.tanh %61 : vector<1x1024xf32>
    %63 = vector.extract_strided_slice %62 {offsets = [0, 0], sizes = [1, 256], strides = [1, 1]} : vector<1x1024xf32> to vector<1x256xf32>
    %cst_26 = arith.constant 5.000000e-01 : f32
    %64 = vector.broadcast %cst_26 : f32 to vector<1x256xf32>
    %65 = arith.mulf %64, %63 : vector<1x256xf32>
    %cst_27 = arith.constant 5.000000e-01 : f32
    %66 = vector.broadcast %cst_27 : f32 to vector<1x256xf32>
    %67 = arith.addf %65, %66 : vector<1x256xf32>
    %68 = vector.extract_strided_slice %62 {offsets = [0, 256], sizes = [1, 256], strides = [1, 1]} : vector<1x1024xf32> to vector<1x256xf32>
    %cst_28 = arith.constant 5.000000e-01 : f32
    %69 = vector.broadcast %cst_28 : f32 to vector<1x256xf32>
    %70 = arith.mulf %69, %68 : vector<1x256xf32>
    %cst_29 = arith.constant 5.000000e-01 : f32
    %71 = vector.broadcast %cst_29 : f32 to vector<1x256xf32>
    %72 = arith.addf %70, %71 : vector<1x256xf32>
    %73 = vector.extract_strided_slice %62 {offsets = [0, 512], sizes = [1, 256], strides = [1, 1]} : vector<1x1024xf32> to vector<1x256xf32>
    %74 = vector.extract_strided_slice %62 {offsets = [0, 768], sizes = [1, 256], strides = [1, 1]} : vector<1x1024xf32> to vector<1x256xf32>
    %cst_30 = arith.constant 5.000000e-01 : f32
    %75 = vector.broadcast %cst_30 : f32 to vector<1x256xf32>
    %76 = arith.mulf %75, %74 : vector<1x256xf32>
    %cst_31 = arith.constant 5.000000e-01 : f32
    %77 = vector.broadcast %cst_31 : f32 to vector<1x256xf32>
    %78 = arith.addf %76, %77 : vector<1x256xf32>
    %79 = arith.mulf %72, %55 : vector<1x256xf32>
    %80 = arith.mulf %67, %73 : vector<1x256xf32>
    %81 = arith.addf %79, %80 : vector<1x256xf32>
    %82 = math.tanh %81 : vector<1x256xf32>
    %83 = arith.mulf %78, %82 : vector<1x256xf32>
    %c3 = arith.constant 3 : index
    %c0_32 = arith.constant 0 : index
    %84 = vector.load %arg8[%c3, %c0_32] : memref<8x1024xf32, #tpu.memory_space<vmem>>, vector<1x1024xf32>
    %85 = arith.truncf %83 : vector<1x256xf32> to vector<1x256xbf16>
    %cst_33 = arith.constant dense<0.000000e+00> : vector<1x1024xf32>
    %86 = tpu.matmul %85, %31, %cst_33 {dimension_numbers = #tpu.dot_dimension_numbers<[1], [0], [0], [1], [0, 0, 1, 1], [], []>} : vector<1x256xbf16>, vector<256x1024xbf16>, vector<1x1024xf32> -> vector<1x1024xf32>
    %87 = arith.addf %84, %86 : vector<1x1024xf32>
    %88 = math.tanh %87 : vector<1x1024xf32>
    %89 = vector.extract_strided_slice %88 {offsets = [0, 0], sizes = [1, 256], strides = [1, 1]} : vector<1x1024xf32> to vector<1x256xf32>
    %cst_34 = arith.constant 5.000000e-01 : f32
    %90 = vector.broadcast %cst_34 : f32 to vector<1x256xf32>
    %91 = arith.mulf %90, %89 : vector<1x256xf32>
    %cst_35 = arith.constant 5.000000e-01 : f32
    %92 = vector.broadcast %cst_35 : f32 to vector<1x256xf32>
    %93 = arith.addf %91, %92 : vector<1x256xf32>
    %94 = vector.extract_strided_slice %88 {offsets = [0, 256], sizes = [1, 256], strides = [1, 1]} : vector<1x1024xf32> to vector<1x256xf32>
    %cst_36 = arith.constant 5.000000e-01 : f32
    %95 = vector.broadcast %cst_36 : f32 to vector<1x256xf32>
    %96 = arith.mulf %95, %94 : vector<1x256xf32>
    %cst_37 = arith.constant 5.000000e-01 : f32
    %97 = vector.broadcast %cst_37 : f32 to vector<1x256xf32>
    %98 = arith.addf %96, %97 : vector<1x256xf32>
    %99 = vector.extract_strided_slice %88 {offsets = [0, 512], sizes = [1, 256], strides = [1, 1]} : vector<1x1024xf32> to vector<1x256xf32>
    %100 = vector.extract_strided_slice %88 {offsets = [0, 768], sizes = [1, 256], strides = [1, 1]} : vector<1x1024xf32> to vector<1x256xf32>
    %cst_38 = arith.constant 5.000000e-01 : f32
    %101 = vector.broadcast %cst_38 : f32 to vector<1x256xf32>
    %102 = arith.mulf %101, %100 : vector<1x256xf32>
    %cst_39 = arith.constant 5.000000e-01 : f32
    %103 = vector.broadcast %cst_39 : f32 to vector<1x256xf32>
    %104 = arith.addf %102, %103 : vector<1x256xf32>
    %105 = arith.mulf %98, %81 : vector<1x256xf32>
    %106 = arith.mulf %93, %99 : vector<1x256xf32>
    %107 = arith.addf %105, %106 : vector<1x256xf32>
    %108 = math.tanh %107 : vector<1x256xf32>
    %109 = arith.mulf %104, %108 : vector<1x256xf32>
    %c4 = arith.constant 4 : index
    %c0_40 = arith.constant 0 : index
    %110 = vector.load %arg8[%c4, %c0_40] : memref<8x1024xf32, #tpu.memory_space<vmem>>, vector<1x1024xf32>
    %111 = arith.truncf %109 : vector<1x256xf32> to vector<1x256xbf16>
    %cst_41 = arith.constant dense<0.000000e+00> : vector<1x1024xf32>
    %112 = tpu.matmul %111, %31, %cst_41 {dimension_numbers = #tpu.dot_dimension_numbers<[1], [0], [0], [1], [0, 0, 1, 1], [], []>} : vector<1x256xbf16>, vector<256x1024xbf16>, vector<1x1024xf32> -> vector<1x1024xf32>
    %113 = arith.addf %110, %112 : vector<1x1024xf32>
    %114 = math.tanh %113 : vector<1x1024xf32>
    %115 = vector.extract_strided_slice %114 {offsets = [0, 0], sizes = [1, 256], strides = [1, 1]} : vector<1x1024xf32> to vector<1x256xf32>
    %cst_42 = arith.constant 5.000000e-01 : f32
    %116 = vector.broadcast %cst_42 : f32 to vector<1x256xf32>
    %117 = arith.mulf %116, %115 : vector<1x256xf32>
    %cst_43 = arith.constant 5.000000e-01 : f32
    %118 = vector.broadcast %cst_43 : f32 to vector<1x256xf32>
    %119 = arith.addf %117, %118 : vector<1x256xf32>
    %120 = vector.extract_strided_slice %114 {offsets = [0, 256], sizes = [1, 256], strides = [1, 1]} : vector<1x1024xf32> to vector<1x256xf32>
    %cst_44 = arith.constant 5.000000e-01 : f32
    %121 = vector.broadcast %cst_44 : f32 to vector<1x256xf32>
    %122 = arith.mulf %121, %120 : vector<1x256xf32>
    %cst_45 = arith.constant 5.000000e-01 : f32
    %123 = vector.broadcast %cst_45 : f32 to vector<1x256xf32>
    %124 = arith.addf %122, %123 : vector<1x256xf32>
    %125 = vector.extract_strided_slice %114 {offsets = [0, 512], sizes = [1, 256], strides = [1, 1]} : vector<1x1024xf32> to vector<1x256xf32>
    %126 = vector.extract_strided_slice %114 {offsets = [0, 768], sizes = [1, 256], strides = [1, 1]} : vector<1x1024xf32> to vector<1x256xf32>
    %cst_46 = arith.constant 5.000000e-01 : f32
    %127 = vector.broadcast %cst_46 : f32 to vector<1x256xf32>
    %128 = arith.mulf %127, %126 : vector<1x256xf32>
    %cst_47 = arith.constant 5.000000e-01 : f32
    %129 = vector.broadcast %cst_47 : f32 to vector<1x256xf32>
    %130 = arith.addf %128, %129 : vector<1x256xf32>
    %131 = arith.mulf %124, %107 : vector<1x256xf32>
    %132 = arith.mulf %119, %125 : vector<1x256xf32>
    %133 = arith.addf %131, %132 : vector<1x256xf32>
    %134 = math.tanh %133 : vector<1x256xf32>
    %135 = arith.mulf %130, %134 : vector<1x256xf32>
    %c5 = arith.constant 5 : index
    %c0_48 = arith.constant 0 : index
    %136 = vector.load %arg8[%c5, %c0_48] : memref<8x1024xf32, #tpu.memory_space<vmem>>, vector<1x1024xf32>
    %137 = arith.truncf %135 : vector<1x256xf32> to vector<1x256xbf16>
    %cst_49 = arith.constant dense<0.000000e+00> : vector<1x1024xf32>
    %138 = tpu.matmul %137, %31, %cst_49 {dimension_numbers = #tpu.dot_dimension_numbers<[1], [0], [0], [1], [0, 0, 1, 1], [], []>} : vector<1x256xbf16>, vector<256x1024xbf16>, vector<1x1024xf32> -> vector<1x1024xf32>
    %139 = arith.addf %136, %138 : vector<1x1024xf32>
    %140 = math.tanh %139 : vector<1x1024xf32>
    %141 = vector.extract_strided_slice %140 {offsets = [0, 0], sizes = [1, 256], strides = [1, 1]} : vector<1x1024xf32> to vector<1x256xf32>
    %cst_50 = arith.constant 5.000000e-01 : f32
    %142 = vector.broadcast %cst_50 : f32 to vector<1x256xf32>
    %143 = arith.mulf %142, %141 : vector<1x256xf32>
    %cst_51 = arith.constant 5.000000e-01 : f32
    %144 = vector.broadcast %cst_51 : f32 to vector<1x256xf32>
    %145 = arith.addf %143, %144 : vector<1x256xf32>
    %146 = vector.extract_strided_slice %140 {offsets = [0, 256], sizes = [1, 256], strides = [1, 1]} : vector<1x1024xf32> to vector<1x256xf32>
    %cst_52 = arith.constant 5.000000e-01 : f32
    %147 = vector.broadcast %cst_52 : f32 to vector<1x256xf32>
    %148 = arith.mulf %147, %146 : vector<1x256xf32>
    %cst_53 = arith.constant 5.000000e-01 : f32
    %149 = vector.broadcast %cst_53 : f32 to vector<1x256xf32>
    %150 = arith.addf %148, %149 : vector<1x256xf32>
    %151 = vector.extract_strided_slice %140 {offsets = [0, 512], sizes = [1, 256], strides = [1, 1]} : vector<1x1024xf32> to vector<1x256xf32>
    %152 = vector.extract_strided_slice %140 {offsets = [0, 768], sizes = [1, 256], strides = [1, 1]} : vector<1x1024xf32> to vector<1x256xf32>
    %cst_54 = arith.constant 5.000000e-01 : f32
    %153 = vector.broadcast %cst_54 : f32 to vector<1x256xf32>
    %154 = arith.mulf %153, %152 : vector<1x256xf32>
    %cst_55 = arith.constant 5.000000e-01 : f32
    %155 = vector.broadcast %cst_55 : f32 to vector<1x256xf32>
    %156 = arith.addf %154, %155 : vector<1x256xf32>
    %157 = arith.mulf %150, %133 : vector<1x256xf32>
    %158 = arith.mulf %145, %151 : vector<1x256xf32>
    %159 = arith.addf %157, %158 : vector<1x256xf32>
    %160 = math.tanh %159 : vector<1x256xf32>
    %161 = arith.mulf %156, %160 : vector<1x256xf32>
    %c6 = arith.constant 6 : index
    %c0_56 = arith.constant 0 : index
    %162 = vector.load %arg8[%c6, %c0_56] : memref<8x1024xf32, #tpu.memory_space<vmem>>, vector<1x1024xf32>
    %163 = arith.truncf %161 : vector<1x256xf32> to vector<1x256xbf16>
    %cst_57 = arith.constant dense<0.000000e+00> : vector<1x1024xf32>
    %164 = tpu.matmul %163, %31, %cst_57 {dimension_numbers = #tpu.dot_dimension_numbers<[1], [0], [0], [1], [0, 0, 1, 1], [], []>} : vector<1x256xbf16>, vector<256x1024xbf16>, vector<1x1024xf32> -> vector<1x1024xf32>
    %165 = arith.addf %162, %164 : vector<1x1024xf32>
    %166 = math.tanh %165 : vector<1x1024xf32>
    %167 = vector.extract_strided_slice %166 {offsets = [0, 0], sizes = [1, 256], strides = [1, 1]} : vector<1x1024xf32> to vector<1x256xf32>
    %cst_58 = arith.constant 5.000000e-01 : f32
    %168 = vector.broadcast %cst_58 : f32 to vector<1x256xf32>
    %169 = arith.mulf %168, %167 : vector<1x256xf32>
    %cst_59 = arith.constant 5.000000e-01 : f32
    %170 = vector.broadcast %cst_59 : f32 to vector<1x256xf32>
    %171 = arith.addf %169, %170 : vector<1x256xf32>
    %172 = vector.extract_strided_slice %166 {offsets = [0, 256], sizes = [1, 256], strides = [1, 1]} : vector<1x1024xf32> to vector<1x256xf32>
    %cst_60 = arith.constant 5.000000e-01 : f32
    %173 = vector.broadcast %cst_60 : f32 to vector<1x256xf32>
    %174 = arith.mulf %173, %172 : vector<1x256xf32>
    %cst_61 = arith.constant 5.000000e-01 : f32
    %175 = vector.broadcast %cst_61 : f32 to vector<1x256xf32>
    %176 = arith.addf %174, %175 : vector<1x256xf32>
    %177 = vector.extract_strided_slice %166 {offsets = [0, 512], sizes = [1, 256], strides = [1, 1]} : vector<1x1024xf32> to vector<1x256xf32>
    %178 = vector.extract_strided_slice %166 {offsets = [0, 768], sizes = [1, 256], strides = [1, 1]} : vector<1x1024xf32> to vector<1x256xf32>
    %cst_62 = arith.constant 5.000000e-01 : f32
    %179 = vector.broadcast %cst_62 : f32 to vector<1x256xf32>
    %180 = arith.mulf %179, %178 : vector<1x256xf32>
    %cst_63 = arith.constant 5.000000e-01 : f32
    %181 = vector.broadcast %cst_63 : f32 to vector<1x256xf32>
    %182 = arith.addf %180, %181 : vector<1x256xf32>
    %183 = arith.mulf %176, %159 : vector<1x256xf32>
    %184 = arith.mulf %171, %177 : vector<1x256xf32>
    %185 = arith.addf %183, %184 : vector<1x256xf32>
    %186 = math.tanh %185 : vector<1x256xf32>
    %187 = arith.mulf %182, %186 : vector<1x256xf32>
    %c7 = arith.constant 7 : index
    %c0_64 = arith.constant 0 : index
    %188 = vector.load %arg8[%c7, %c0_64] : memref<8x1024xf32, #tpu.memory_space<vmem>>, vector<1x1024xf32>
    %189 = arith.truncf %187 : vector<1x256xf32> to vector<1x256xbf16>
    %cst_65 = arith.constant dense<0.000000e+00> : vector<1x1024xf32>
    %190 = tpu.matmul %189, %31, %cst_65 {dimension_numbers = #tpu.dot_dimension_numbers<[1], [0], [0], [1], [0, 0, 1, 1], [], []>} : vector<1x256xbf16>, vector<256x1024xbf16>, vector<1x1024xf32> -> vector<1x1024xf32>
    %191 = arith.addf %188, %190 : vector<1x1024xf32>
    %192 = math.tanh %191 : vector<1x1024xf32>
    %193 = vector.extract_strided_slice %192 {offsets = [0, 0], sizes = [1, 256], strides = [1, 1]} : vector<1x1024xf32> to vector<1x256xf32>
    %cst_66 = arith.constant 5.000000e-01 : f32
    %194 = vector.broadcast %cst_66 : f32 to vector<1x256xf32>
    %195 = arith.mulf %194, %193 : vector<1x256xf32>
    %cst_67 = arith.constant 5.000000e-01 : f32
    %196 = vector.broadcast %cst_67 : f32 to vector<1x256xf32>
    %197 = arith.addf %195, %196 : vector<1x256xf32>
    %198 = vector.extract_strided_slice %192 {offsets = [0, 256], sizes = [1, 256], strides = [1, 1]} : vector<1x1024xf32> to vector<1x256xf32>
    %cst_68 = arith.constant 5.000000e-01 : f32
    %199 = vector.broadcast %cst_68 : f32 to vector<1x256xf32>
    %200 = arith.mulf %199, %198 : vector<1x256xf32>
    %cst_69 = arith.constant 5.000000e-01 : f32
    %201 = vector.broadcast %cst_69 : f32 to vector<1x256xf32>
    %202 = arith.addf %200, %201 : vector<1x256xf32>
    %203 = vector.extract_strided_slice %192 {offsets = [0, 512], sizes = [1, 256], strides = [1, 1]} : vector<1x1024xf32> to vector<1x256xf32>
    %204 = vector.extract_strided_slice %192 {offsets = [0, 768], sizes = [1, 256], strides = [1, 1]} : vector<1x1024xf32> to vector<1x256xf32>
    %cst_70 = arith.constant 5.000000e-01 : f32
    %205 = vector.broadcast %cst_70 : f32 to vector<1x256xf32>
    %206 = arith.mulf %205, %204 : vector<1x256xf32>
    %cst_71 = arith.constant 5.000000e-01 : f32
    %207 = vector.broadcast %cst_71 : f32 to vector<1x256xf32>
    %208 = arith.addf %206, %207 : vector<1x256xf32>
    %209 = arith.mulf %202, %185 : vector<1x256xf32>
    %210 = arith.mulf %197, %203 : vector<1x256xf32>
    %211 = arith.addf %209, %210 : vector<1x256xf32>
    %212 = math.tanh %211 : vector<1x256xf32>
    %213 = arith.mulf %208, %212 : vector<1x256xf32>
    %c0_72 = arith.constant 0 : index
    %c0_73 = arith.constant 0 : index
    %214 = vector.load %arg5[%c0_72, %c0_73] : memref<256x4xf32, #tpu.memory_space<vmem>>, vector<256x4xf32>
    %cst_74 = arith.constant dense<0.000000e+00> : vector<1x4xf32>
    %215 = tpu.matmul %213, %214, %cst_74 {dimension_numbers = #tpu.dot_dimension_numbers<[1], [0], [0], [1], [0, 0, 1, 1], [], []>} : vector<1x256xf32>, vector<256x4xf32>, vector<1x4xf32> -> vector<1x4xf32>
    %c0_75 = arith.constant 0 : index
    %c0_76 = arith.constant 0 : index
    %216 = vector.load %arg6[%c0_75, %c0_76] : memref<1x4xf32, #tpu.memory_space<vmem>>, vector<1x4xf32>
    %217 = arith.addf %215, %216 : vector<1x4xf32>
    %c0_77 = arith.constant 0 : index
    %c0_78 = arith.constant 0 : index
    %218 = vector.load %arg7[%c0_77, %c0_78] : memref<1x4xf32, #tpu.memory_space<vmem>>, vector<1x4xf32>
    tpu.vector_store %arg7[%c0_77, %c0_78], %217 {strides = array<i32>} : memref<1x4xf32, #tpu.memory_space<vmem>>, vector<1x4xf32>,
    return
  }
  func.func @transform_0(%arg0: i32) -> (i32, i32) {
    %c0_i32 = arith.constant 0 : i32
    %c0_i32_0 = arith.constant 0 : i32
    %c0_i32_1 = arith.constant 0 : i32
    return %c0_i32, %c0_i32_0 : i32, i32
  }
  func.func @transform_1(%arg0: i32) -> (i32, i32) {
    %c0_i32 = arith.constant 0 : i32
    %c0_i32_0 = arith.constant 0 : i32
    %c0_i32_1 = arith.constant 0 : i32
    return %c0_i32, %c0_i32_0 : i32, i32
  }
  func.func @transform_3(%arg0: i32) -> (i32, i32) {
    %c0_i32 = arith.constant 0 : i32
    %c0_i32_0 = arith.constant 0 : i32
    %c0_i32_1 = arith.constant 0 : i32
    return %c0_i32, %c0_i32_0 : i32, i32
  }
  func.func @transform_4(%arg0: i32) -> (i32, i32) {
    %c0_i32 = arith.constant 0 : i32
    %c0_i32_0 = arith.constant 0 : i32
    %c0_i32_1 = arith.constant 0 : i32
    return %c0_i32, %c0_i32_0 : i32, i32
  }
  func.func @transform_5(%arg0: i32) -> (i32, i32) {
    %c0_i32 = arith.constant 0 : i32
    %c0_i32_0 = arith.constant 0 : i32
    %c0_i32_1 = arith.constant 0 : i32
    return %c0_i32, %c0_i32_0 : i32, i32
  }
  func.func @transform_6(%arg0: i32) -> (i32, i32) {
    %c0_i32 = arith.constant 0 : i32
    %c0_i32_0 = arith.constant 0 : i32
    %c0_i32_1 = arith.constant 0 : i32
    return %c0_i32, %c0_i32_0 : i32, i32
  }
}

</mosaic_0001>

<bundles_post_ra>
// kernel: lstm_forward.1
= control target key start
LH: loop header
LB: loop body
LE: loop exit
PB: predicated region body
PF: predicated region fallthrough
CT: control target
= control target key end

     0   :  { %11 = vsyncpa [#allocation6], 0  ;;  %s26_s21 = sld [smem:[#allocation0]]   ;;  %s2972_s22 = smov [#allocation3]   ;;  %v2974_v0 = vmov 0.0   ;;  %vm116_vm0 = vcmask 1043456   ;;  %v64_v10 = vlaneseq  ;;  %s4605_s0 = inlined_call_operand.vmem [shape: f32[8,4], index: 0, kind: input, shape index: {}]   ;;  %s4606_s1 = inlined_call_operand.vmem [shape: f32[4,1024], index: 1, kind: input, shape index: {}]   ;;  %s4607_s2 = inlined_call_operand.hbm [shape: bf16[256,1024], index: 2, kind: input, shape index: {}]   ;;  %s4608_s3 = inlined_call_operand.vmem [shape: f32[1,1024], index: 3, kind: input, shape index: {}]   ;;  %s4609_s4 = inlined_call_operand.vmem [shape: f32[256,4], index: 4, kind: input, shape index: {}]   ;;  %s4610_s5 = inlined_call_operand.vmem [shape: f32[1,4], index: 5, kind: input, shape index: {}]   ;;  %s4611_s6 = inlined_call_operand.hbm [shape: f32[1,4], index: 6, kind: output, shape index: {}]  }
   0x1   :  { %s34_s23 = sshll.u32 %s2972_s22, 4  ;;  %s2973_s24 = smov 1024   ;;  %197 = vmatprep.mubr.f32.mxu1 %v2974_v0  ;;  %vm112_vm1 = vcmask 31744   ;;  %s35_s23 = int_to_ptr.vmem [resolvable:$true] %s34_s23 }
   0x2   :  { %38 = sst [smem:[#allocation8]] %s2973_s24  ;;  %s2975_s25 = smov 8   ;;  %v3050_v11 = vshrl.u32 %v64_v10, 7 }
   0x3   :  { %40 = sst [smem:[#allocation8 + $0x1]] %s2973_s24  ;;  %s2976_s26 = smov 64  }
   0x4   :  { %42 = sst [smem:[#allocation8 + $0x2]] %s2975_s25  ;;  %s2977_s28 = smov 128   ;;  %v3053_v12 = vsub.s32 0, %v3050_v11  ;;  %v3059_v14 = vsub.s32 1, %v3050_v11  ;;  %v74_v16 = vsub.s32 2, %v3050_v11  ;;  %v78_v18 = vsub.s32 3, %v3050_v11 }
   0x5   :  { %44 = sst [smem:[#allocation8 + $0x3]] %s2976_s26  ;;  %s2978_s30 = smov 2   ;;  %v82_v23 = vsub.s32 4, %v3050_v11  ;;  %v86_v26 = vsub.s32 5, %v3050_v11  ;;  %v90_v31 = vsub.s32 6, %v3050_v11  ;;  %v94_v34 = vsub.s32 7, %v3050_v11 }
   0x6   :  { %s2543_s27 = sshll.u32 %s26_s21, 26  ;;  %46 = sst [smem:[#allocation8 + $0x4]] %s2977_s28 }
   0x7   :  { %s2544_s29 = sadd.s32 134217728, %s2543_s27  ;;  %48 = sst [smem:[#allocation8 + $0x5]] %s2978_s30 }
   0x8   :  { %s2979_s7 = smov 512   ;;  %52 = sst [smem:[#allocation8 + $0x7]] %s2976_s26 }
   0x9   :  { %50 = sst [smem:[#allocation8 + $0x6]] %s2979_s7  ;;  %s2980_s8 = smov 4  }
   0xa   :  { %54 = sst [smem:[#allocation8 + $0x8]] %s2980_s8  ;;  %s2981_s9 = smov [#allocation4]  }
   0xb   :  { %s2982_s10 = smov [#allocation7]  }
   0xc   :  { %56 = dma.general %s4607_s2, 16384, %s35_s23, %s2981_s9, %s2982_s10, [#allocation8], %s2544_s29, 0  }
   0xd   :  { %v58_v1 = vld [vmem:[%s4606_s1] sm:$0xff]  ;;  %v59_v2 = vld [vmem:[%s4606_s1 + $0x8] sm:$0xff]  ;;  %v60_v5 = vld [vmem:[%s4606_s1 + $0x10] sm:$0xff]  ;;  %4934 = vst [vmem:[#allocation11_spill] sm:$0xff] %v3050_v11 }
   0xe   :  { %v108_v3 = vcombine.high %v58_v1, %v58_v1  ;;  %v109_v4 = vcombine.high %v59_v2, %v59_v2  ;;  %v57_v6 = vld [vmem:[%s4605_s0] sm:$0xff]  ;;  %v110_v7 = vcombine.high %v60_v5, %v60_v5  ;;  %v61_v8 = vld [vmem:[%s4606_s1 + $0x18] sm:$0xff]  ;;  %4935 = vst [vmem:[#allocation12_spill] sm:$0xff] %v3053_v12  ;;  %4936 = vst [vmem:[#allocation13_spill] sm:$0xff] %v3059_v14 }
   0xf   :  { %v111_v9 = vcombine.high %v61_v8, %v61_v8  ;;  %v62_v13 = vld [vmem:[%s4608_s3] sm:$0xff] }
  0x10   :  { %2545 = vmatprep.subr.msk.mxu1 %vm116_vm0, %v108_v3  ;;  %v67_v15 = vrot.slane %v62_v13, %v3053_v12  ;;  %v71_v17 = vrot.slane %v62_v13, %v3059_v14  ;;  %v75_v22 = vrot.slane %v62_v13, %v74_v16  ;;  %v79_v25 = vrot.slane %v62_v13, %v78_v18 }
  0x11   :  { %2546 = vmatpush1.msk.msra.mxu1 %vm116_vm0, %v58_v1  ;;  %v83_v30 = vrot.slane %v62_v13, %v82_v23  ;;  %v87_v33 = vrot.slane %v62_v13, %v86_v26  ;;  %v91_v38 = vrot.slane %v62_v13, %v90_v31  ;;  %v95_v40 = vrot.slane %v62_v13, %v94_v34 }
  0x12   :  { %2547 = vmatmul.mubr.msk.f32.vlgmr.msra.gmra.mrb[0].mxu1 %vm112_vm1, %v57_v6  ;;  %2548 = vmatprep.subr.msk.mxu1 %vm116_vm0, %v109_v4 }
  0x13   :  { %2549 = vmatpush1.msk.msra.mxu1 %vm116_vm0, %v59_v2  ;;  %268 = vmatprep.mubr.f32.mxu1 %v2974_v0 }
  0x14   :  { %2551 = vmatprep.subr.msk.mxu1 %vm116_vm0, %v110_v7 }
  0x16   :  { %2550 = vmatmul.mubr.msk.f32.vlgmr.msra.gmra.mrb[2].mxu1 %vm112_vm1, %v57_v6 }
  0x17   :  { %2552 = vmatpush1.msk.msra.mxu1 %vm116_vm0, %v60_v5  ;;  %339 = vmatprep.mubr.f32.mxu1 %v2974_v0 }
  0x18   :  { %2554 = vmatprep.subr.msk.mxu1 %vm116_vm0, %v111_v9 }
  0x1a   :  { %2553 = vmatmul.mubr.msk.f32.vlgmr.msra.gmra.mrb[4].mxu1 %vm112_vm1, %v57_v6 }
  0x1b   :  { %2555 = vmatpush1.msk.msra.mxu1 %vm116_vm0, %v61_v8  ;;  %410 = vmatprep.mubr.f32.mxu1 %v2974_v0 }
  0x1e   :  { %2556 = vmatmul.mubr.msk.f32.vlgmr.msra.gmra.mrb[6].mxu1 %vm112_vm1, %v57_v6 }
  0xe5   :  { %v199_v19 = vpop.f32.mrb[0].mxu1 }
  0xe6   :  { %v200_v20 = vadd.f32 %v199_v19, %v67_v15  ;;  %v201_v21 = vpop.f32.mrb[1].mxu1 }
  0xe7   :  { %v202_v24 = vadd.f32 %v201_v21, %v71_v17 }
  0xe8   :  { %417 = vst [vmem:[#allocation2] sm:$0xff] %v200_v20  ;;  %2642 = vtanh.f32 %v200_v20 }
  0xe9   :  { %418 = vst [vmem:[#allocation2 + $0x8] sm:$0xff] %v202_v24  ;;  %2644 = vtanh.f32 %v202_v24  ;;  %v270_v27 = vpop.f32.mrb[2].mxu1 }
  0xea   :  { %v271_v28 = vadd.f32 %v270_v27, %v75_v22  ;;  %v272_v29 = vpop.f32.mrb[3].mxu1 }
  0xeb   :  { %v273_v32 = vadd.f32 %v272_v29, %v79_v25 }
  0xec   :  { %419 = vst [vmem:[#allocation2 + $0x10] sm:$0xff] %v271_v28  ;;  %2646 = vtanh.f32 %v271_v28 }
  0xed   :  { %420 = vst [vmem:[#allocation2 + $0x18] sm:$0xff] %v273_v32  ;;  %2648 = vtanh.f32 %v273_v32  ;;  %v341_v35 = vpop.f32.mrb[4].mxu1 }
  0xee   :  { %v342_v36 = vadd.f32 %v341_v35, %v83_v30  ;;  %v343_v37 = vpop.f32.mrb[5].mxu1 }
  0xef   :  { %v344_v39 = vadd.f32 %v343_v37, %v87_v33 }
  0xf0   :  { %421 = vst [vmem:[#allocation2 + $0x20] sm:$0xff] %v342_v36  ;;  %2650 = vtanh.f32 %v342_v36 }
  0xf1   :  { %422 = vst [vmem:[#allocation2 + $0x28] sm:$0xff] %v344_v39  ;;  %2652 = vtanh.f32 %v344_v39  ;;  %v412_v41 = vpop.f32.mrb[6].mxu1 }
  0xf2   :  { %v2643_v42 = vpop.eup %2642  ;;  %v413_v43 = vadd.f32 %v412_v41, %v91_v38  ;;  %v414_v44 = vpop.f32.mrb[7].mxu1 }
  0xf3   :  { %v2645_v45 = vpop.eup %2644  ;;  %v415_v46 = vadd.f32 %v414_v44, %v95_v40  ;;  %v433_v47 = vmul.f32 0.5, %v2643_v42 }
  0xf4   :  { %423 = vst [vmem:[#allocation2 + $0x30] sm:$0xff] %v413_v43  ;;  %2654 = vtanh.f32 %v413_v43  ;;  %v434_v49 = vmul.f32 0.5, %v2645_v45 }
  0xf5   :  { %424 = vst [vmem:[#allocation2 + $0x38] sm:$0xff] %v415_v46  ;;  %2656 = vtanh.f32 %v415_v46  ;;  %v435_v53 = vadd.f32 0.5, %v433_v47 }
  0xf6   :  { %v2647_v48 = vpop.eup %2646  ;;  %v436_v56 = vadd.f32 0.5, %v434_v49 }
  0xf7   :  { %v2649_v50 = vpop.eup %2648  ;;  %v437_v51 = vmul.f32 0.5, %v2647_v48 }
  0xf8   :  { %v438_v52 = vmul.f32 0.5, %v2649_v50 }
  0xf9   :  { %v439_v54 = vadd.f32 0.5, %v437_v51 }
  0xfa   :  { %v2651_v55 = vpop.eup %2650  ;;  %v440_v57 = vadd.f32 0.5, %v438_v52 }
  0xfb   :  { %v2653_v58 = vpop.eup %2652  ;;  %v445_v59 = vmul.f32 0.0, %v439_v54  ;;  %v447_v60 = vmul.f32 %v2651_v55, %v435_v53 }
  0xfc   :  { %v446_v61 = vmul.f32 0.0, %v440_v57  ;;  %v448_v62 = vmul.f32 %v2653_v58, %v436_v56 }
  0xfd   :  { %v3069_v63 = vadd.f32 %v447_v60, %v445_v59 }
  0xfe   :  { %v3071_v0 = vadd.f32 %v448_v62, %v446_v61  ;;  %v2655_v1 = vpop.eup %2654 }
  0xff   :  { %4937 = vst [vmem:[#allocation14_spill] sm:$0xff] %v3069_v63  ;;  %2658 = vtanh.f32 %v3069_v63  ;;  %v2657_v2 = vpop.eup %2656  ;;  %v441_v3 = vmul.f32 0.5, %v2655_v1 }
 0x100   :  { %4938 = vst [vmem:[#allocation15_spill] sm:$0xff] %v3071_v0  ;;  %2660 = vtanh.f32 %v3071_v0  ;;  %v442_v4 = vmul.f32 0.5, %v2657_v2 }
 0x101   :  { %v443_v5 = vadd.f32 0.5, %v441_v3 }
 0x102   :  { %v444_v6 = vadd.f32 0.5, %v442_v4 }
 0x109   :  { %v2659_v7 = vpop.eup %2658 }
 0x10a   :  { %v2661_v8 = vpop.eup %2660  ;;  %v3075_v9 = vmul.f32 %v2659_v7, %v443_v5 }
 0x10b   :  { %v454_v10 = vmul.f32 %v2661_v8, %v444_v6 }
 0x10c   :  { %2968 = dma.done.wait [#allocation4], 16384 }
 0x10d   :  { %2969 = vsyncadd [#allocation4], 4294950912  ;;  %v3077_v13 = vpack.c.bf16 %v454_v10, %v454_v10  ;;  %v3081_v15 = vld [vmem:[#allocation3 + $0x8] sm:$0xff]  ;;  %v3083_v16 = vld [vmem:[#allocation3 + $0x18] sm:$0xff]  ;;  %s2984_s30 = smov [#allocation5]   ;;  %vm2521_vm2 = vcmask 24576  }
 0x10e   :  { %v3085_v17 = vld [vmem:[#allocation3] sm:$0xff]  ;;  %593 = vmatprep.subr.bf16.mxu0 %v3081_v15  ;;  %634 = vmatprep.subr.bf16.mxu1 %v3083_v16  ;;  %v3089_v18 = vld [vmem:[#allocation3 + $0x10] sm:$0xff]  ;;  %v3091_v19 = vld [vmem:[#allocation3 + $0x48] sm:$0xff]  ;;  %s2529_s7 = sshll.u32 %s2984_s30, 4  ;;  %s2530_s7 = int_to_ptr.vmem [resolvable:$true] %s2529_s7 }
 0x10f   :  { %625 = vmatprep.mubr.bf16.mxu0 %v3077_v13  ;;  %666 = vmatprep.mubr.bf16.mxu1 %v3077_v13  ;;  %v3093_v20 = vld [vmem:[#allocation3 + $0x58] sm:$0xff]  ;;  %v3099_v21 = vld [vmem:[#allocation3 + $0x40] sm:$0xff]  ;;  %v3101_v22 = vld [vmem:[#allocation3 + $0x50] sm:$0xff]  ;;  %s2946_s8 = scalar_lea.vmem %s2530_s7, 16  ;;  %s2950_s9 = scalar_lea.vmem %s2530_s7, 32 }
 0x110   :  { %594 = vmatpush1.bf16.msra.mxu0 %v3085_v17  ;;  %635 = vmatpush1.bf16.msra.mxu1 %v3089_v18  ;;  %v3103_v23 = vld [vmem:[#allocation3 + $0x88] sm:$0xff]  ;;  %v3105_v24 = vld [vmem:[#allocation3 + $0x98] sm:$0xff]  ;;  %v3111_v25 = vld [vmem:[#allocation3 + $0x80] sm:$0xff]  ;;  %p2947_p0 = scmp.ne.s32.totalorder %s2530_s7, %s2946_s8  ;;  %p2951_p1 = scmp.lt.s32.totalorder %s2530_s7, %s2530_s7 }
 0x111   :  { %595 = vmatprep.subr.bf16.mxu0 %v3091_v19  ;;  %636 = vmatprep.subr.bf16.mxu1 %v3093_v20  ;;  %v3113_v26 = vld [vmem:[#allocation3 + $0x90] sm:$0xff]  ;;  %v3115_v27 = vld [vmem:[#allocation3 + $0xc8] sm:$0xff]  ;;  %v3117_v28 = vld [vmem:[#allocation3 + $0xd8] sm:$0xff]  ;;  %p2952_p2 = scmp.lt.s32.totalorder %s2950_s9, %s2946_s8 }
 0x112   :  { %v3123_v29 = vld [vmem:[#allocation3 + $0xc0] sm:$0xff]  ;;  %v3125_v30 = vld [vmem:[#allocation3 + $0xd0] sm:$0xff]  ;;  %v3127_v31 = vld [vmem:[#allocation3 + $0x108] sm:$0xff] }
 0x113   :  { %v3129_v32 = vld [vmem:[#allocation3 + $0x118] sm:$0xff]  ;;  %v3135_v33 = vld [vmem:[#allocation3 + $0x100] sm:$0xff]  ;;  %v3137_v34 = vld [vmem:[#allocation3 + $0x110] sm:$0xff]  ;;  %p2953_p3 = por %p2952_p2, %p2951_p1 }
 0x114   :  { %596 = vmatpush1.bf16.msra.mxu0 %v3099_v21  ;;  %637 = vmatpush1.bf16.msra.mxu1 %v3101_v22  ;;  %v3139_v35 = vld [vmem:[#allocation3 + $0x148] sm:$0xff]  ;;  %v3141_v36 = vld [vmem:[#allocation3 + $0x158] sm:$0xff]  ;;  %v3147_v37 = vld [vmem:[#allocation3 + $0x140] sm:$0xff] }
 0x115   :  { %597 = vmatprep.subr.bf16.mxu0 %v3103_v23  ;;  %638 = vmatprep.subr.bf16.mxu1 %v3105_v24  ;;  %v3149_v38 = vld [vmem:[#allocation3 + $0x150] sm:$0xff]  ;;  %v3151_v39 = vld [vmem:[#allocation3 + $0x188] sm:$0xff]  ;;  %v3153_v40 = vld [vmem:[#allocation3 + $0x198] sm:$0xff]  ;;  %p2954_p4 = pnand %p2953_p3, %p2947_p0 }
 0x116   :  { %v3159_v41 = vld [vmem:[#allocation3 + $0x180] sm:$0xff]  ;;  %v3161_v42 = vld [vmem:[#allocation3 + $0x190] sm:$0xff]  ;;  %v3163_v43 = vld [vmem:[#allocation3 + $0x1c8] sm:$0xff] }
 0x117   :  { %v3165_v44 = vld [vmem:[#allocation3 + $0x1d8] sm:$0xff]  ;;  %v3171_v45 = vld [vmem:[#allocation3 + $0x1c0] sm:$0xff]  ;;  %v3173_v46 = vld [vmem:[#allocation3 + $0x1d0] sm:$0xff] }
 0x118   :  { %598 = vmatpush1.bf16.msra.mxu0 %v3111_v25  ;;  %639 = vmatpush1.bf16.msra.mxu1 %v3113_v26  ;;  %v3175_v47 = vld [vmem:[#allocation3 + $0x208] sm:$0xff]  ;;  %v3177_v48 = vld [vmem:[#allocation3 + $0x218] sm:$0xff]  ;;  %v3183_v49 = vld [vmem:[#allocation3 + $0x200] sm:$0xff] }
 0x119   :  { %599 = vmatprep.subr.bf16.mxu0 %v3115_v27  ;;  %640 = vmatprep.subr.bf16.mxu1 %v3117_v28  ;;  %4939 = vst [vmem:[#allocation16_spill] sm:$0xff] %v3175_v47  ;;  %4940 = vst [vmem:[#allocation17_spill] sm:$0xff] %v3177_v48  ;;  %v3185_v50 = vld [vmem:[#allocation3 + $0x210] sm:$0xff]  ;;  %v3187_v51 = vld [vmem:[#allocation3 + $0x248] sm:$0xff] }
 0x11a   :  { %4941 = vst [vmem:[#allocation18_spill] sm:$0xff] %v3183_v49  ;;  %4942 = vst [vmem:[#allocation19_spill] sm:$0xff] %v3185_v50  ;;  %v3189_v52 = vld [vmem:[#allocation3 + $0x258] sm:$0xff]  ;;  %v3195_v53 = vld [vmem:[#allocation3 + $0x240] sm:$0xff] }
 0x11b   :  { %4943 = vst [vmem:[#allocation20_spill] sm:$0xff] %v3187_v51  ;;  %4944 = vst [vmem:[#allocation21_spill] sm:$0xff] %v3189_v52  ;;  %v3197_v54 = vld [vmem:[#allocation3 + $0x250] sm:$0xff]  ;;  %v3199_v55 = vld [vmem:[#allocation3 + $0x288] sm:$0xff] }
 0x11c   :  { %600 = vmatpush1.bf16.msra.mxu0 %v3123_v29  ;;  %641 = vmatpush1.bf16.msra.mxu1 %v3125_v30  ;;  %4945 = vst [vmem:[#allocation22_spill] sm:$0xff] %v3195_v53  ;;  %4946 = vst [vmem:[#allocation23_spill] sm:$0xff] %v3197_v54  ;;  %v3201_v56 = vld [vmem:[#allocation3 + $0x298] sm:$0xff]  ;;  %v3207_v57 = vld [vmem:[#allocation3 + $0x280] sm:$0xff] }
 0x11d   :  { %601 = vmatprep.subr.bf16.mxu0 %v3127_v31  ;;  %642 = vmatprep.subr.bf16.mxu1 %v3129_v32  ;;  %4947 = vst [vmem:[#allocation24_spill] sm:$0xff] %v3199_v55  ;;  %4948 = vst [vmem:[#allocation25_spill] sm:$0xff] %v3201_v56  ;;  %v3209_v58 = vld [vmem:[#allocation3 + $0x290] sm:$0xff]  ;;  %v3211_v59 = vld [vmem:[#allocation3 + $0x2c8] sm:$0xff] }
 0x11e   :  { %4949 = vst [vmem:[#allocation26_spill] sm:$0xff] %v3207_v57  ;;  %4950 = vst [vmem:[#allocation27_spill] sm:$0xff] %v3209_v58  ;;  %v3213_v60 = vld [vmem:[#allocation3 + $0x2d8] sm:$0xff]  ;;  %v3219_v61 = vld [vmem:[#allocation3 + $0x2c0] sm:$0xff] }
 0x11f   :  { %4951 = vst [vmem:[#allocation28_spill] sm:$0xff] %v3211_v59  ;;  %4952 = vst [vmem:[#allocation29_spill] sm:$0xff] %v3213_v60  ;;  %v3221_v62 = vld [vmem:[#allocation3 + $0x2d0] sm:$0xff]  ;;  %v3223_v1 = vld [vmem:[#allocation3 + $0x308] sm:$0xff] }
 0x120   :  { %602 = vmatpush1.bf16.msra.mxu0 %v3135_v33  ;;  %643 = vmatpush1.bf16.msra.mxu1 %v3137_v34  ;;  %4953 = vst [vmem:[#allocation30_spill] sm:$0xff] %v3219_v61  ;;  %4954 = vst [vmem:[#allocation31_spill] sm:$0xff] %v3221_v62  ;;  %v3225_v2 = vld [vmem:[#allocation3 + $0x318] sm:$0xff]  ;;  %v3231_v3 = vld [vmem:[#allocation3 + $0x300] sm:$0xff] }
 0x121   :  { %603 = vmatprep.subr.bf16.mxu0 %v3139_v35  ;;  %644 = vmatprep.subr.bf16.mxu1 %v3141_v36  ;;  %4955 = vst [vmem:[#allocation32_spill] sm:$0xff] %v3223_v1  ;;  %4956 = vst [vmem:[#allocation33_spill] sm:$0xff] %v3225_v2  ;;  %v3233_v4 = vld [vmem:[#allocation3 + $0x310] sm:$0xff]  ;;  %v3235_v5 = vld [vmem:[#allocation3 + $0x348] sm:$0xff] }
 0x122   :  { %4957 = vst [vmem:[#allocation34_spill] sm:$0xff] %v3231_v3  ;;  %4958 = vst [vmem:[#allocation35_spill] sm:$0xff] %v3233_v4  ;;  %v3237_v6 = vld [vmem:[#allocation3 + $0x358] sm:$0xff]  ;;  %v3243_v7 = vld [vmem:[#allocation3 + $0x340] sm:$0xff] }
 0x123   :  { %4959 = vst [vmem:[#allocation36_spill] sm:$0xff] %v3235_v5  ;;  %4960 = vst [vmem:[#allocation37_spill] sm:$0xff] %v3237_v6  ;;  %v3245_v8 = vld [vmem:[#allocation3 + $0x350] sm:$0xff]  ;;  %v3247_v10 = vld [vmem:[#allocation3 + $0x388] sm:$0xff] }
 0x124   :  { %604 = vmatpush1.bf16.msra.mxu0 %v3147_v37  ;;  %645 = vmatpush1.bf16.msra.mxu1 %v3149_v38  ;;  %4961 = vst [vmem:[#allocation38_spill] sm:$0xff] %v3243_v7  ;;  %4962 = vst [vmem:[#allocation39_spill] sm:$0xff] %v3245_v8  ;;  %v3249_v12 = vld [vmem:[#allocation3 + $0x398] sm:$0xff]  ;;  %v3255_v14 = vld [vmem:[#allocation3 + $0x380] sm:$0xff] }
 0x125   :  { %605 = vmatprep.subr.bf16.mxu0 %v3151_v39  ;;  %646 = vmatprep.subr.bf16.mxu1 %v3153_v40  ;;  %4963 = vst [vmem:[#allocation40_spill] sm:$0xff] %v3247_v10  ;;  %4964 = vst [vmem:[#allocation41_spill] sm:$0xff] %v3249_v12  ;;  %v3257_v63 = vld [vmem:[#allocation3 + $0x390] sm:$0xff]  ;;  %v3259_v0 = vld [vmem:[#allocation3 + $0x3c8] sm:$0xff] }
 0x126   :  { %4965 = vst [vmem:[#allocation42_spill] sm:$0xff] %v3255_v14  ;;  %4966 = vst [vmem:[#allocation43_spill] sm:$0xff] %v3257_v63  ;;  %v3261_v11 = vld [vmem:[#allocation3 + $0x3d8] sm:$0xff] }
 0x127   :  { %4967 = vst [vmem:[#allocation44_spill] sm:$0xff] %v3259_v0  ;;  %4968 = vst [vmem:[#allocation45_spill] sm:$0xff] %v3261_v11 }
 0x128   :  { %606 = vmatpush1.bf16.msra.mxu0 %v3159_v41  ;;  %647 = vmatpush1.bf16.msra.mxu1 %v3161_v42 }
 0x129   :  { %607 = vmatprep.subr.bf16.mxu0 %v3163_v43  ;;  %648 = vmatprep.subr.bf16.mxu1 %v3165_v44 }
 0x12c   :  { %608 = vmatpush1.bf16.msra.mxu0 %v3171_v45  ;;  %649 = vmatpush1.bf16.msra.mxu1 %v3173_v46 }
 0x12d   :  { %609 = vmatprep.subr.bf16.mxu0 %v3175_v47  ;;  %650 = vmatprep.subr.bf16.mxu1 %v3177_v48 }
 0x130   :  { %610 = vmatpush1.bf16.msra.mxu0 %v3183_v49  ;;  %651 = vmatpush1.bf16.msra.mxu1 %v3185_v50 }
 0x131   :  { %611 = vmatprep.subr.bf16.mxu0 %v3187_v51  ;;  %652 = vmatprep.subr.bf16.mxu1 %v3189_v52 }
 0x134   :  { %612 = vmatpush1.bf16.msra.mxu0 %v3195_v53  ;;  %653 = vmatpush1.bf16.msra.mxu1 %v3197_v54 }
 0x135   :  { %613 = vmatprep.subr.bf16.mxu0 %v3199_v55  ;;  %654 = vmatprep.subr.bf16.mxu1 %v3201_v56 }
 0x138   :  { %614 = vmatpush1.bf16.msra.mxu0 %v3207_v57  ;;  %655 = vmatpush1.bf16.msra.mxu1 %v3209_v58 }
 0x139   :  { %615 = vmatprep.subr.bf16.mxu0 %v3211_v59  ;;  %656 = vmatprep.subr.bf16.mxu1 %v3213_v60 }
 0x13c   :  { %616 = vmatpush1.bf16.msra.mxu0 %v3219_v61  ;;  %657 = vmatpush1.bf16.msra.mxu1 %v3221_v62 }
 0x13d   :  { %617 = vmatprep.subr.bf16.mxu0 %v3223_v1  ;;  %658 = vmatprep.subr.bf16.mxu1 %v3225_v2 }
 0x140   :  { %618 = vmatpush1.bf16.msra.mxu0 %v3231_v3  ;;  %659 = vmatpush1.bf16.msra.mxu1 %v3233_v4 }
 0x141   :  { %619 = vmatprep.subr.bf16.mxu0 %v3235_v5  ;;  %660 = vmatprep.subr.bf16.mxu1 %v3237_v6  ;;  %v3277_v6 = vpack.c.bf16 %v3075_v9, %v3075_v9  ;;  %v3297_v9 = vld [vmem:[#allocation3 + $0x60] sm:$0xff] }
 0x144   :  { %620 = vmatpush1.bf16.msra.mxu0 %v3243_v7  ;;  %661 = vmatpush1.bf16.msra.mxu1 %v3245_v8  ;;  %v3267_v8 = vld [vmem:[#allocation3 + $0x3c0] sm:$0xff]  ;;  %v3273_v7 = vld [vmem:[#allocation3 + $0x38] sm:$0xff] }
 0x145   :  { %621 = vmatprep.subr.bf16.mxu0 %v3247_v10  ;;  %662 = vmatprep.subr.bf16.mxu1 %v3249_v12  ;;  %4969 = vst [vmem:[#allocation46_spill] sm:$0xff] %v3267_v8  ;;  %v3269_v10 = vld [vmem:[#allocation3 + $0x3d0] sm:$0xff]  ;;  %v3271_v12 = vld [vmem:[#allocation3 + $0x28] sm:$0xff]  ;;  %4972 = vst [vmem:[#allocation49_spill] sm:$0xff] %v3273_v7 }
 0x146   :  { %4970 = vst [vmem:[#allocation47_spill] sm:$0xff] %v3269_v10  ;;  %4971 = vst [vmem:[#allocation48_spill] sm:$0xff] %v3271_v12 }
 0x148   :  { %622 = vmatpush1.bf16.msra.mxu0 %v3255_v14  ;;  %663 = vmatpush1.bf16.msra.mxu1 %v3257_v63  ;;  %v3287_v63 = vld [vmem:[#allocation3 + $0x68] sm:$0xff]  ;;  %v3289_v14 = vld [vmem:[#allocation3 + $0x78] sm:$0xff] }
 0x149   :  { %623 = vmatprep.subr.bf16.mxu0 %v3259_v0  ;;  %664 = vmatprep.subr.bf16.mxu1 %v3261_v11  ;;  %v3283_v11 = vld [vmem:[#allocation3 + $0x20] sm:$0xff]  ;;  %v3285_v0 = vld [vmem:[#allocation3 + $0x30] sm:$0xff]  ;;  %4975 = vst [vmem:[#allocation52_spill] sm:$0xff] %v3287_v63  ;;  %4976 = vst [vmem:[#allocation53_spill] sm:$0xff] %v3289_v14 }
 0x14a   :  { %4973 = vst [vmem:[#allocation50_spill] sm:$0xff] %v3283_v11  ;;  %4974 = vst [vmem:[#allocation51_spill] sm:$0xff] %v3285_v0 }
 0x14c   :  { %624 = vmatpush1.bf16.msra.mxu0 %v3267_v8  ;;  %665 = vmatpush1.bf16.msra.mxu1 %v3269_v10  ;;  %v3303_v10 = vld [vmem:[#allocation3 + $0xb8] sm:$0xff] }
 0x14d   :  { %675 = vmatprep.subr.bf16.mxu0 %v3271_v12  ;;  %716 = vmatprep.subr.bf16.mxu1 %v3273_v7  ;;  %v3299_v7 = vld [vmem:[#allocation3 + $0x70] sm:$0xff]  ;;  %v3301_v12 = vld [vmem:[#allocation3 + $0xa8] sm:$0xff]  ;;  %4979 = vst [vmem:[#allocation56_spill] sm:$0xff] %v3303_v10 }
 0x14e   :  { %4977 = vst [vmem:[#allocation54_spill] sm:$0xff] %v3299_v7  ;;  %4978 = vst [vmem:[#allocation55_spill] sm:$0xff] %v3301_v12 }
 0x14f   :  { %626 = vmatmul.mubr.bf16.vlgmr.msra.gmra.mrb[0].mxu0 %v3277_v6  ;;  %667 = vmatmul.mubr.bf16.vlgmr.msra.gmra.mrb[8].mxu1 %v3277_v6 }
 0x150   :  { %676 = vmatpush1.bf16.msra.mxu0 %v3283_v11  ;;  %717 = vmatpush1.bf16.msra.mxu1 %v3285_v0  ;;  %v3315_v0 = vld [vmem:[#allocation3 + $0xe8] sm:$0xff]  ;;  %v3317_v11 = vld [vmem:[#allocation3 + $0xf8] sm:$0xff] }
 0x151   :  { %677 = vmatprep.subr.bf16.mxu0 %v3287_v63  ;;  %718 = vmatprep.subr.bf16.mxu1 %v3289_v14  ;;  %v3311_v14 = vld [vmem:[#allocation3 + $0xa0] sm:$0xff]  ;;  %v3313_v63 = vld [vmem:[#allocation3 + $0xb0] sm:$0xff]  ;;  %4982 = vst [vmem:[#allocation59_spill] sm:$0xff] %v3315_v0  ;;  %4983 = vst [vmem:[#allocation60_spill] sm:$0xff] %v3317_v11 }
 0x152   :  { %707 = vmatprep.mubr.bf16.mxu0 %v3077_v13  ;;  %748 = vmatprep.mubr.bf16.mxu1 %v3077_v13  ;;  %4980 = vst [vmem:[#allocation57_spill] sm:$0xff] %v3311_v14  ;;  %4981 = vst [vmem:[#allocation58_spill] sm:$0xff] %v3313_v63  ;;  %v3323_v13 = vld [vmem:[#allocation3 + $0xe0] sm:$0xff] }
 0x153   :  { %4984 = vst [vmem:[#allocation61_spill] sm:$0xff] %v3323_v13 }
 0x154   :  { %678 = vmatpush1.bf16.msra.mxu0 %v3297_v9  ;;  %719 = vmatpush1.bf16.msra.mxu1 %v3299_v7  ;;  %v3329_v7 = vld [vmem:[#allocation3 + $0x138] sm:$0xff] }
 0x155   :  { %679 = vmatprep.subr.bf16.mxu0 %v3301_v12  ;;  %720 = vmatprep.subr.bf16.mxu1 %v3303_v10  ;;  %v3325_v12 = vld [vmem:[#allocation3 + $0xf0] sm:$0xff]  ;;  %v3327_v10 = vld [vmem:[#allocation3 + $0x128] sm:$0xff]  ;;  %4987 = vst [vmem:[#allocation64_spill] sm:$0xff] %v3329_v7 }
 0x156   :  { %4985 = vst [vmem:[#allocation62_spill] sm:$0xff] %v3325_v12  ;;  %4986 = vst [vmem:[#allocation63_spill] sm:$0xff] %v3327_v10 }
 0x158   :  { %680 = vmatpush1.bf16.msra.mxu0 %v3311_v14  ;;  %721 = vmatpush1.bf16.msra.mxu1 %v3313_v63  ;;  %v3335_v63 = vld [vmem:[#allocation3 + $0x120] sm:$0xff]  ;;  %v3341_v14 = vld [vmem:[#allocation3 + $0x178] sm:$0xff] }
 0x159   :  { %681 = vmatprep.subr.bf16.mxu0 %v3315_v0  ;;  %722 = vmatprep.subr.bf16.mxu1 %v3317_v11  ;;  %4988 = vst [vmem:[#allocation65_spill] sm:$0xff] %v3335_v63  ;;  %v3337_v0 = vld [vmem:[#allocation3 + $0x130] sm:$0xff]  ;;  %v3339_v11 = vld [vmem:[#allocation3 + $0x168] sm:$0xff]  ;;  %4991 = vst [vmem:[#allocation68_spill] sm:$0xff] %v3341_v14 }
 0x15a   :  { %4989 = vst [vmem:[#allocation66_spill] sm:$0xff] %v3337_v0  ;;  %4990 = vst [vmem:[#allocation67_spill] sm:$0xff] %v3339_v11 }
 0x15c   :  { %682 = vmatpush1.bf16.msra.mxu0 %v3323_v13  ;;  %723 = vmatpush1.bf16.msra.mxu1 %v3325_v12  ;;  %v3347_v12 = vld [vmem:[#allocation3 + $0x160] sm:$0xff]  ;;  %v3353_v13 = vld [vmem:[#allocation3 + $0x1b8] sm:$0xff] }
 0x15d   :  { %683 = vmatprep.subr.bf16.mxu0 %v3327_v10  ;;  %724 = vmatprep.subr.bf16.mxu1 %v3329_v7  ;;  %4992 = vst [vmem:[#allocation69_spill] sm:$0xff] %v3347_v12  ;;  %v3349_v10 = vld [vmem:[#allocation3 + $0x170] sm:$0xff]  ;;  %v3351_v7 = vld [vmem:[#allocation3 + $0x1a8] sm:$0xff]  ;;  %4995 = vst [vmem:[#allocation72_spill] sm:$0xff] %v3353_v13 }
 0x15e   :  { %4993 = vst [vmem:[#allocation70_spill] sm:$0xff] %v3349_v10  ;;  %4994 = vst [vmem:[#allocation71_spill] sm:$0xff] %v3351_v7 }
 0x160   :  { %684 = vmatpush1.bf16.msra.mxu0 %v3335_v63  ;;  %725 = vmatpush1.bf16.msra.mxu1 %v3337_v0  ;;  %v3359_v0 = vld [vmem:[#allocation3 + $0x1a0] sm:$0xff]  ;;  %v3365_v63 = vld [vmem:[#allocation3 + $0x1f8] sm:$0xff] }
 0x161   :  { %685 = vmatprep.subr.bf16.mxu0 %v3339_v11  ;;  %726 = vmatprep.subr.bf16.mxu1 %v3341_v14  ;;  %4996 = vst [vmem:[#allocation73_spill] sm:$0xff] %v3359_v0  ;;  %v3361_v11 = vld [vmem:[#allocation3 + $0x1b0] sm:$0xff]  ;;  %v3363_v14 = vld [vmem:[#allocation3 + $0x1e8] sm:$0xff]  ;;  %4999 = vst [vmem:[#allocation76_spill] sm:$0xff] %v3365_v63 }
 0x162   :  { %4997 = vst [vmem:[#allocation74_spill] sm:$0xff] %v3361_v11  ;;  %4998 = vst [vmem:[#allocation75_spill] sm:$0xff] %v3363_v14 }
 0x164   :  { %686 = vmatpush1.bf16.msra.mxu0 %v3347_v12  ;;  %727 = vmatpush1.bf16.msra.mxu1 %v3349_v10  ;;  %v3371_v10 = vld [vmem:[#allocation3 + $0x1e0] sm:$0xff]  ;;  %v3377_v12 = vld [vmem:[#allocation3 + $0x238] sm:$0xff] }
 0x165   :  { %687 = vmatprep.subr.bf16.mxu0 %v3351_v7  ;;  %728 = vmatprep.subr.bf16.mxu1 %v3353_v13  ;;  %5000 = vst [vmem:[#allocation77_spill] sm:$0xff] %v3371_v10  ;;  %v3373_v7 = vld [vmem:[#allocation3 + $0x1f0] sm:$0xff]  ;;  %v3375_v13 = vld [vmem:[#allocation3 + $0x228] sm:$0xff]  ;;  %5003 = vst [vmem:[#allocation80_spill] sm:$0xff] %v3377_v12 }
 0x166   :  { %5001 = vst [vmem:[#allocation78_spill] sm:$0xff] %v3373_v7  ;;  %5002 = vst [vmem:[#allocation79_spill] sm:$0xff] %v3375_v13 }
 0x168   :  { %688 = vmatpush1.bf16.msra.mxu0 %v3359_v0  ;;  %729 = vmatpush1.bf16.msra.mxu1 %v3361_v11  ;;  %v3383_v11 = vld [vmem:[#allocation3 + $0x220] sm:$0xff]  ;;  %v3389_v0 = vld [vmem:[#allocation3 + $0x278] sm:$0xff] }
 0x169   :  { %689 = vmatprep.subr.bf16.mxu0 %v3363_v14  ;;  %730 = vmatprep.subr.bf16.mxu1 %v3365_v63  ;;  %5004 = vst [vmem:[#allocation81_spill] sm:$0xff] %v3383_v11  ;;  %v3385_v14 = vld [vmem:[#allocation3 + $0x230] sm:$0xff]  ;;  %v3387_v63 = vld [vmem:[#allocation3 + $0x268] sm:$0xff]  ;;  %5007 = vst [vmem:[#allocation84_spill] sm:$0xff] %v3389_v0 }
 0x16a   :  { %5005 = vst [vmem:[#allocation82_spill] sm:$0xff] %v3385_v14  ;;  %5006 = vst [vmem:[#allocation83_spill] sm:$0xff] %v3387_v63 }
 0x16c   :  { %690 = vmatpush1.bf16.msra.mxu0 %v3371_v10  ;;  %731 = vmatpush1.bf16.msra.mxu1 %v3373_v7  ;;  %v3395_v7 = vld [vmem:[#allocation3 + $0x260] sm:$0xff]  ;;  %v3401_v10 = vld [vmem:[#allocation3 + $0x2b8] sm:$0xff] }
 0x16d   :  { %691 = vmatprep.subr.bf16.mxu0 %v3375_v13  ;;  %732 = vmatprep.subr.bf16.mxu1 %v3377_v12  ;;  %5008 = vst [vmem:[#allocation85_spill] sm:$0xff] %v3395_v7  ;;  %v3397_v13 = vld [vmem:[#allocation3 + $0x270] sm:$0xff]  ;;  %v3399_v12 = vld [vmem:[#allocation3 + $0x2a8] sm:$0xff]  ;;  %5011 = vst [vmem:[#allocation88_spill] sm:$0xff] %v3401_v10 }
 0x16e   :  { %5009 = vst [vmem:[#allocation86_spill] sm:$0xff] %v3397_v13  ;;  %5010 = vst [vmem:[#allocation87_spill] sm:$0xff] %v3399_v12 }
 0x170   :  { %692 = vmatpush1.bf16.msra.mxu0 %v3383_v11  ;;  %733 = vmatpush1.bf16.msra.mxu1 %v3385_v14  ;;  %v3407_v14 = vld [vmem:[#allocation3 + $0x2a0] sm:$0xff]  ;;  %v3413_v11 = vld [vmem:[#allocation3 + $0x2f8] sm:$0xff] }
 0x171   :  { %693 = vmatprep.subr.bf16.mxu0 %v3387_v63  ;;  %734 = vmatprep.subr.bf16.mxu1 %v3389_v0  ;;  %5012 = vst [vmem:[#allocation89_spill] sm:$0xff] %v3407_v14  ;;  %v3409_v63 = vld [vmem:[#allocation3 + $0x2b0] sm:$0xff]  ;;  %v3411_v0 = vld [vmem:[#allocation3 + $0x2e8] sm:$0xff]  ;;  %5015 = vst [vmem:[#allocation92_spill] sm:$0xff] %v3413_v11 }
 0x172   :  { %5013 = vst [vmem:[#allocation90_spill] sm:$0xff] %v3409_v63  ;;  %5014 = vst [vmem:[#allocation91_spill] sm:$0xff] %v3411_v0 }
 0x174   :  { %694 = vmatpush1.bf16.msra.mxu0 %v3395_v7  ;;  %735 = vmatpush1.bf16.msra.mxu1 %v3397_v13  ;;  %v3419_v13 = vld [vmem:[#allocation3 + $0x2e0] sm:$0xff]  ;;  %v3425_v7 = vld [vmem:[#allocation3 + $0x338] sm:$0xff] }
 0x175   :  { %695 = vmatprep.subr.bf16.mxu0 %v3399_v12  ;;  %736 = vmatprep.subr.bf16.mxu1 %v3401_v10  ;;  %5016 = vst [vmem:[#allocation93_spill] sm:$0xff] %v3419_v13  ;;  %v3421_v12 = vld [vmem:[#allocation3 + $0x2f0] sm:$0xff]  ;;  %v3423_v10 = vld [vmem:[#allocation3 + $0x328] sm:$0xff]  ;;  %5019 = vst [vmem:[#allocation96_spill] sm:$0xff] %v3425_v7 }
 0x176   :  { %5017 = vst [vmem:[#allocation94_spill] sm:$0xff] %v3421_v12  ;;  %5018 = vst [vmem:[#allocation95_spill] sm:$0xff] %v3423_v10 }
 0x178   :  { %696 = vmatpush1.bf16.msra.mxu0 %v3407_v14  ;;  %737 = vmatpush1.bf16.msra.mxu1 %v3409_v63  ;;  %v3431_v63 = vld [vmem:[#allocation3 + $0x320] sm:$0xff]  ;;  %v3437_v14 = vld [vmem:[#allocation3 + $0x378] sm:$0xff] }
 0x179   :  { %697 = vmatprep.subr.bf16.mxu0 %v3411_v0  ;;  %738 = vmatprep.subr.bf16.mxu1 %v3413_v11  ;;  %5020 = vst [vmem:[#allocation97_spill] sm:$0xff] %v3431_v63  ;;  %v3433_v0 = vld [vmem:[#allocation3 + $0x330] sm:$0xff]  ;;  %v3435_v11 = vld [vmem:[#allocation3 + $0x368] sm:$0xff]  ;;  %5023 = vst [vmem:[#allocation100_spill] sm:$0xff] %v3437_v14 }
 0x17a   :  { %5021 = vst [vmem:[#allocation98_spill] sm:$0xff] %v3433_v0  ;;  %5022 = vst [vmem:[#allocation99_spill] sm:$0xff] %v3435_v11 }
 0x17c   :  { %698 = vmatpush1.bf16.msra.mxu0 %v3419_v13  ;;  %739 = vmatpush1.bf16.msra.mxu1 %v3421_v12  ;;  %v3443_v12 = vld [vmem:[#allocation3 + $0x360] sm:$0xff]  ;;  %v3449_v13 = vld [vmem:[#allocation3 + $0x3b8] sm:$0xff] }
 0x17d   :  { %699 = vmatprep.subr.bf16.mxu0 %v3423_v10  ;;  %740 = vmatprep.subr.bf16.mxu1 %v3425_v7  ;;  %v3445_v10 = vld [vmem:[#allocation3 + $0x370] sm:$0xff]  ;;  %v3447_v7 = vld [vmem:[#allocation3 + $0x3a8] sm:$0xff] }
 0x17e   :  { %5024 = vst [vmem:[#allocation101_spill] sm:$0xff] %v3445_v10  ;;  %5025 = vst [vmem:[#allocation102_spill] sm:$0xff] %v3447_v7 }
 0x180   :  { %700 = vmatpush1.bf16.msra.mxu0 %v3431_v63  ;;  %741 = vmatpush1.bf16.msra.mxu1 %v3433_v0  ;;  %v3455_v0 = vld [vmem:[#allocation3 + $0x3a0] sm:$0xff]  ;;  %v3461_v63 = vld [vmem:[#allocation3 + $0x3f8] sm:$0xff] }
 0x181   :  { %701 = vmatprep.subr.bf16.mxu0 %v3435_v11  ;;  %742 = vmatprep.subr.bf16.mxu1 %v3437_v14  ;;  %v3457_v11 = vld [vmem:[#allocation3 + $0x3b0] sm:$0xff]  ;;  %v3459_v14 = vld [vmem:[#allocation3 + $0x3e8] sm:$0xff] }
 0x184   :  { %702 = vmatpush1.bf16.msra.mxu0 %v3443_v12  ;;  %743 = vmatpush1.bf16.msra.mxu1 %v3445_v10  ;;  %v3467_v10 = vld [vmem:[#allocation3 + $0x3e0] sm:$0xff] }
 0x185   :  { %703 = vmatprep.subr.bf16.mxu0 %v3447_v7  ;;  %744 = vmatprep.subr.bf16.mxu1 %v3449_v13  ;;  %v3469_v7 = vld [vmem:[#allocation3 + $0x3f0] sm:$0xff] }
 0x188   :  { %704 = vmatpush1.bf16.msra.mxu0 %v3455_v0  ;;  %745 = vmatpush1.bf16.msra.mxu1 %v3457_v11 }
 0x189   :  { %705 = vmatprep.subr.bf16.mxu0 %v3459_v14  ;;  %746 = vmatprep.subr.bf16.mxu1 %v3461_v63 }
 0x18c   :  { %706 = vmatpush1.bf16.msra.mxu0 %v3467_v10  ;;  %747 = vmatpush1.bf16.msra.mxu1 %v3469_v7 }
 0x18d   :  { %870 = vmatprep.subr.bf16.mxu0 %v3081_v15  ;;  %911 = vmatprep.subr.bf16.mxu1 %v3083_v16 }
 0x18f   :  { %708 = vmatmul.mubr.bf16.vlgmr.msra.gmra.mrb[4].mxu0 %v3277_v6  ;;  %749 = vmatmul.mubr.bf16.vlgmr.msra.gmra.mrb[12].mxu1 %v3277_v6  ;;  %v5026_v6 = vld [vmem:[#allocation37_spill] sm:$0xff] }
 0x190   :  { %871 = vmatpush1.bf16.msra.mxu0 %v3085_v17  ;;  %912 = vmatpush1.bf16.msra.mxu1 %v3089_v18 }
 0x191   :  { %872 = vmatprep.subr.bf16.mxu0 %v3091_v19  ;;  %913 = vmatprep.subr.bf16.mxu1 %v3093_v20 }
 0x194   :  { %873 = vmatpush1.bf16.msra.mxu0 %v3099_v21  ;;  %914 = vmatpush1.bf16.msra.mxu1 %v3101_v22 }
 0x195   :  { %874 = vmatprep.subr.bf16.mxu0 %v3103_v23  ;;  %915 = vmatprep.subr.bf16.mxu1 %v3105_v24 }
 0x198   :  { %875 = vmatpush1.bf16.msra.mxu0 %v3111_v25  ;;  %916 = vmatpush1.bf16.msra.mxu1 %v3113_v26 }
 0x199   :  { %876 = vmatprep.subr.bf16.mxu0 %v3115_v27  ;;  %917 = vmatprep.subr.bf16.mxu1 %v3117_v28 }
 0x19c   :  { %877 = vmatpush1.bf16.msra.mxu0 %v3123_v29  ;;  %918 = vmatpush1.bf16.msra.mxu1 %v3125_v30 }
 0x19d   :  { %878 = vmatprep.subr.bf16.mxu0 %v3127_v31  ;;  %919 = vmatprep.subr.bf16.mxu1 %v3129_v32 }
 0x1a0   :  { %879 = vmatpush1.bf16.msra.mxu0 %v3135_v33  ;;  %920 = vmatpush1.bf16.msra.mxu1 %v3137_v34 }
 0x1a1   :  { %880 = vmatprep.subr.bf16.mxu0 %v3139_v35  ;;  %921 = vmatprep.subr.bf16.mxu1 %v3141_v36 }
 0x1a4   :  { %881 = vmatpush1.bf16.msra.mxu0 %v3147_v37  ;;  %922 = vmatpush1.bf16.msra.mxu1 %v3149_v38 }
 0x1a5   :  { %882 = vmatprep.subr.bf16.mxu0 %v3151_v39  ;;  %923 = vmatprep.subr.bf16.mxu1 %v3153_v40 }
 0x1a8   :  { %883 = vmatpush1.bf16.msra.mxu0 %v3159_v41  ;;  %924 = vmatpush1.bf16.msra.mxu1 %v3161_v42 }
 0x1a9   :  { %884 = vmatprep.subr.bf16.mxu0 %v3163_v43  ;;  %925 = vmatprep.subr.bf16.mxu1 %v3165_v44 }
 0x1ac   :  { %885 = vmatpush1.bf16.msra.mxu0 %v3171_v45  ;;  %926 = vmatpush1.bf16.msra.mxu1 %v3173_v46 }
 0x1ad   :  { %886 = vmatprep.subr.bf16.mxu0 %v3175_v47  ;;  %927 = vmatprep.subr.bf16.mxu1 %v3177_v48 }
 0x1b0   :  { %887 = vmatpush1.bf16.msra.mxu0 %v3183_v49  ;;  %928 = vmatpush1.bf16.msra.mxu1 %v3185_v50 }
 0x1b1   :  { %888 = vmatprep.subr.bf16.mxu0 %v3187_v51  ;;  %929 = vmatprep.subr.bf16.mxu1 %v3189_v52 }
 0x1b4   :  { %889 = vmatpush1.bf16.msra.mxu0 %v3195_v53  ;;  %930 = vmatpush1.bf16.msra.mxu1 %v3197_v54 }
 0x1b5   :  { %890 = vmatprep.subr.bf16.mxu0 %v3199_v55  ;;  %931 = vmatprep.subr.bf16.mxu1 %v3201_v56 }
 0x1b8   :  { %891 = vmatpush1.bf16.msra.mxu0 %v3207_v57  ;;  %932 = vmatpush1.bf16.msra.mxu1 %v3209_v58  ;;  %v5027_v58 = vld [vmem:[#allocation38_spill] sm:$0xff] }
 0x1b9   :  { %892 = vmatprep.subr.bf16.mxu0 %v3211_v59  ;;  %933 = vmatprep.subr.bf16.mxu1 %v3213_v60  ;;  %v5028_v59 = vld [vmem:[#allocation39_spill] sm:$0xff]  ;;  %v5029_v60 = vld [vmem:[#allocation40_spill] sm:$0xff] }
 0x1bc   :  { %893 = vmatpush1.bf16.msra.mxu0 %v3219_v61  ;;  %934 = vmatpush1.bf16.msra.mxu1 %v3221_v62  ;;  %v5030_v61 = vld [vmem:[#allocation41_spill] sm:$0xff]  ;;  %v5031_v62 = vld [vmem:[#allocation42_spill] sm:$0xff] }
 0x1bd   :  { %894 = vmatprep.subr.bf16.mxu0 %v3223_v1  ;;  %935 = vmatprep.subr.bf16.mxu1 %v3225_v2  ;;  %v5032_v1 = vld [vmem:[#allocation43_spill] sm:$0xff]  ;;  %v5033_v2 = vld [vmem:[#allocation44_spill] sm:$0xff] }
 0x1c0   :  { %895 = vmatpush1.bf16.msra.mxu0 %v3231_v3  ;;  %936 = vmatpush1.bf16.msra.mxu1 %v3233_v4  ;;  %v5034_v3 = vld [vmem:[#allocation45_spill] sm:$0xff] }
 0x1c1   :  { %896 = vmatprep.subr.bf16.mxu0 %v3235_v5  ;;  %937 = vmatprep.subr.bf16.mxu1 %v5026_v6  ;;  %v5035_v5 = vld [vmem:[#allocation47_spill] sm:$0xff]  ;;  %v5036_v6 = vld [vmem:[#allocation48_spill] sm:$0xff] }
 0x1c4   :  { %897 = vmatpush1.bf16.msra.mxu0 %v5027_v58  ;;  %938 = vmatpush1.bf16.msra.mxu1 %v5028_v59  ;;  %v5037_v58 = vld [vmem:[#allocation49_spill] sm:$0xff]  ;;  %v2983_v59 = vmov 1966171168  }
 0x1c5   :  { %898 = vmatprep.subr.bf16.mxu0 %v5029_v60  ;;  %939 = vmatprep.subr.bf16.mxu1 %v5030_v61  ;;  %v770_v60 = vunpack.c.l.s4 %v2983_v59 }
 0x1c7   :  { %v771_v4 = vunpack.c.0.s8 %v770_v60 }
 0x1c8   :  { %899 = vmatpush1.bf16.msra.mxu0 %v5031_v62  ;;  %940 = vmatpush1.bf16.msra.mxu1 %v5032_v1  ;;  %v5038_v62 = vld [vmem:[#allocation11_spill] sm:$0xff] }
 0x1c9   :  { %900 = vmatprep.subr.bf16.mxu0 %v5033_v2  ;;  %941 = vmatprep.subr.bf16.mxu1 %v5034_v3  ;;  %v3542_v56 = vsub.s32 %v771_v4, %v5038_v62 }
 0x1cc   :  { %901 = vmatpush1.bf16.msra.mxu0 %v3267_v8  ;;  %942 = vmatpush1.bf16.msra.mxu1 %v5035_v5 }
 0x1cd   :  { %952 = vmatprep.subr.bf16.mxu0 %v5036_v6  ;;  %993 = vmatprep.subr.bf16.mxu1 %v5037_v58 }
 0x222   :  { %v627_v61 = vpop.f32.mrb[0].mxu0  ;;  %v668_v57 = vpop.f32.mrb[8].mxu1 }
 0x223   :  { %v629_v1 = vpop.f32.mrb[1].mxu0  ;;  %v670_v2 = vpop.f32.mrb[9].mxu1 }
 0x224   :  { %v765_v55 = vcombine.low %v627_v61, %v629_v1  ;;  %v766_v3 = vcombine.low %v668_v57, %v670_v2  ;;  %v631_v54 = vpop.f32.mrb[2].mxu0  ;;  %v672_v8 = vpop.f32.mrb[10].mxu1  ;;  %v588_v57 = vld [vmem:[#allocation2 + $0x1] ss:$8 sm:$0xf] }
 0x225   :  { %v632_v53 = vpop.f32.mrb[3].mxu0  ;;  %v673_v5 = vpop.f32.mrb[11].mxu1  ;;  %v589_v1 = vld [vmem:[#allocation2 + $0x1] ss:$8 sm:$0xf0] }
 0x226   :  { %v775_v6 = vrot.slane %v765_v55, %v3542_v56  ;;  %v782_v58 = vrot.slane %v766_v3, %v3542_v56 }
 0x228   :  { %v797_v52 = vcombine.low %v775_v6, %v782_v58  ;;  %v590_v58 = vor.u32 %v589_v1, %v588_v57 }
 0x22a   :  { %v805_v2 = vrot.slane %v797_v52, %v3542_v56 }
 0x262   :  { %v709_v59 = vpop.f32.mrb[4].mxu0  ;;  %v750_v60 = vpop.f32.mrb[12].mxu1 }
 0x263   :  { %v711_v51 = vpop.f32.mrb[5].mxu0  ;;  %v752_v50 = vpop.f32.mrb[13].mxu1 }
 0x264   :  { %v767_v49 = vcombine.low %v709_v59, %v711_v51  ;;  %v768_v62 = vcombine.low %v750_v60, %v752_v50  ;;  %v713_v4 = vpop.f32.mrb[6].mxu0  ;;  %v754_v48 = vpop.f32.mrb[14].mxu1  ;;  %v5039_v50 = vld [vmem:[#allocation15_spill] sm:$0xff]  ;;  %v5040_v51 = vld [vmem:[#allocation14_spill] sm:$0xff] }
 0x265   :  { %v714_v47 = vpop.f32.mrb[7].mxu0  ;;  %v755_v61 = vpop.f32.mrb[15].mxu1  ;;  %v830_v48 = vcombine.low %v5040_v51, %v5039_v50  ;;  %v5042_v50 = vld [vmem:[#allocation12_spill] sm:$0xff] }
 0x266   :  { %v789_v54 = vrot.slane %v767_v49, %v3542_v56  ;;  %v796_v53 = vrot.slane %v768_v62, %v3542_v56 }
 0x267   :  { %v837_v47 = vrot.slane %v830_v48, %v3542_v56 }
 0x268   :  { %v798_v55 = vcombine.low %v789_v54, %v796_v53 }
 0x269   :  { %v844_v4 = vrot.slane %v837_v47, %v3542_v56  ;;  %v5043_v47 = vld [vmem:[#allocation50_spill] sm:$0xff] }
 0x26a   :  { %v812_v3 = vrot.slane %v798_v55, %v3542_v56 }
 0x26c   :  { %v813_v5 = vcombine.low %v805_v2, %v812_v3 }
 0x26e   :  { %v815_v8 = vadd.f32 %v813_v5, %v590_v58  ;;  %v5041_v5 = vld [vmem:[#allocation13_spill] sm:$0xff] }
 0x270   :  { %2662 = vtanh.f32 %v815_v8 }
 0x27a   :  { %v2663_v6 = vpop.eup %2662 }
 0x27b   :  { %v817_v49 = vmul.f32 0.5, %v2663_v6  ;;  %v820_v59 = vrot.slane %v2663_v6, 2  ;;  %v847_v52 = vrot.slane %v2663_v6, 4  ;;  %v824_v1 = vrot.slane %v2663_v6, 6  ;;  %v5044_v6 = vld [vmem:[#allocation51_spill] sm:$0xff] }
 0x27d   :  { %v818_v60 = vadd.f32 0.5, %v817_v49  ;;  %v822_v62 = vmul.f32 0.5, %v820_v59  ;;  %v826_v55 = vmul.f32 0.5, %v824_v1  ;;  %v5045_v59 = vld [vmem:[#allocation52_spill] sm:$0xff] }
 0x27e   :  { %v5053_v1 = vld [vmem:[#allocation60_spill] sm:$0xff] }
 0x27f   :  { %v823_v61 = vadd.f32 0.5, %v822_v62  ;;  %v849_v53 = vmul.f32 %v847_v52, %v818_v60  ;;  %v827_v2 = vadd.f32 0.5, %v826_v55  ;;  %v5046_v60 = vld [vmem:[#allocation53_spill] sm:$0xff]  ;;  %v5047_v62 = vld [vmem:[#allocation54_spill] sm:$0xff] }
 0x280   :  { %v5050_v52 = vld [vmem:[#allocation57_spill] sm:$0xff] }
 0x281   :  { %v846_v54 = vmul.f32 %v844_v4, %v823_v61  ;;  %v5048_v4 = vld [vmem:[#allocation55_spill] sm:$0xff]  ;;  %v5049_v61 = vld [vmem:[#allocation56_spill] sm:$0xff]  ;;  %v5054_v55 = vld [vmem:[#allocation61_spill] sm:$0xff] }
 0x283   :  { %v3554_v57 = vadd.f32 %v849_v53, %v846_v54  ;;  %v5051_v54 = vld [vmem:[#allocation58_spill] sm:$0xff]  ;;  %v5052_v53 = vld [vmem:[#allocation59_spill] sm:$0xff] }
 0x285   :  { %2664 = vtanh.f32 %v3554_v57 }
 0x28f   :  { %v2665_v58 = vpop.eup %2664 }
 0x290   :  { %v852_v3 = vmul.f32 %v2665_v58, %v827_v2  ;;  %v5055_v2 = vld [vmem:[#allocation62_spill] sm:$0xff]  ;;  %v5056_v58 = vld [vmem:[#allocation63_spill] sm:$0xff] }
 0x292   :  { %v865_v8 = vrot.slane %v852_v3, %v5041_v5  ;;  %v861_v51 = vrot.slane %v852_v3, %v5042_v50  ;;  %v5057_v3 = vld [vmem:[#allocation64_spill] sm:$0xff] }
 0x294   :  { %v869_v48 = vpack.c.bf16 %v865_v8, %v865_v8  ;;  %v3559_v49 = vpack.c.bf16 %v861_v51, %v861_v51  ;;  %v5058_v8 = vld [vmem:[#allocation65_spill] sm:$0xff]  ;;  %v5059_v51 = vld [vmem:[#allocation66_spill] sm:$0xff] }
 0x296   :  { %902 = vmatprep.mubr.bf16.mxu0 %v869_v48  ;;  %943 = vmatprep.mubr.bf16.mxu1 %v869_v48 }
 0x297   :  { %903 = vmatmul.mubr.bf16.vlgmr.msra.gmra.mrb[8].mxu0 %v3559_v49  ;;  %944 = vmatmul.mubr.bf16.vlgmr.msra.gmra.mrb[16].mxu1 %v3559_v49 }
 0x298   :  { %953 = vmatpush1.bf16.msra.mxu0 %v5043_v47  ;;  %994 = vmatpush1.bf16.msra.mxu1 %v5044_v6 }
 0x299   :  { %984 = vmatprep.mubr.bf16.mxu0 %v869_v48  ;;  %1025 = vmatprep.mubr.bf16.mxu1 %v869_v48  ;;  %v5060_v48 = vld [vmem:[#allocation67_spill] sm:$0xff] }
 0x29a   :  { %954 = vmatprep.subr.bf16.mxu0 %v5045_v59  ;;  %995 = vmatprep.subr.bf16.mxu1 %v5046_v60 }
 0x29c   :  { %955 = vmatpush1.bf16.msra.mxu0 %v3297_v9  ;;  %996 = vmatpush1.bf16.msra.mxu1 %v5047_v62 }
 0x29d   :  { %956 = vmatprep.subr.bf16.mxu0 %v5048_v4  ;;  %997 = vmatprep.subr.bf16.mxu1 %v5049_v61 }
 0x2a0   :  { %957 = vmatpush1.bf16.msra.mxu0 %v5050_v52  ;;  %998 = vmatpush1.bf16.msra.mxu1 %v5051_v54  ;;  %v5061_v52 = vld [vmem:[#allocation68_spill] sm:$0xff]  ;;  %v5062_v54 = vld [vmem:[#allocation69_spill] sm:$0xff] }
 0x2a1   :  { %958 = vmatprep.subr.bf16.mxu0 %v5052_v53  ;;  %999 = vmatprep.subr.bf16.mxu1 %v5053_v1  ;;  %v5063_v53 = vld [vmem:[#allocation70_spill] sm:$0xff]  ;;  %v5064_v1 = vld [vmem:[#allocation71_spill] sm:$0xff] }
 0x2a4   :  { %959 = vmatpush1.bf16.msra.mxu0 %v5054_v55  ;;  %1000 = vmatpush1.bf16.msra.mxu1 %v5055_v2  ;;  %v5065_v55 = vld [vmem:[#allocation72_spill] sm:$0xff]  ;;  %v5066_v2 = vld [vmem:[#allocation73_spill] sm:$0xff] }
 0x2a5   :  { %960 = vmatprep.subr.bf16.mxu0 %v5056_v58  ;;  %1001 = vmatprep.subr.bf16.mxu1 %v5057_v3  ;;  %v5067_v58 = vld [vmem:[#allocation74_spill] sm:$0xff]  ;;  %v5068_v3 = vld [vmem:[#allocation75_spill] sm:$0xff] }
 0x2a8   :  { %961 = vmatpush1.bf16.msra.mxu0 %v5058_v8  ;;  %1002 = vmatpush1.bf16.msra.mxu1 %v5059_v51  ;;  %v5069_v8 = vld [vmem:[#allocation76_spill] sm:$0xff]  ;;  %v5070_v51 = vld [vmem:[#allocation77_spill] sm:$0xff] }
 0x2a9   :  { %962 = vmatprep.subr.bf16.mxu0 %v5060_v48  ;;  %1003 = vmatprep.subr.bf16.mxu1 %v5061_v52  ;;  %v5071_v48 = vld [vmem:[#allocation78_spill] sm:$0xff]  ;;  %v5072_v52 = vld [vmem:[#allocation79_spill] sm:$0xff] }
 0x2ac   :  { %963 = vmatpush1.bf16.msra.mxu0 %v5062_v54  ;;  %1004 = vmatpush1.bf16.msra.mxu1 %v5063_v53  ;;  %v5073_v54 = vld [vmem:[#allocation80_spill] sm:$0xff]  ;;  %v5074_v53 = vld [vmem:[#allocation81_spill] sm:$0xff] }
 0x2ad   :  { %964 = vmatprep.subr.bf16.mxu0 %v5064_v1  ;;  %1005 = vmatprep.subr.bf16.mxu1 %v5065_v55  ;;  %v5075_v1 = vld [vmem:[#allocation82_spill] sm:$0xff]  ;;  %v5076_v55 = vld [vmem:[#allocation83_spill] sm:$0xff] }
 0x2b0   :  { %965 = vmatpush1.bf16.msra.mxu0 %v5066_v2  ;;  %1006 = vmatpush1.bf16.msra.mxu1 %v5067_v58  ;;  %v5077_v2 = vld [vmem:[#allocation84_spill] sm:$0xff]  ;;  %v5078_v58 = vld [vmem:[#allocation85_spill] sm:$0xff] }
 0x2b1   :  { %966 = vmatprep.subr.bf16.mxu0 %v5068_v3  ;;  %1007 = vmatprep.subr.bf16.mxu1 %v5069_v8  ;;  %v5079_v3 = vld [vmem:[#allocation86_spill] sm:$0xff]  ;;  %v5080_v8 = vld [vmem:[#allocation87_spill] sm:$0xff] }
 0x2b4   :  { %967 = vmatpush1.bf16.msra.mxu0 %v5070_v51  ;;  %1008 = vmatpush1.bf16.msra.mxu1 %v5071_v48  ;;  %v5081_v51 = vld [vmem:[#allocation88_spill] sm:$0xff]  ;;  %v5082_v48 = vld [vmem:[#allocation89_spill] sm:$0xff] }
 0x2b5   :  { %968 = vmatprep.subr.bf16.mxu0 %v5072_v52  ;;  %1009 = vmatprep.subr.bf16.mxu1 %v5073_v54  ;;  %v5083_v52 = vld [vmem:[#allocation90_spill] sm:$0xff]  ;;  %v5084_v54 = vld [vmem:[#allocation91_spill] sm:$0xff] }
 0x2b8   :  { %969 = vmatpush1.bf16.msra.mxu0 %v5074_v53  ;;  %1010 = vmatpush1.bf16.msra.mxu1 %v5075_v1  ;;  %v5085_v53 = vld [vmem:[#allocation92_spill] sm:$0xff]  ;;  %v5086_v1 = vld [vmem:[#allocation93_spill] sm:$0xff] }
 0x2b9   :  { %970 = vmatprep.subr.bf16.mxu0 %v5076_v55  ;;  %1011 = vmatprep.subr.bf16.mxu1 %v5077_v2  ;;  %v5087_v55 = vld [vmem:[#allocation94_spill] sm:$0xff]  ;;  %v5088_v2 = vld [vmem:[#allocation95_spill] sm:$0xff] }
 0x2bc   :  { %971 = vmatpush1.bf16.msra.mxu0 %v5078_v58  ;;  %1012 = vmatpush1.bf16.msra.mxu1 %v5079_v3  ;;  %v5089_v58 = vld [vmem:[#allocation96_spill] sm:$0xff]  ;;  %v5090_v3 = vld [vmem:[#allocation97_spill] sm:$0xff] }
 0x2bd   :  { %972 = vmatprep.subr.bf16.mxu0 %v5080_v8  ;;  %1013 = vmatprep.subr.bf16.mxu1 %v5081_v51  ;;  %v5091_v8 = vld [vmem:[#allocation98_spill] sm:$0xff]  ;;  %v5092_v51 = vld [vmem:[#allocation99_spill] sm:$0xff] }
 0x2c0   :  { %973 = vmatpush1.bf16.msra.mxu0 %v5082_v48  ;;  %1014 = vmatpush1.bf16.msra.mxu1 %v5083_v52  ;;  %v5093_v48 = vld [vmem:[#allocation100_spill] sm:$0xff] }
 0x2c1   :  { %974 = vmatprep.subr.bf16.mxu0 %v5084_v54  ;;  %1015 = vmatprep.subr.bf16.mxu1 %v5085_v53  ;;  %v5094_v54 = vld [vmem:[#allocation101_spill] sm:$0xff]  ;;  %v5095_v53 = vld [vmem:[#allocation102_spill] sm:$0xff] }
 0x2c4   :  { %975 = vmatpush1.bf16.msra.mxu0 %v5086_v1  ;;  %1016 = vmatpush1.bf16.msra.mxu1 %v5087_v55 }
 0x2c5   :  { %976 = vmatprep.subr.bf16.mxu0 %v5088_v2  ;;  %1017 = vmatprep.subr.bf16.mxu1 %v5089_v58 }
 0x2c8   :  { %977 = vmatpush1.bf16.msra.mxu0 %v5090_v3  ;;  %1018 = vmatpush1.bf16.msra.mxu1 %v5091_v8 }
 0x2c9   :  { %978 = vmatprep.subr.bf16.mxu0 %v5092_v51  ;;  %1019 = vmatprep.subr.bf16.mxu1 %v5093_v48 }
 0x2cc   :  { %979 = vmatpush1.bf16.msra.mxu0 %v3443_v12  ;;  %1020 = vmatpush1.bf16.msra.mxu1 %v5094_v54 }
 0x2cd   :  { %980 = vmatprep.subr.bf16.mxu0 %v5095_v53  ;;  %1021 = vmatprep.subr.bf16.mxu1 %v3449_v13 }
 0x2d0   :  { %981 = vmatpush1.bf16.msra.mxu0 %v3455_v0  ;;  %1022 = vmatpush1.bf16.msra.mxu1 %v3457_v11 }
 0x2d1   :  { %982 = vmatprep.subr.bf16.mxu0 %v3459_v14  ;;  %1023 = vmatprep.subr.bf16.mxu1 %v3461_v63 }
 0x2d4   :  { %983 = vmatpush1.bf16.msra.mxu0 %v3467_v10  ;;  %1024 = vmatpush1.bf16.msra.mxu1 %v3469_v7 }
 0x2d5   :  { %1129 = vmatprep.subr.bf16.mxu0 %v3081_v15  ;;  %1170 = vmatprep.subr.bf16.mxu1 %v3083_v16  ;;  %v5096_v15 = vld [vmem:[#allocation16_spill] sm:$0xff]  ;;  %v5097_v16 = vld [vmem:[#allocation17_spill] sm:$0xff] }
 0x2d7   :  { %985 = vmatmul.mubr.bf16.vlgmr.msra.gmra.mrb[12].mxu0 %v3559_v49  ;;  %1026 = vmatmul.mubr.bf16.vlgmr.msra.gmra.mrb[20].mxu1 %v3559_v49  ;;  %v5128_v49 = vld [vmem:[#allocation48_spill] sm:$0xff] }
 0x2d8   :  { %1130 = vmatpush1.bf16.msra.mxu0 %v3085_v17  ;;  %1171 = vmatpush1.bf16.msra.mxu1 %v3089_v18  ;;  %v5098_v17 = vld [vmem:[#allocation18_spill] sm:$0xff]  ;;  %v5099_v18 = vld [vmem:[#allocation19_spill] sm:$0xff] }
 0x2d9   :  { %1131 = vmatprep.subr.bf16.mxu0 %v3091_v19  ;;  %1172 = vmatprep.subr.bf16.mxu1 %v3093_v20  ;;  %v5100_v19 = vld [vmem:[#allocation20_spill] sm:$0xff]  ;;  %v5101_v20 = vld [vmem:[#allocation21_spill] sm:$0xff] }
 0x2dc   :  { %1132 = vmatpush1.bf16.msra.mxu0 %v3099_v21  ;;  %1173 = vmatpush1.bf16.msra.mxu1 %v3101_v22  ;;  %v5102_v21 = vld [vmem:[#allocation22_spill] sm:$0xff]  ;;  %v5103_v22 = vld [vmem:[#allocation23_spill] sm:$0xff] }
 0x2dd   :  { %1133 = vmatprep.subr.bf16.mxu0 %v3103_v23  ;;  %1174 = vmatprep.subr.bf16.mxu1 %v3105_v24  ;;  %v5104_v23 = vld [vmem:[#allocation24_spill] sm:$0xff]  ;;  %v5105_v24 = vld [vmem:[#allocation25_spill] sm:$0xff] }
 0x2e0   :  { %1134 = vmatpush1.bf16.msra.mxu0 %v3111_v25  ;;  %1175 = vmatpush1.bf16.msra.mxu1 %v3113_v26  ;;  %v5106_v25 = vld [vmem:[#allocation26_spill] sm:$0xff]  ;;  %v5107_v26 = vld [vmem:[#allocation27_spill] sm:$0xff] }
 0x2e1   :  { %1135 = vmatprep.subr.bf16.mxu0 %v3115_v27  ;;  %1176 = vmatprep.subr.bf16.mxu1 %v3117_v28  ;;  %v5108_v27 = vld [vmem:[#allocation28_spill] sm:$0xff]  ;;  %v5109_v28 = vld [vmem:[#allocation29_spill] sm:$0xff] }
 0x2e4   :  { %1136 = vmatpush1.bf16.msra.mxu0 %v3123_v29  ;;  %1177 = vmatpush1.bf16.msra.mxu1 %v3125_v30  ;;  %v5110_v29 = vld [vmem:[#allocation30_spill] sm:$0xff]  ;;  %v5111_v30 = vld [vmem:[#allocation31_spill] sm:$0xff] }
 0x2e5   :  { %1137 = vmatprep.subr.bf16.mxu0 %v3127_v31  ;;  %1178 = vmatprep.subr.bf16.mxu1 %v3129_v32  ;;  %v5112_v31 = vld [vmem:[#allocation32_spill] sm:$0xff]  ;;  %v5113_v32 = vld [vmem:[#allocation33_spill] sm:$0xff] }
 0x2e8   :  { %1138 = vmatpush1.bf16.msra.mxu0 %v3135_v33  ;;  %1179 = vmatpush1.bf16.msra.mxu1 %v3137_v34  ;;  %v5114_v33 = vld [vmem:[#allocation34_spill] sm:$0xff]  ;;  %v5115_v34 = vld [vmem:[#allocation35_spill] sm:$0xff] }
 0x2e9   :  { %1139 = vmatprep.subr.bf16.mxu0 %v3139_v35  ;;  %1180 = vmatprep.subr.bf16.mxu1 %v3141_v36  ;;  %v5116_v35 = vld [vmem:[#allocation36_spill] sm:$0xff]  ;;  %v5117_v36 = vld [vmem:[#allocation37_spill] sm:$0xff] }
 0x2ec   :  { %1140 = vmatpush1.bf16.msra.mxu0 %v3147_v37  ;;  %1181 = vmatpush1.bf16.msra.mxu1 %v3149_v38  ;;  %v5118_v37 = vld [vmem:[#allocation38_spill] sm:$0xff]  ;;  %v5119_v38 = vld [vmem:[#allocation39_spill] sm:$0xff] }
 0x2ed   :  { %1141 = vmatprep.subr.bf16.mxu0 %v3151_v39  ;;  %1182 = vmatprep.subr.bf16.mxu1 %v3153_v40  ;;  %v5120_v39 = vld [vmem:[#allocation40_spill] sm:$0xff]  ;;  %v5121_v40 = vld [vmem:[#allocation41_spill] sm:$0xff] }
 0x2f0   :  { %1142 = vmatpush1.bf16.msra.mxu0 %v3159_v41  ;;  %1183 = vmatpush1.bf16.msra.mxu1 %v3161_v42  ;;  %v5122_v41 = vld [vmem:[#allocation42_spill] sm:$0xff]  ;;  %v5123_v42 = vld [vmem:[#allocation43_spill] sm:$0xff] }
 0x2f1   :  { %1143 = vmatprep.subr.bf16.mxu0 %v3163_v43  ;;  %1184 = vmatprep.subr.bf16.mxu1 %v3165_v44  ;;  %v5124_v43 = vld [vmem:[#allocation44_spill] sm:$0xff]  ;;  %v5125_v44 = vld [vmem:[#allocation45_spill] sm:$0xff] }
 0x2f4   :  { %1144 = vmatpush1.bf16.msra.mxu0 %v3171_v45  ;;  %1185 = vmatpush1.bf16.msra.mxu1 %v3173_v46  ;;  %v5126_v45 = vld [vmem:[#allocation46_spill] sm:$0xff]  ;;  %v5127_v46 = vld [vmem:[#allocation47_spill] sm:$0xff] }
 0x2f5   :  { %1145 = vmatprep.subr.bf16.mxu0 %v5096_v15  ;;  %1186 = vmatprep.subr.bf16.mxu1 %v5097_v16  ;;  %v5129_v15 = vld [vmem:[#allocation49_spill] sm:$0xff] }
 0x2f8   :  { %1146 = vmatpush1.bf16.msra.mxu0 %v5098_v17  ;;  %1187 = vmatpush1.bf16.msra.mxu1 %v5099_v18 }
 0x2f9   :  { %1147 = vmatprep.subr.bf16.mxu0 %v5100_v19  ;;  %1188 = vmatprep.subr.bf16.mxu1 %v5101_v20 }
 0x2fc   :  { %1148 = vmatpush1.bf16.msra.mxu0 %v5102_v21  ;;  %1189 = vmatpush1.bf16.msra.mxu1 %v5103_v22 }
 0x2fd   :  { %1149 = vmatprep.subr.bf16.mxu0 %v5104_v23  ;;  %1190 = vmatprep.subr.bf16.mxu1 %v5105_v24 }
 0x300   :  { %1150 = vmatpush1.bf16.msra.mxu0 %v5106_v25  ;;  %1191 = vmatpush1.bf16.msra.mxu1 %v5107_v26 }
 0x301   :  { %1151 = vmatprep.subr.bf16.mxu0 %v5108_v27  ;;  %1192 = vmatprep.subr.bf16.mxu1 %v5109_v28 }
 0x304   :  { %1152 = vmatpush1.bf16.msra.mxu0 %v5110_v29  ;;  %1193 = vmatpush1.bf16.msra.mxu1 %v5111_v30 }
 0x305   :  { %1153 = vmatprep.subr.bf16.mxu0 %v5112_v31  ;;  %1194 = vmatprep.subr.bf16.mxu1 %v5113_v32 }
 0x308   :  { %1154 = vmatpush1.bf16.msra.mxu0 %v5114_v33  ;;  %1195 = vmatpush1.bf16.msra.mxu1 %v5115_v34 }
 0x309   :  { %1155 = vmatprep.subr.bf16.mxu0 %v5116_v35  ;;  %1196 = vmatprep.subr.bf16.mxu1 %v5117_v36 }
 0x30c   :  { %1156 = vmatpush1.bf16.msra.mxu0 %v5118_v37  ;;  %1197 = vmatpush1.bf16.msra.mxu1 %v5119_v38 }
 0x30d   :  { %1157 = vmatprep.subr.bf16.mxu0 %v5120_v39  ;;  %1198 = vmatprep.subr.bf16.mxu1 %v5121_v40 }
 0x310   :  { %1158 = vmatpush1.bf16.msra.mxu0 %v5122_v41  ;;  %1199 = vmatpush1.bf16.msra.mxu1 %v5123_v42  ;;  %v854_v41 = vld [vmem:[#allocation2 + $0x2] ss:$8 sm:$0xf] }
 0x311   :  { %1159 = vmatprep.subr.bf16.mxu0 %v5124_v43  ;;  %1200 = vmatprep.subr.bf16.mxu1 %v5125_v44  ;;  %v855_v42 = vld [vmem:[#allocation2 + $0x2] ss:$8 sm:$0xf0] }
 0x314   :  { %1160 = vmatpush1.bf16.msra.mxu0 %v5126_v45  ;;  %1201 = vmatpush1.bf16.msra.mxu1 %v5127_v46  ;;  %v856_v45 = vor.u32 %v855_v42, %v854_v41  ;;  %v5145_v41 = vld [vmem:[#allocation72_spill] sm:$0xff]  ;;  %v5146_v42 = vld [vmem:[#allocation73_spill] sm:$0xff] }
 0x315   :  { %1211 = vmatprep.subr.bf16.mxu0 %v5128_v49  ;;  %1252 = vmatprep.subr.bf16.mxu1 %v5129_v15 }
 0x36a   :  { %v904_v16 = vpop.f32.mrb[8].mxu0  ;;  %v945_v17 = vpop.f32.mrb[16].mxu1 }
 0x36b   :  { %v906_v18 = vpop.f32.mrb[9].mxu0  ;;  %v947_v19 = vpop.f32.mrb[17].mxu1 }
 0x36c   :  { %v1042_v20 = vcombine.low %v904_v16, %v906_v18  ;;  %v1043_v21 = vcombine.low %v945_v17, %v947_v19  ;;  %v908_v22 = vpop.f32.mrb[10].mxu0  ;;  %v949_v23 = vpop.f32.mrb[18].mxu1 }
 0x36d   :  { %v909_v24 = vpop.f32.mrb[11].mxu0  ;;  %v950_v25 = vpop.f32.mrb[19].mxu1 }
 0x36e   :  { %v1052_v26 = vrot.slane %v1042_v20, %v3542_v56  ;;  %v1059_v27 = vrot.slane %v1043_v21, %v3542_v56 }
 0x370   :  { %v1074_v28 = vcombine.low %v1052_v26, %v1059_v27 }
 0x372   :  { %v1082_v44 = vrot.slane %v1074_v28, %v3542_v56 }
 0x3aa   :  { %v986_v29 = vpop.f32.mrb[12].mxu0  ;;  %v1027_v30 = vpop.f32.mrb[20].mxu1 }
 0x3ab   :  { %v988_v31 = vpop.f32.mrb[13].mxu0  ;;  %v1029_v32 = vpop.f32.mrb[21].mxu1 }
 0x3ac   :  { %v1044_v33 = vcombine.low %v986_v29, %v988_v31  ;;  %v1045_v34 = vcombine.low %v1027_v30, %v1029_v32  ;;  %v990_v35 = vpop.f32.mrb[14].mxu0  ;;  %v1031_v36 = vpop.f32.mrb[22].mxu1 }
 0x3ad   :  { %v991_v37 = vpop.f32.mrb[15].mxu0  ;;  %v1032_v38 = vpop.f32.mrb[23].mxu1  ;;  %v5131_v35 = vld [vmem:[#allocation58_spill] sm:$0xff]  ;;  %v5134_v36 = vld [vmem:[#allocation61_spill] sm:$0xff] }
 0x3ae   :  { %v1066_v39 = vrot.slane %v1044_v33, %v3542_v56  ;;  %v1073_v40 = vrot.slane %v1045_v34, %v3542_v56  ;;  %v5141_v37 = vld [vmem:[#allocation68_spill] sm:$0xff]  ;;  %v5142_v38 = vld [vmem:[#allocation69_spill] sm:$0xff] }
 0x3b0   :  { %v1075_v43 = vcombine.low %v1066_v39, %v1073_v40  ;;  %v5143_v39 = vld [vmem:[#allocation70_spill] sm:$0xff]  ;;  %v5144_v40 = vld [vmem:[#allocation71_spill] sm:$0xff] }
 0x3b2   :  { %v1089_v46 = vrot.slane %v1075_v43, %v3542_v56  ;;  %v5147_v43 = vld [vmem:[#allocation74_spill] sm:$0xff] }
 0x3b4   :  { %v1090_v49 = vcombine.low %v1082_v44, %v1089_v46  ;;  %v5148_v44 = vld [vmem:[#allocation75_spill] sm:$0xff]  ;;  %v5150_v46 = vld [vmem:[#allocation77_spill] sm:$0xff] }
 0x3b6   :  { %v1092_v15 = vadd.f32 %v1090_v49, %v856_v45  ;;  %v5149_v45 = vld [vmem:[#allocation76_spill] sm:$0xff]  ;;  %v5151_v49 = vld [vmem:[#allocation78_spill] sm:$0xff] }
 0x3b8   :  { %2666 = vtanh.f32 %v1092_v15  ;;  %v5152_v15 = vld [vmem:[#allocation79_spill] sm:$0xff] }
 0x3c2   :  { %v2667_v16 = vpop.eup %2666 }
 0x3c3   :  { %v1094_v17 = vmul.f32 0.5, %v2667_v16  ;;  %v1097_v18 = vrot.slane %v2667_v16, 2  ;;  %v1106_v22 = vrot.slane %v2667_v16, 4  ;;  %v1101_v26 = vrot.slane %v2667_v16, 6  ;;  %v5153_v16 = vld [vmem:[#allocation80_spill] sm:$0xff] }
 0x3c5   :  { %v1095_v19 = vadd.f32 0.5, %v1094_v17  ;;  %v1099_v20 = vmul.f32 0.5, %v1097_v18  ;;  %v1103_v27 = vmul.f32 0.5, %v1101_v26  ;;  %v5154_v17 = vld [vmem:[#allocation81_spill] sm:$0xff]  ;;  %v5155_v18 = vld [vmem:[#allocation82_spill] sm:$0xff] }
 0x3c6   :  { %v5162_v26 = vld [vmem:[#allocation89_spill] sm:$0xff] }
 0x3c7   :  { %v1100_v21 = vadd.f32 0.5, %v1099_v20  ;;  %v1108_v24 = vmul.f32 %v1106_v22, %v1095_v19  ;;  %v1104_v28 = vadd.f32 0.5, %v1103_v27  ;;  %v5156_v19 = vld [vmem:[#allocation83_spill] sm:$0xff]  ;;  %v5157_v20 = vld [vmem:[#allocation84_spill] sm:$0xff]  ;;  %v5159_v22 = vld [vmem:[#allocation86_spill] sm:$0xff] }
 0x3c8   :  { %v5163_v27 = vld [vmem:[#allocation91_spill] sm:$0xff] }
 0x3c9   :  { %v1105_v23 = vmul.f32 %v1100_v21, %v3554_v57  ;;  %v5130_v57 = vld [vmem:[#allocation57_spill] sm:$0xff] }
 0x3ca   :  { %v5158_v21 = vld [vmem:[#allocation85_spill] sm:$0xff] }
 0x3cb   :  { %v3700_v25 = vadd.f32 %v1108_v24, %v1105_v23  ;;  %v5160_v23 = vld [vmem:[#allocation87_spill] sm:$0xff]  ;;  %v5161_v24 = vld [vmem:[#allocation88_spill] sm:$0xff] }
 0x3cd   :  { %2668 = vtanh.f32 %v3700_v25 }
 0x3d7   :  { %v2669_v29 = vpop.eup %2668 }
 0x3d8   :  { %v1111_v30 = vmul.f32 %v2669_v29, %v1104_v28  ;;  %v5164_v28 = vld [vmem:[#allocation92_spill] sm:$0xff] }
 0x3d9   :  { %v3830_v29 = vld [vmem:[#allocation3 + $0x110] sm:$0xff] }
 0x3da   :  { %v1124_v31 = vrot.slane %v1111_v30, %v5041_v5  ;;  %v1120_v32 = vrot.slane %v1111_v30, %v5042_v50  ;;  %5167 = vst [vmem:[#allocation14_spill] sm:$0xff] %v3830_v29  ;;  %v3833_v30 = vld [vmem:[#allocation3 + $0x148] sm:$0xff] }
 0x3db   :  { %5168 = vst [vmem:[#allocation13_spill] sm:$0xff] %v3833_v30 }
 0x3dc   :  { %v1128_v33 = vpack.c.bf16 %v1124_v31, %v1124_v31  ;;  %v3705_v34 = vpack.c.bf16 %v1120_v32, %v1120_v32  ;;  %v3836_v31 = vld [vmem:[#allocation3 + $0x158] sm:$0xff]  ;;  %v3839_v32 = vld [vmem:[#allocation3 + $0x140] sm:$0xff] }
 0x3dd   :  { %5169 = vst [vmem:[#allocation12_spill] sm:$0xff] %v3836_v31  ;;  %5170 = vst [vmem:[#allocation50_spill] sm:$0xff] %v3839_v32 }
 0x3de   :  { %1161 = vmatprep.mubr.bf16.mxu0 %v1128_v33  ;;  %1202 = vmatprep.mubr.bf16.mxu1 %v1128_v33 }
 0x3df   :  { %1162 = vmatmul.mubr.bf16.vlgmr.msra.gmra.mrb[16].mxu0 %v3705_v34  ;;  %1203 = vmatmul.mubr.bf16.vlgmr.msra.gmra.mrb[24].mxu1 %v3705_v34 }
 0x3e0   :  { %1212 = vmatpush1.bf16.msra.mxu0 %v5043_v47  ;;  %1253 = vmatpush1.bf16.msra.mxu1 %v5044_v6  ;;  %v5132_v47 = vld [vmem:[#allocation59_spill] sm:$0xff]  ;;  %v5133_v6 = vld [vmem:[#allocation60_spill] sm:$0xff] }
 0x3e1   :  { %1243 = vmatprep.mubr.bf16.mxu0 %v1128_v33  ;;  %1284 = vmatprep.mubr.bf16.mxu1 %v1128_v33  ;;  %v3842_v33 = vld [vmem:[#allocation3 + $0x150] sm:$0xff] }
 0x3e2   :  { %1213 = vmatprep.subr.bf16.mxu0 %v5045_v59  ;;  %1254 = vmatprep.subr.bf16.mxu1 %v5046_v60  ;;  %v5135_v59 = vld [vmem:[#allocation62_spill] sm:$0xff]  ;;  %v5136_v60 = vld [vmem:[#allocation63_spill] sm:$0xff]  ;;  %5171 = vst [vmem:[#allocation51_spill] sm:$0xff] %v3842_v33 }
 0x3e4   :  { %1214 = vmatpush1.bf16.msra.mxu0 %v3297_v9  ;;  %1255 = vmatpush1.bf16.msra.mxu1 %v5047_v62  ;;  %v5137_v9 = vld [vmem:[#allocation64_spill] sm:$0xff]  ;;  %v5138_v62 = vld [vmem:[#allocation65_spill] sm:$0xff] }
 0x3e5   :  { %1215 = vmatprep.subr.bf16.mxu0 %v5048_v4  ;;  %1256 = vmatprep.subr.bf16.mxu1 %v5049_v61  ;;  %v5139_v4 = vld [vmem:[#allocation66_spill] sm:$0xff]  ;;  %v5140_v61 = vld [vmem:[#allocation67_spill] sm:$0xff] }
 0x3e8   :  { %1216 = vmatpush1.bf16.msra.mxu0 %v5130_v57  ;;  %1257 = vmatpush1.bf16.msra.mxu1 %v5131_v35  ;;  %v3848_v57 = vld [vmem:[#allocation3 + $0x198] sm:$0xff]  ;;  %v3851_v35 = vld [vmem:[#allocation3 + $0x180] sm:$0xff] }
 0x3e9   :  { %1217 = vmatprep.subr.bf16.mxu0 %v5132_v47  ;;  %1258 = vmatprep.subr.bf16.mxu1 %v5133_v6  ;;  %5173 = vst [vmem:[#allocation53_spill] sm:$0xff] %v3848_v57  ;;  %5174 = vst [vmem:[#allocation54_spill] sm:$0xff] %v3851_v35  ;;  %v3854_v47 = vld [vmem:[#allocation3 + $0x190] sm:$0xff]  ;;  %v3857_v6 = vld [vmem:[#allocation3 + $0x1c8] sm:$0xff] }
 0x3ea   :  { %5175 = vst [vmem:[#allocation55_spill] sm:$0xff] %v3854_v47  ;;  %5176 = vst [vmem:[#allocation56_spill] sm:$0xff] %v3857_v6 }
 0x3ec   :  { %1218 = vmatpush1.bf16.msra.mxu0 %v5134_v36  ;;  %1259 = vmatpush1.bf16.msra.mxu1 %v5135_v59  ;;  %v3860_v36 = vld [vmem:[#allocation3 + $0x1d8] sm:$0xff]  ;;  %v3863_v59 = vld [vmem:[#allocation3 + $0x1c0] sm:$0xff] }
 0x3ed   :  { %1219 = vmatprep.subr.bf16.mxu0 %v5136_v60  ;;  %1260 = vmatprep.subr.bf16.mxu1 %v5137_v9  ;;  %5177 = vst [vmem:[#allocation90_spill] sm:$0xff] %v3860_v36  ;;  %5178 = vst [vmem:[#allocation93_spill] sm:$0xff] %v3863_v59  ;;  %v3866_v60 = vld [vmem:[#allocation3 + $0x1d0] sm:$0xff]  ;;  %v3869_v9 = vld [vmem:[#allocation3 + $0x208] sm:$0xff] }
 0x3ee   :  { %5179 = vst [vmem:[#allocation94_spill] sm:$0xff] %v3866_v60  ;;  %5180 = vst [vmem:[#allocation95_spill] sm:$0xff] %v3869_v9 }
 0x3f0   :  { %1220 = vmatpush1.bf16.msra.mxu0 %v5138_v62  ;;  %1261 = vmatpush1.bf16.msra.mxu1 %v5139_v4  ;;  %v3872_v62 = vld [vmem:[#allocation3 + $0x218] sm:$0xff]  ;;  %v3875_v4 = vld [vmem:[#allocation3 + $0x200] sm:$0xff] }
 0x3f1   :  { %1221 = vmatprep.subr.bf16.mxu0 %v5140_v61  ;;  %1262 = vmatprep.subr.bf16.mxu1 %v5141_v37  ;;  %5181 = vst [vmem:[#allocation96_spill] sm:$0xff] %v3872_v62  ;;  %5182 = vst [vmem:[#allocation97_spill] sm:$0xff] %v3875_v4  ;;  %v3878_v61 = vld [vmem:[#allocation3 + $0x210] sm:$0xff]  ;;  %v3881_v37 = vld [vmem:[#allocation3 + $0x248] sm:$0xff] }
 0x3f2   :  { %5183 = vst [vmem:[#allocation98_spill] sm:$0xff] %v3878_v61  ;;  %5184 = vst [vmem:[#allocation99_spill] sm:$0xff] %v3881_v37 }
 0x3f4   :  { %1222 = vmatpush1.bf16.msra.mxu0 %v5142_v38  ;;  %1263 = vmatpush1.bf16.msra.mxu1 %v5143_v39  ;;  %v3884_v38 = vld [vmem:[#allocation3 + $0x258] sm:$0xff]  ;;  %v3887_v39 = vld [vmem:[#allocation3 + $0x240] sm:$0xff] }
 0x3f5   :  { %1223 = vmatprep.subr.bf16.mxu0 %v5144_v40  ;;  %1264 = vmatprep.subr.bf16.mxu1 %v5145_v41  ;;  %5185 = vst [vmem:[#allocation100_spill] sm:$0xff] %v3884_v38  ;;  %5186 = vst [vmem:[#allocation101_spill] sm:$0xff] %v3887_v39  ;;  %v3890_v40 = vld [vmem:[#allocation3 + $0x250] sm:$0xff]  ;;  %v3893_v41 = vld [vmem:[#allocation3 + $0x288] sm:$0xff] }
 0x3f6   :  { %5187 = vst [vmem:[#allocation102_spill] sm:$0xff] %v3890_v40  ;;  %5188 = vst [vmem:[#allocation16_spill] sm:$0xff] %v3893_v41 }
 0x3f8   :  { %1224 = vmatpush1.bf16.msra.mxu0 %v5146_v42  ;;  %1265 = vmatpush1.bf16.msra.mxu1 %v5147_v43  ;;  %v3896_v42 = vld [vmem:[#allocation3 + $0x298] sm:$0xff]  ;;  %v3899_v43 = vld [vmem:[#allocation3 + $0x280] sm:$0xff] }
 0x3f9   :  { %1225 = vmatprep.subr.bf16.mxu0 %v5148_v44  ;;  %1266 = vmatprep.subr.bf16.mxu1 %v5149_v45  ;;  %5189 = vst [vmem:[#allocation17_spill] sm:$0xff] %v3896_v42  ;;  %5190 = vst [vmem:[#allocation18_spill] sm:$0xff] %v3899_v43  ;;  %v3902_v44 = vld [vmem:[#allocation3 + $0x290] sm:$0xff]  ;;  %v3905_v45 = vld [vmem:[#allocation3 + $0x2c8] sm:$0xff] }
 0x3fa   :  { %5191 = vst [vmem:[#allocation19_spill] sm:$0xff] %v3902_v44  ;;  %5192 = vst [vmem:[#allocation20_spill] sm:$0xff] %v3905_v45 }
 0x3fc   :  { %1226 = vmatpush1.bf16.msra.mxu0 %v5150_v46  ;;  %1267 = vmatpush1.bf16.msra.mxu1 %v5151_v49  ;;  %v3908_v46 = vld [vmem:[#allocation3 + $0x2d8] sm:$0xff]  ;;  %v3911_v49 = vld [vmem:[#allocation3 + $0x2c0] sm:$0xff] }
 0x3fd   :  { %1227 = vmatprep.subr.bf16.mxu0 %v5152_v15  ;;  %1268 = vmatprep.subr.bf16.mxu1 %v5153_v16  ;;  %5193 = vst [vmem:[#allocation21_spill] sm:$0xff] %v3908_v46  ;;  %5194 = vst [vmem:[#allocation22_spill] sm:$0xff] %v3911_v49  ;;  %v3914_v15 = vld [vmem:[#allocation3 + $0x2d0] sm:$0xff]  ;;  %v3917_v16 = vld [vmem:[#allocation3 + $0x308] sm:$0xff] }
 0x3fe   :  { %5195 = vst [vmem:[#allocation23_spill] sm:$0xff] %v3914_v15  ;;  %5196 = vst [vmem:[#allocation24_spill] sm:$0xff] %v3917_v16 }
 0x400   :  { %1228 = vmatpush1.bf16.msra.mxu0 %v5154_v17  ;;  %1269 = vmatpush1.bf16.msra.mxu1 %v5155_v18  ;;  %v3920_v17 = vld [vmem:[#allocation3 + $0x318] sm:$0xff]  ;;  %v3923_v18 = vld [vmem:[#allocation3 + $0x300] sm:$0xff] }
 0x401   :  { %1229 = vmatprep.subr.bf16.mxu0 %v5156_v19  ;;  %1270 = vmatprep.subr.bf16.mxu1 %v5157_v20  ;;  %5197 = vst [vmem:[#allocation25_spill] sm:$0xff] %v3920_v17  ;;  %5198 = vst [vmem:[#allocation26_spill] sm:$0xff] %v3923_v18  ;;  %v3926_v19 = vld [vmem:[#allocation3 + $0x310] sm:$0xff]  ;;  %v3929_v20 = vld [vmem:[#allocation3 + $0x348] sm:$0xff] }
 0x402   :  { %5199 = vst [vmem:[#allocation27_spill] sm:$0xff] %v3926_v19  ;;  %5200 = vst [vmem:[#allocation28_spill] sm:$0xff] %v3929_v20 }
 0x404   :  { %1230 = vmatpush1.bf16.msra.mxu0 %v5158_v21  ;;  %1271 = vmatpush1.bf16.msra.mxu1 %v5159_v22  ;;  %v3932_v21 = vld [vmem:[#allocation3 + $0x358] sm:$0xff]  ;;  %v3935_v22 = vld [vmem:[#allocation3 + $0x340] sm:$0xff] }
 0x405   :  { %1231 = vmatprep.subr.bf16.mxu0 %v5160_v23  ;;  %1272 = vmatprep.subr.bf16.mxu1 %v5161_v24  ;;  %5201 = vst [vmem:[#allocation29_spill] sm:$0xff] %v3932_v21  ;;  %5202 = vst [vmem:[#allocation30_spill] sm:$0xff] %v3935_v22  ;;  %v3938_v23 = vld [vmem:[#allocation3 + $0x350] sm:$0xff]  ;;  %v3941_v24 = vld [vmem:[#allocation3 + $0x388] sm:$0xff] }
 0x406   :  { %5203 = vst [vmem:[#allocation31_spill] sm:$0xff] %v3938_v23  ;;  %5204 = vst [vmem:[#allocation32_spill] sm:$0xff] %v3941_v24 }
 0x408   :  { %1232 = vmatpush1.bf16.msra.mxu0 %v5162_v26  ;;  %1273 = vmatpush1.bf16.msra.mxu1 %v5083_v52  ;;  %v3771_v52 = vld [vmem:[#allocation3 + $0x8] sm:$0xff]  ;;  %v3944_v26 = vld [vmem:[#allocation3 + $0x398] sm:$0xff] }
 0x409   :  { %1233 = vmatprep.subr.bf16.mxu0 %v5163_v27  ;;  %1274 = vmatprep.subr.bf16.mxu1 %v5164_v28  ;;  %5205 = vst [vmem:[#allocation33_spill] sm:$0xff] %v3944_v26  ;;  %v3947_v27 = vld [vmem:[#allocation3 + $0x380] sm:$0xff]  ;;  %v3950_v28 = vld [vmem:[#allocation3 + $0x390] sm:$0xff] }
 0x40a   :  { %5206 = vst [vmem:[#allocation34_spill] sm:$0xff] %v3947_v27  ;;  %5207 = vst [vmem:[#allocation35_spill] sm:$0xff] %v3950_v28 }
 0x40c   :  { %1234 = vmatpush1.bf16.msra.mxu0 %v5086_v1  ;;  %1275 = vmatpush1.bf16.msra.mxu1 %v5087_v55  ;;  %v3806_v1 = vld [vmem:[#allocation3 + $0x90] sm:$0xff]  ;;  %v3809_v55 = vld [vmem:[#allocation3 + $0xc8] sm:$0xff] }
 0x40d   :  { %1235 = vmatprep.subr.bf16.mxu0 %v5088_v2  ;;  %1276 = vmatprep.subr.bf16.mxu1 %v5089_v58  ;;  %v3812_v2 = vld [vmem:[#allocation3 + $0xd8] sm:$0xff]  ;;  %v3815_v58 = vld [vmem:[#allocation3 + $0xc0] sm:$0xff] }
 0x410   :  { %1236 = vmatpush1.bf16.msra.mxu0 %v5090_v3  ;;  %1277 = vmatpush1.bf16.msra.mxu1 %v5091_v8  ;;  %v3818_v3 = vld [vmem:[#allocation3 + $0xd0] sm:$0xff]  ;;  %v3821_v8 = vld [vmem:[#allocation3 + $0x108] sm:$0xff] }
 0x411   :  { %1237 = vmatprep.subr.bf16.mxu0 %v5092_v51  ;;  %1278 = vmatprep.subr.bf16.mxu1 %v5093_v48  ;;  %v3824_v51 = vld [vmem:[#allocation3 + $0x118] sm:$0xff]  ;;  %v3827_v48 = vld [vmem:[#allocation3 + $0x100] sm:$0xff] }
 0x412   :  { %5165 = vst [vmem:[#allocation11_spill] sm:$0xff] %v3824_v51  ;;  %5166 = vst [vmem:[#allocation15_spill] sm:$0xff] %v3827_v48 }
 0x414   :  { %1238 = vmatpush1.bf16.msra.mxu0 %v3443_v12  ;;  %1279 = vmatpush1.bf16.msra.mxu1 %v5094_v54  ;;  %v3774_v12 = vld [vmem:[#allocation3 + $0x18] sm:$0xff] }
 0x415   :  { %1239 = vmatprep.subr.bf16.mxu0 %v5095_v53  ;;  %1280 = vmatprep.subr.bf16.mxu1 %v3449_v13  ;;  %v3797_v13 = vld [vmem:[#allocation3 + $0x88] sm:$0xff]  ;;  %v3800_v54 = vld [vmem:[#allocation3 + $0x98] sm:$0xff]  ;;  %v3803_v53 = vld [vmem:[#allocation3 + $0x80] sm:$0xff] }
 0x418   :  { %1240 = vmatpush1.bf16.msra.mxu0 %v3455_v0  ;;  %1281 = vmatpush1.bf16.msra.mxu1 %v3457_v11  ;;  %v3779_v11 = vld [vmem:[#allocation3] sm:$0xff]  ;;  %v3788_v0 = vld [vmem:[#allocation3 + $0x58] sm:$0xff] }
 0x419   :  { %1241 = vmatprep.subr.bf16.mxu0 %v3459_v14  ;;  %1282 = vmatprep.subr.bf16.mxu1 %v3461_v63  ;;  %v3782_v14 = vld [vmem:[#allocation3 + $0x10] sm:$0xff]  ;;  %v3785_v63 = vld [vmem:[#allocation3 + $0x48] sm:$0xff] }
 0x41c   :  { %1242 = vmatpush1.bf16.msra.mxu0 %v3467_v10  ;;  %1283 = vmatpush1.bf16.msra.mxu1 %v3469_v7  ;;  %v3791_v7 = vld [vmem:[#allocation3 + $0x40] sm:$0xff]  ;;  %v3794_v10 = vld [vmem:[#allocation3 + $0x50] sm:$0xff] }
 0x41d   :  { %1388 = vmatprep.subr.bf16.mxu0 %v3771_v52  ;;  %1429 = vmatprep.subr.bf16.mxu1 %v3774_v12 }
 0x41f   :  { %1244 = vmatmul.mubr.bf16.vlgmr.msra.gmra.mrb[20].mxu0 %v3705_v34  ;;  %1285 = vmatmul.mubr.bf16.vlgmr.msra.gmra.mrb[28].mxu1 %v3705_v34  ;;  %v3845_v34 = vld [vmem:[#allocation3 + $0x188] sm:$0xff] }
 0x420   :  { %1389 = vmatpush1.bf16.msra.mxu0 %v3779_v11  ;;  %1430 = vmatpush1.bf16.msra.mxu1 %v3782_v14  ;;  %5172 = vst [vmem:[#allocation52_spill] sm:$0xff] %v3845_v34 }
 0x421   :  { %1390 = vmatprep.subr.bf16.mxu0 %v3785_v63  ;;  %1431 = vmatprep.subr.bf16.mxu1 %v3788_v0 }
 0x424   :  { %1391 = vmatpush1.bf16.msra.mxu0 %v3791_v7  ;;  %1432 = vmatpush1.bf16.msra.mxu1 %v3794_v10 }
 0x425   :  { %1392 = vmatprep.subr.bf16.mxu0 %v3797_v13  ;;  %1433 = vmatprep.subr.bf16.mxu1 %v3800_v54 }
 0x428   :  { %1393 = vmatpush1.bf16.msra.mxu0 %v3803_v53  ;;  %1434 = vmatpush1.bf16.msra.mxu1 %v3806_v1 }
 0x429   :  { %1394 = vmatprep.subr.bf16.mxu0 %v3809_v55  ;;  %1435 = vmatprep.subr.bf16.mxu1 %v3812_v2 }
 0x42c   :  { %1395 = vmatpush1.bf16.msra.mxu0 %v3815_v58  ;;  %1436 = vmatpush1.bf16.msra.mxu1 %v3818_v3 }
 0x42d   :  { %1396 = vmatprep.subr.bf16.mxu0 %v3821_v8  ;;  %1437 = vmatprep.subr.bf16.mxu1 %v3824_v51 }
 0x430   :  { %1397 = vmatpush1.bf16.msra.mxu0 %v3827_v48  ;;  %1438 = vmatpush1.bf16.msra.mxu1 %v3830_v29 }
 0x431   :  { %1398 = vmatprep.subr.bf16.mxu0 %v3833_v30  ;;  %1439 = vmatprep.subr.bf16.mxu1 %v3836_v31 }
 0x434   :  { %1399 = vmatpush1.bf16.msra.mxu0 %v3839_v32  ;;  %1440 = vmatpush1.bf16.msra.mxu1 %v3842_v33 }
 0x435   :  { %1400 = vmatprep.subr.bf16.mxu0 %v3845_v34  ;;  %1441 = vmatprep.subr.bf16.mxu1 %v3848_v57 }
 0x438   :  { %1401 = vmatpush1.bf16.msra.mxu0 %v3851_v35  ;;  %1442 = vmatpush1.bf16.msra.mxu1 %v3854_v47 }
 0x439   :  { %1402 = vmatprep.subr.bf16.mxu0 %v3857_v6  ;;  %1443 = vmatprep.subr.bf16.mxu1 %v3860_v36 }
 0x43c   :  { %1403 = vmatpush1.bf16.msra.mxu0 %v3863_v59  ;;  %1444 = vmatpush1.bf16.msra.mxu1 %v3866_v60 }
 0x43d   :  { %1404 = vmatprep.subr.bf16.mxu0 %v3869_v9  ;;  %1445 = vmatprep.subr.bf16.mxu1 %v3872_v62 }
 0x440   :  { %1405 = vmatpush1.bf16.msra.mxu0 %v3875_v4  ;;  %1446 = vmatpush1.bf16.msra.mxu1 %v3878_v61 }
 0x441   :  { %1406 = vmatprep.subr.bf16.mxu0 %v3881_v37  ;;  %1447 = vmatprep.subr.bf16.mxu1 %v3884_v38 }
 0x444   :  { %1407 = vmatpush1.bf16.msra.mxu0 %v3887_v39  ;;  %1448 = vmatpush1.bf16.msra.mxu1 %v3890_v40 }
 0x445   :  { %1408 = vmatprep.subr.bf16.mxu0 %v3893_v41  ;;  %1449 = vmatprep.subr.bf16.mxu1 %v3896_v42 }
 0x448   :  { %1409 = vmatpush1.bf16.msra.mxu0 %v3899_v43  ;;  %1450 = vmatpush1.bf16.msra.mxu1 %v3902_v44 }
 0x449   :  { %1410 = vmatprep.subr.bf16.mxu0 %v3905_v45  ;;  %1451 = vmatprep.subr.bf16.mxu1 %v3908_v46 }
 0x44c   :  { %1411 = vmatpush1.bf16.msra.mxu0 %v3911_v49  ;;  %1452 = vmatpush1.bf16.msra.mxu1 %v3914_v15 }
 0x44d   :  { %1412 = vmatprep.subr.bf16.mxu0 %v3917_v16  ;;  %1453 = vmatprep.subr.bf16.mxu1 %v3920_v17 }
 0x450   :  { %1413 = vmatpush1.bf16.msra.mxu0 %v3923_v18  ;;  %1454 = vmatpush1.bf16.msra.mxu1 %v3926_v19 }
 0x451   :  { %1414 = vmatprep.subr.bf16.mxu0 %v3929_v20  ;;  %1455 = vmatprep.subr.bf16.mxu1 %v3932_v21 }
 0x454   :  { %1415 = vmatpush1.bf16.msra.mxu0 %v3935_v22  ;;  %1456 = vmatpush1.bf16.msra.mxu1 %v3938_v23  ;;  %v3953_v22 = vld [vmem:[#allocation3 + $0x3c8] sm:$0xff]  ;;  %v3956_v23 = vld [vmem:[#allocation3 + $0x3d8] sm:$0xff] }
 0x455   :  { %1416 = vmatprep.subr.bf16.mxu0 %v3941_v24  ;;  %1457 = vmatprep.subr.bf16.mxu1 %v3944_v26  ;;  %5208 = vst [vmem:[#allocation36_spill] sm:$0xff] %v3953_v22  ;;  %5209 = vst [vmem:[#allocation37_spill] sm:$0xff] %v3956_v23  ;;  %v3959_v24 = vld [vmem:[#allocation3 + $0x3c0] sm:$0xff]  ;;  %v3962_v26 = vld [vmem:[#allocation3 + $0x3d0] sm:$0xff] }
 0x456   :  { %5210 = vst [vmem:[#allocation38_spill] sm:$0xff] %v3959_v24  ;;  %5211 = vst [vmem:[#allocation39_spill] sm:$0xff] %v3962_v26 }
 0x458   :  { %1417 = vmatpush1.bf16.msra.mxu0 %v3947_v27  ;;  %1458 = vmatpush1.bf16.msra.mxu1 %v3950_v28  ;;  %v3965_v27 = vld [vmem:[#allocation3 + $0x28] sm:$0xff]  ;;  %v3968_v28 = vld [vmem:[#allocation3 + $0x38] sm:$0xff] }
 0x459   :  { %1418 = vmatprep.subr.bf16.mxu0 %v3953_v22  ;;  %1459 = vmatprep.subr.bf16.mxu1 %v3956_v23  ;;  %5212 = vst [vmem:[#allocation40_spill] sm:$0xff] %v3965_v27  ;;  %5213 = vst [vmem:[#allocation41_spill] sm:$0xff] %v3968_v28 }
 0x45c   :  { %1419 = vmatpush1.bf16.msra.mxu0 %v3959_v24  ;;  %1460 = vmatpush1.bf16.msra.mxu1 %v3962_v26 }
 0x45d   :  { %1470 = vmatprep.subr.bf16.mxu0 %v3965_v27  ;;  %1511 = vmatprep.subr.bf16.mxu1 %v3968_v28 }
 0x4b2   :  { %v1163_v22 = vpop.f32.mrb[16].mxu0  ;;  %v1204_v21 = vpop.f32.mrb[24].mxu1 }
 0x4b3   :  { %v1165_v20 = vpop.f32.mrb[17].mxu0  ;;  %v1206_v23 = vpop.f32.mrb[25].mxu1 }
 0x4b4   :  { %v1301_v19 = vcombine.low %v1163_v22, %v1165_v20  ;;  %v1302_v18 = vcombine.low %v1204_v21, %v1206_v23  ;;  %v1167_v17 = vpop.f32.mrb[18].mxu0  ;;  %v1208_v24 = vpop.f32.mrb[26].mxu1  ;;  %v1114_v21 = vld [vmem:[#allocation2 + $0x3] ss:$8 sm:$0xf0] }
 0x4b5   :  { %v1168_v16 = vpop.f32.mrb[19].mxu0  ;;  %v1209_v15 = vpop.f32.mrb[27].mxu1 }
 0x4b6   :  { %v1311_v26 = vrot.slane %v1301_v19, %v3542_v56  ;;  %v1318_v49 = vrot.slane %v1302_v18, %v3542_v56  ;;  %v1113_v15 = vld [vmem:[#allocation2 + $0x3] ss:$8 sm:$0xf] }
 0x4b8   :  { %v1333_v46 = vcombine.low %v1311_v26, %v1318_v49  ;;  %v1115_v49 = vor.u32 %v1114_v21, %v1113_v15 }
 0x4ba   :  { %v1341_v18 = vrot.slane %v1333_v46, %v3542_v56 }
 0x4f2   :  { %v1245_v27 = vpop.f32.mrb[20].mxu0  ;;  %v1286_v45 = vpop.f32.mrb[28].mxu1 }
 0x4f3   :  { %v1247_v44 = vpop.f32.mrb[21].mxu0  ;;  %v1288_v43 = vpop.f32.mrb[29].mxu1 }
 0x4f4   :  { %v1303_v28 = vcombine.low %v1245_v27, %v1247_v44  ;;  %v1304_v42 = vcombine.low %v1286_v45, %v1288_v43  ;;  %v1249_v41 = vpop.f32.mrb[22].mxu0  ;;  %v1290_v40 = vpop.f32.mrb[30].mxu1 }
 0x4f5   :  { %v1250_v39 = vpop.f32.mrb[23].mxu0  ;;  %v1291_v20 = vpop.f32.mrb[31].mxu1 }
 0x4f6   :  { %v1325_v17 = vrot.slane %v1303_v28, %v3542_v56  ;;  %v1332_v16 = vrot.slane %v1304_v42, %v3542_v56 }
 0x4f8   :  { %v1334_v19 = vcombine.low %v1325_v17, %v1332_v16 }
 0x4fa   :  { %v1348_v22 = vrot.slane %v1334_v19, %v3542_v56 }
 0x4fc   :  { %v1349_v23 = vcombine.low %v1341_v18, %v1348_v22  ;;  %v3990_v22 = vld [vmem:[#allocation3 + $0x30] sm:$0xff] }
 0x4fe   :  { %v1351_v24 = vadd.f32 %v1349_v23, %v1115_v49  ;;  %v3993_v23 = vld [vmem:[#allocation3 + $0x68] sm:$0xff] }
 0x500   :  { %2670 = vtanh.f32 %v1351_v24  ;;  %v3996_v24 = vld [vmem:[#allocation3 + $0x78] sm:$0xff] }
 0x50a   :  { %v2671_v43 = vpop.eup %2670 }
 0x50b   :  { %v1353_v41 = vmul.f32 0.5, %v2671_v43  ;;  %v1356_v40 = vrot.slane %v2671_v43, 2  ;;  %v1365_v26 = vrot.slane %v2671_v43, 4  ;;  %v1360_v46 = vrot.slane %v2671_v43, 6  ;;  %v3999_v43 = vld [vmem:[#allocation3 + $0x60] sm:$0xff] }
 0x50d   :  { %v1354_v39 = vadd.f32 0.5, %v1353_v41  ;;  %v1358_v44 = vmul.f32 0.5, %v1356_v40  ;;  %v1362_v20 = vmul.f32 0.5, %v1360_v46  ;;  %v4002_v41 = vld [vmem:[#allocation3 + $0x70] sm:$0xff]  ;;  %v4005_v40 = vld [vmem:[#allocation3 + $0xa8] sm:$0xff] }
 0x50e   :  { %v4026_v46 = vld [vmem:[#allocation3 + $0xf0] sm:$0xff] }
 0x50f   :  { %v1359_v45 = vadd.f32 0.5, %v1358_v44  ;;  %v1367_v27 = vmul.f32 %v1365_v26, %v1354_v39  ;;  %v1363_v17 = vadd.f32 0.5, %v1362_v20  ;;  %v4008_v39 = vld [vmem:[#allocation3 + $0xb8] sm:$0xff]  ;;  %v4011_v44 = vld [vmem:[#allocation3 + $0xa0] sm:$0xff]  ;;  %v4017_v26 = vld [vmem:[#allocation3 + $0xe8] sm:$0xff] }
 0x510   :  { %v4029_v20 = vld [vmem:[#allocation3 + $0x128] sm:$0xff] }
 0x511   :  { %v1364_v42 = vmul.f32 %v1359_v45, %v3700_v25  ;;  %v3987_v25 = vld [vmem:[#allocation3 + $0x20] sm:$0xff]  ;;  %v4014_v45 = vld [vmem:[#allocation3 + $0xb0] sm:$0xff] }
 0x513   :  { %v3978_v28 = vadd.f32 %v1367_v27, %v1364_v42  ;;  %v4020_v42 = vld [vmem:[#allocation3 + $0xf8] sm:$0xff]  ;;  %v4023_v27 = vld [vmem:[#allocation3 + $0xe0] sm:$0xff] }
 0x515   :  { %2672 = vtanh.f32 %v3978_v28 }
 0x51f   :  { %v2673_v16 = vpop.eup %2672 }
 0x520   :  { %v1370_v15 = vmul.f32 %v2673_v16, %v1363_v17  ;;  %v4032_v17 = vld [vmem:[#allocation3 + $0x138] sm:$0xff]  ;;  %v4035_v16 = vld [vmem:[#allocation3 + $0x120] sm:$0xff] }
 0x521   :  { %5214 = vst [vmem:[#allocation42_spill] sm:$0xff] %v4032_v17  ;;  %5215 = vst [vmem:[#allocation43_spill] sm:$0xff] %v4035_v16 }
 0x522   :  { %v1383_v21 = vrot.slane %v1370_v15, %v5041_v5  ;;  %v1379_v19 = vrot.slane %v1370_v15, %v5042_v50  ;;  %v4038_v15 = vld [vmem:[#allocation3 + $0x130] sm:$0xff] }
 0x523   :  { %5216 = vst [vmem:[#allocation44_spill] sm:$0xff] %v4038_v15 }
 0x524   :  { %v1387_v18 = vpack.c.bf16 %v1383_v21, %v1383_v21  ;;  %v3983_v49 = vpack.c.bf16 %v1379_v19, %v1379_v19  ;;  %v4041_v21 = vld [vmem:[#allocation3 + $0x168] sm:$0xff]  ;;  %v4044_v19 = vld [vmem:[#allocation3 + $0x178] sm:$0xff] }
 0x525   :  { %5217 = vst [vmem:[#allocation45_spill] sm:$0xff] %v4041_v21  ;;  %5218 = vst [vmem:[#allocation46_spill] sm:$0xff] %v4044_v19 }
 0x526   :  { %1420 = vmatprep.mubr.bf16.mxu0 %v1387_v18  ;;  %1461 = vmatprep.mubr.bf16.mxu1 %v1387_v18 }
 0x527   :  { %1421 = vmatmul.mubr.bf16.vlgmr.msra.gmra.mrb[24].mxu0 %v3983_v49  ;;  %1462 = vmatmul.mubr.bf16.vlgmr.msra.gmra.mrb[32].mxu1 %v3983_v49 }
 0x528   :  { %1471 = vmatpush1.bf16.msra.mxu0 %v3987_v25  ;;  %1512 = vmatpush1.bf16.msra.mxu1 %v3990_v22 }
 0x529   :  { %1502 = vmatprep.mubr.bf16.mxu0 %v1387_v18  ;;  %1543 = vmatprep.mubr.bf16.mxu1 %v1387_v18  ;;  %v4047_v18 = vld [vmem:[#allocation3 + $0x160] sm:$0xff] }
 0x52a   :  { %1472 = vmatprep.subr.bf16.mxu0 %v3993_v23  ;;  %1513 = vmatprep.subr.bf16.mxu1 %v3996_v24  ;;  %5219 = vst [vmem:[#allocation47_spill] sm:$0xff] %v4047_v18 }
 0x52c   :  { %1473 = vmatpush1.bf16.msra.mxu0 %v3999_v43  ;;  %1514 = vmatpush1.bf16.msra.mxu1 %v4002_v41 }
 0x52d   :  { %1474 = vmatprep.subr.bf16.mxu0 %v4005_v40  ;;  %1515 = vmatprep.subr.bf16.mxu1 %v4008_v39 }
 0x530   :  { %1475 = vmatpush1.bf16.msra.mxu0 %v4011_v44  ;;  %1516 = vmatpush1.bf16.msra.mxu1 %v4014_v45 }
 0x531   :  { %1476 = vmatprep.subr.bf16.mxu0 %v4017_v26  ;;  %1517 = vmatprep.subr.bf16.mxu1 %v4020_v42 }
 0x534   :  { %1477 = vmatpush1.bf16.msra.mxu0 %v4023_v27  ;;  %1518 = vmatpush1.bf16.msra.mxu1 %v4026_v46 }
 0x535   :  { %1478 = vmatprep.subr.bf16.mxu0 %v4029_v20  ;;  %1519 = vmatprep.subr.bf16.mxu1 %v4032_v17  ;;  %v4050_v17 = vld [vmem:[#allocation3 + $0x170] sm:$0xff] }
 0x536   :  { %5220 = vst [vmem:[#allocation48_spill] sm:$0xff] %v4050_v17 }
 0x538   :  { %1479 = vmatpush1.bf16.msra.mxu0 %v4035_v16  ;;  %1520 = vmatpush1.bf16.msra.mxu1 %v4038_v15  ;;  %v4053_v16 = vld [vmem:[#allocation3 + $0x1a8] sm:$0xff]  ;;  %v4056_v15 = vld [vmem:[#allocation3 + $0x1b8] sm:$0xff] }
 0x539   :  { %1480 = vmatprep.subr.bf16.mxu0 %v4041_v21  ;;  %1521 = vmatprep.subr.bf16.mxu1 %v4044_v19  ;;  %5221 = vst [vmem:[#allocation49_spill] sm:$0xff] %v4053_v16  ;;  %5222 = vst [vmem:[#allocation57_spill] sm:$0xff] %v4056_v15  ;;  %v4059_v21 = vld [vmem:[#allocation3 + $0x1a0] sm:$0xff]  ;;  %v4062_v19 = vld [vmem:[#allocation3 + $0x1b0] sm:$0xff] }
 0x53a   :  { %5223 = vst [vmem:[#allocation58_spill] sm:$0xff] %v4059_v21  ;;  %5224 = vst [vmem:[#allocation59_spill] sm:$0xff] %v4062_v19 }
 0x53c   :  { %1481 = vmatpush1.bf16.msra.mxu0 %v4047_v18  ;;  %1522 = vmatpush1.bf16.msra.mxu1 %v4050_v17  ;;  %v4065_v18 = vld [vmem:[#allocation3 + $0x1e8] sm:$0xff]  ;;  %v4068_v17 = vld [vmem:[#allocation3 + $0x1f8] sm:$0xff] }
 0x53d   :  { %1482 = vmatprep.subr.bf16.mxu0 %v4053_v16  ;;  %1523 = vmatprep.subr.bf16.mxu1 %v4056_v15  ;;  %5225 = vst [vmem:[#allocation60_spill] sm:$0xff] %v4065_v18  ;;  %5226 = vst [vmem:[#allocation61_spill] sm:$0xff] %v4068_v17  ;;  %v4071_v16 = vld [vmem:[#allocation3 + $0x1e0] sm:$0xff]  ;;  %v4074_v15 = vld [vmem:[#allocation3 + $0x1f0] sm:$0xff] }
 0x53e   :  { %5227 = vst [vmem:[#allocation62_spill] sm:$0xff] %v4071_v16  ;;  %5228 = vst [vmem:[#allocation63_spill] sm:$0xff] %v4074_v15 }
 0x540   :  { %1483 = vmatpush1.bf16.msra.mxu0 %v4059_v21  ;;  %1524 = vmatpush1.bf16.msra.mxu1 %v4062_v19  ;;  %v4077_v21 = vld [vmem:[#allocation3 + $0x228] sm:$0xff]  ;;  %v4080_v19 = vld [vmem:[#allocation3 + $0x238] sm:$0xff] }
 0x541   :  { %1484 = vmatprep.subr.bf16.mxu0 %v4065_v18  ;;  %1525 = vmatprep.subr.bf16.mxu1 %v4068_v17  ;;  %5229 = vst [vmem:[#allocation64_spill] sm:$0xff] %v4077_v21  ;;  %5230 = vst [vmem:[#allocation65_spill] sm:$0xff] %v4080_v19  ;;  %v4083_v18 = vld [vmem:[#allocation3 + $0x220] sm:$0xff]  ;;  %v4086_v17 = vld [vmem:[#allocation3 + $0x230] sm:$0xff] }
 0x542   :  { %5231 = vst [vmem:[#allocation66_spill] sm:$0xff] %v4083_v18  ;;  %5232 = vst [vmem:[#allocation67_spill] sm:$0xff] %v4086_v17 }
 0x544   :  { %1485 = vmatpush1.bf16.msra.mxu0 %v4071_v16  ;;  %1526 = vmatpush1.bf16.msra.mxu1 %v4074_v15  ;;  %v4089_v16 = vld [vmem:[#allocation3 + $0x268] sm:$0xff]  ;;  %v4092_v15 = vld [vmem:[#allocation3 + $0x278] sm:$0xff] }
 0x545   :  { %1486 = vmatprep.subr.bf16.mxu0 %v4077_v21  ;;  %1527 = vmatprep.subr.bf16.mxu1 %v4080_v19  ;;  %5233 = vst [vmem:[#allocation68_spill] sm:$0xff] %v4089_v16  ;;  %5234 = vst [vmem:[#allocation69_spill] sm:$0xff] %v4092_v15  ;;  %v4095_v21 = vld [vmem:[#allocation3 + $0x260] sm:$0xff]  ;;  %v4098_v19 = vld [vmem:[#allocation3 + $0x270] sm:$0xff] }
 0x546   :  { %5235 = vst [vmem:[#allocation70_spill] sm:$0xff] %v4095_v21  ;;  %5236 = vst [vmem:[#allocation71_spill] sm:$0xff] %v4098_v19 }
 0x548   :  { %1487 = vmatpush1.bf16.msra.mxu0 %v4083_v18  ;;  %1528 = vmatpush1.bf16.msra.mxu1 %v4086_v17  ;;  %v4101_v18 = vld [vmem:[#allocation3 + $0x2a8] sm:$0xff]  ;;  %v4104_v17 = vld [vmem:[#allocation3 + $0x2b8] sm:$0xff] }
 0x549   :  { %1488 = vmatprep.subr.bf16.mxu0 %v4089_v16  ;;  %1529 = vmatprep.subr.bf16.mxu1 %v4092_v15  ;;  %5237 = vst [vmem:[#allocation72_spill] sm:$0xff] %v4101_v18  ;;  %5238 = vst [vmem:[#allocation73_spill] sm:$0xff] %v4104_v17  ;;  %v4107_v16 = vld [vmem:[#allocation3 + $0x2a0] sm:$0xff]  ;;  %v4110_v15 = vld [vmem:[#allocation3 + $0x2b0] sm:$0xff] }
 0x54a   :  { %5239 = vst [vmem:[#allocation74_spill] sm:$0xff] %v4107_v16  ;;  %5240 = vst [vmem:[#allocation75_spill] sm:$0xff] %v4110_v15 }
 0x54c   :  { %1489 = vmatpush1.bf16.msra.mxu0 %v4095_v21  ;;  %1530 = vmatpush1.bf16.msra.mxu1 %v4098_v19  ;;  %v4113_v21 = vld [vmem:[#allocation3 + $0x2e8] sm:$0xff]  ;;  %v4116_v19 = vld [vmem:[#allocation3 + $0x2f8] sm:$0xff] }
 0x54d   :  { %1490 = vmatprep.subr.bf16.mxu0 %v4101_v18  ;;  %1531 = vmatprep.subr.bf16.mxu1 %v4104_v17  ;;  %5241 = vst [vmem:[#allocation76_spill] sm:$0xff] %v4113_v21  ;;  %5242 = vst [vmem:[#allocation77_spill] sm:$0xff] %v4116_v19  ;;  %v4119_v18 = vld [vmem:[#allocation3 + $0x2e0] sm:$0xff]  ;;  %v4122_v17 = vld [vmem:[#allocation3 + $0x2f0] sm:$0xff] }
 0x54e   :  { %5243 = vst [vmem:[#allocation78_spill] sm:$0xff] %v4119_v18  ;;  %5244 = vst [vmem:[#allocation79_spill] sm:$0xff] %v4122_v17 }
 0x550   :  { %1491 = vmatpush1.bf16.msra.mxu0 %v4107_v16  ;;  %1532 = vmatpush1.bf16.msra.mxu1 %v4110_v15  ;;  %v4125_v16 = vld [vmem:[#allocation3 + $0x328] sm:$0xff]  ;;  %v4128_v15 = vld [vmem:[#allocation3 + $0x338] sm:$0xff] }
 0x551   :  { %1492 = vmatprep.subr.bf16.mxu0 %v4113_v21  ;;  %1533 = vmatprep.subr.bf16.mxu1 %v4116_v19  ;;  %5245 = vst [vmem:[#allocation80_spill] sm:$0xff] %v4125_v16  ;;  %5246 = vst [vmem:[#allocation81_spill] sm:$0xff] %v4128_v15  ;;  %v4131_v21 = vld [vmem:[#allocation3 + $0x320] sm:$0xff]  ;;  %v4134_v19 = vld [vmem:[#allocation3 + $0x330] sm:$0xff] }
 0x552   :  { %5247 = vst [vmem:[#allocation82_spill] sm:$0xff] %v4131_v21  ;;  %5248 = vst [vmem:[#allocation83_spill] sm:$0xff] %v4134_v19 }
 0x554   :  { %1493 = vmatpush1.bf16.msra.mxu0 %v4119_v18  ;;  %1534 = vmatpush1.bf16.msra.mxu1 %v4122_v17  ;;  %v4137_v18 = vld [vmem:[#allocation3 + $0x368] sm:$0xff]  ;;  %v4140_v17 = vld [vmem:[#allocation3 + $0x378] sm:$0xff] }
 0x555   :  { %1494 = vmatprep.subr.bf16.mxu0 %v4125_v16  ;;  %1535 = vmatprep.subr.bf16.mxu1 %v4128_v15  ;;  %5249 = vst [vmem:[#allocation84_spill] sm:$0xff] %v4137_v18  ;;  %5250 = vst [vmem:[#allocation85_spill] sm:$0xff] %v4140_v17  ;;  %v4143_v16 = vld [vmem:[#allocation3 + $0x360] sm:$0xff]  ;;  %v4146_v15 = vld [vmem:[#allocation3 + $0x370] sm:$0xff] }
 0x556   :  { %5251 = vst [vmem:[#allocation86_spill] sm:$0xff] %v4143_v16  ;;  %5252 = vst [vmem:[#allocation87_spill] sm:$0xff] %v4146_v15 }
 0x558   :  { %1495 = vmatpush1.bf16.msra.mxu0 %v4131_v21  ;;  %1536 = vmatpush1.bf16.msra.mxu1 %v4134_v19  ;;  %v4149_v21 = vld [vmem:[#allocation3 + $0x3a8] sm:$0xff]  ;;  %v4152_v19 = vld [vmem:[#allocation3 + $0x3b8] sm:$0xff] }
 0x559   :  { %1496 = vmatprep.subr.bf16.mxu0 %v4137_v18  ;;  %1537 = vmatprep.subr.bf16.mxu1 %v4140_v17  ;;  %5253 = vst [vmem:[#allocation88_spill] sm:$0xff] %v4149_v21  ;;  %5254 = vst [vmem:[#allocation89_spill] sm:$0xff] %v4152_v19  ;;  %v4155_v18 = vld [vmem:[#allocation3 + $0x3a0] sm:$0xff]  ;;  %v4158_v17 = vld [vmem:[#allocation3 + $0x3b0] sm:$0xff] }
 0x55c   :  { %1497 = vmatpush1.bf16.msra.mxu0 %v4143_v16  ;;  %1538 = vmatpush1.bf16.msra.mxu1 %v4146_v15  ;;  %v4161_v16 = vld [vmem:[#allocation3 + $0x3e8] sm:$0xff]  ;;  %v4164_v15 = vld [vmem:[#allocation3 + $0x3f8] sm:$0xff] }
 0x55d   :  { %1498 = vmatprep.subr.bf16.mxu0 %v4149_v21  ;;  %1539 = vmatprep.subr.bf16.mxu1 %v4152_v19  ;;  %5255 = vst [vmem:[#allocation91_spill] sm:$0xff] %v4161_v16  ;;  %5256 = vst [vmem:[#allocation92_spill] sm:$0xff] %v4164_v15  ;;  %v4167_v21 = vld [vmem:[#allocation3 + $0x3e0] sm:$0xff]  ;;  %v4170_v19 = vld [vmem:[#allocation3 + $0x3f0] sm:$0xff] }
 0x55e   :  { %5257 = vst [vmem:[#allocation103_spill] sm:$0xff] %v4167_v21  ;;  %5258 = vst [vmem:[#allocation104_spill] sm:$0xff] %v4170_v19 }
 0x560   :  { %1499 = vmatpush1.bf16.msra.mxu0 %v4155_v18  ;;  %1540 = vmatpush1.bf16.msra.mxu1 %v4158_v17 }
 0x561   :  { %1500 = vmatprep.subr.bf16.mxu0 %v4161_v16  ;;  %1541 = vmatprep.subr.bf16.mxu1 %v4164_v15 }
 0x564   :  { %1501 = vmatpush1.bf16.msra.mxu0 %v4167_v21  ;;  %1542 = vmatpush1.bf16.msra.mxu1 %v4170_v19 }
 0x565   :  { %1647 = vmatprep.subr.bf16.mxu0 %v3771_v52  ;;  %1688 = vmatprep.subr.bf16.mxu1 %v3774_v12 }
 0x567   :  { %1503 = vmatmul.mubr.bf16.vlgmr.msra.gmra.mrb[28].mxu0 %v3983_v49  ;;  %1544 = vmatmul.mubr.bf16.vlgmr.msra.gmra.mrb[36].mxu1 %v3983_v49  ;;  %v5259_v49 = vld [vmem:[#allocation101_spill] sm:$0xff] }
 0x568   :  { %1648 = vmatpush1.bf16.msra.mxu0 %v3779_v11  ;;  %1689 = vmatpush1.bf16.msra.mxu1 %v3782_v14 }
 0x569   :  { %1649 = vmatprep.subr.bf16.mxu0 %v3785_v63  ;;  %1690 = vmatprep.subr.bf16.mxu1 %v3788_v0 }
 0x56c   :  { %1650 = vmatpush1.bf16.msra.mxu0 %v3791_v7  ;;  %1691 = vmatpush1.bf16.msra.mxu1 %v3794_v10 }
 0x56d   :  { %1651 = vmatprep.subr.bf16.mxu0 %v3797_v13  ;;  %1692 = vmatprep.subr.bf16.mxu1 %v3800_v54 }
 0x570   :  { %1652 = vmatpush1.bf16.msra.mxu0 %v3803_v53  ;;  %1693 = vmatpush1.bf16.msra.mxu1 %v3806_v1 }
 0x571   :  { %1653 = vmatprep.subr.bf16.mxu0 %v3809_v55  ;;  %1694 = vmatprep.subr.bf16.mxu1 %v3812_v2 }
 0x574   :  { %1654 = vmatpush1.bf16.msra.mxu0 %v3815_v58  ;;  %1695 = vmatpush1.bf16.msra.mxu1 %v3818_v3 }
 0x575   :  { %1655 = vmatprep.subr.bf16.mxu0 %v3821_v8  ;;  %1696 = vmatprep.subr.bf16.mxu1 %v3824_v51 }
 0x578   :  { %1656 = vmatpush1.bf16.msra.mxu0 %v3827_v48  ;;  %1697 = vmatpush1.bf16.msra.mxu1 %v3830_v29 }
 0x579   :  { %1657 = vmatprep.subr.bf16.mxu0 %v3833_v30  ;;  %1698 = vmatprep.subr.bf16.mxu1 %v3836_v31 }
 0x57c   :  { %1658 = vmatpush1.bf16.msra.mxu0 %v3839_v32  ;;  %1699 = vmatpush1.bf16.msra.mxu1 %v3842_v33 }
 0x57d   :  { %1659 = vmatprep.subr.bf16.mxu0 %v3845_v34  ;;  %1700 = vmatprep.subr.bf16.mxu1 %v3848_v57 }
 0x580   :  { %1660 = vmatpush1.bf16.msra.mxu0 %v3851_v35  ;;  %1701 = vmatpush1.bf16.msra.mxu1 %v3854_v47 }
 0x581   :  { %1661 = vmatprep.subr.bf16.mxu0 %v3857_v6  ;;  %1702 = vmatprep.subr.bf16.mxu1 %v3860_v36  ;;  %v5260_v6 = vld [vmem:[#allocation102_spill] sm:$0xff]  ;;  %v5261_v36 = vld [vmem:[#allocation16_spill] sm:$0xff] }
 0x584   :  { %1662 = vmatpush1.bf16.msra.mxu0 %v3863_v59  ;;  %1703 = vmatpush1.bf16.msra.mxu1 %v3866_v60  ;;  %v5262_v59 = vld [vmem:[#allocation17_spill] sm:$0xff]  ;;  %v5263_v60 = vld [vmem:[#allocation18_spill] sm:$0xff] }
 0x585   :  { %1663 = vmatprep.subr.bf16.mxu0 %v3869_v9  ;;  %1704 = vmatprep.subr.bf16.mxu1 %v3872_v62  ;;  %v5264_v9 = vld [vmem:[#allocation19_spill] sm:$0xff]  ;;  %v5265_v62 = vld [vmem:[#allocation20_spill] sm:$0xff] }
 0x588   :  { %1664 = vmatpush1.bf16.msra.mxu0 %v3875_v4  ;;  %1705 = vmatpush1.bf16.msra.mxu1 %v3878_v61  ;;  %v5266_v4 = vld [vmem:[#allocation21_spill] sm:$0xff]  ;;  %v5267_v61 = vld [vmem:[#allocation22_spill] sm:$0xff] }
 0x589   :  { %1665 = vmatprep.subr.bf16.mxu0 %v3881_v37  ;;  %1706 = vmatprep.subr.bf16.mxu1 %v3884_v38  ;;  %v5268_v37 = vld [vmem:[#allocation23_spill] sm:$0xff]  ;;  %v5269_v38 = vld [vmem:[#allocation24_spill] sm:$0xff] }
 0x58c   :  { %1666 = vmatpush1.bf16.msra.mxu0 %v5259_v49  ;;  %1707 = vmatpush1.bf16.msra.mxu1 %v5260_v6  ;;  %v5270_v49 = vld [vmem:[#allocation25_spill] sm:$0xff]  ;;  %v5271_v6 = vld [vmem:[#allocation26_spill] sm:$0xff] }
 0x58d   :  { %1667 = vmatprep.subr.bf16.mxu0 %v5261_v36  ;;  %1708 = vmatprep.subr.bf16.mxu1 %v5262_v59  ;;  %v5272_v36 = vld [vmem:[#allocation27_spill] sm:$0xff]  ;;  %v5273_v59 = vld [vmem:[#allocation28_spill] sm:$0xff] }
 0x590   :  { %1668 = vmatpush1.bf16.msra.mxu0 %v5263_v60  ;;  %1709 = vmatpush1.bf16.msra.mxu1 %v5264_v9  ;;  %v5274_v60 = vld [vmem:[#allocation29_spill] sm:$0xff]  ;;  %v5275_v9 = vld [vmem:[#allocation30_spill] sm:$0xff] }
 0x591   :  { %1669 = vmatprep.subr.bf16.mxu0 %v5265_v62  ;;  %1710 = vmatprep.subr.bf16.mxu1 %v5266_v4  ;;  %v5276_v62 = vld [vmem:[#allocation31_spill] sm:$0xff]  ;;  %v5277_v4 = vld [vmem:[#allocation32_spill] sm:$0xff] }
 0x594   :  { %1670 = vmatpush1.bf16.msra.mxu0 %v5267_v61  ;;  %1711 = vmatpush1.bf16.msra.mxu1 %v5268_v37  ;;  %v5278_v61 = vld [vmem:[#allocation33_spill] sm:$0xff]  ;;  %v5279_v37 = vld [vmem:[#allocation34_spill] sm:$0xff] }
 0x595   :  { %1671 = vmatprep.subr.bf16.mxu0 %v5269_v38  ;;  %1712 = vmatprep.subr.bf16.mxu1 %v5270_v49  ;;  %v5280_v38 = vld [vmem:[#allocation35_spill] sm:$0xff]  ;;  %v5281_v49 = vld [vmem:[#allocation36_spill] sm:$0xff] }
 0x598   :  { %1672 = vmatpush1.bf16.msra.mxu0 %v5271_v6  ;;  %1713 = vmatpush1.bf16.msra.mxu1 %v5272_v36  ;;  %v5282_v6 = vld [vmem:[#allocation37_spill] sm:$0xff]  ;;  %v5283_v36 = vld [vmem:[#allocation38_spill] sm:$0xff] }
 0x599   :  { %1673 = vmatprep.subr.bf16.mxu0 %v5273_v59  ;;  %1714 = vmatprep.subr.bf16.mxu1 %v5274_v60  ;;  %v5284_v59 = vld [vmem:[#allocation39_spill] sm:$0xff]  ;;  %v5285_v60 = vld [vmem:[#allocation40_spill] sm:$0xff] }
 0x59c   :  { %1674 = vmatpush1.bf16.msra.mxu0 %v5275_v9  ;;  %1715 = vmatpush1.bf16.msra.mxu1 %v5276_v62  ;;  %v5286_v9 = vld [vmem:[#allocation41_spill] sm:$0xff] }
 0x59d   :  { %1675 = vmatprep.subr.bf16.mxu0 %v5277_v4  ;;  %1716 = vmatprep.subr.bf16.mxu1 %v5278_v61 }
 0x5a0   :  { %1676 = vmatpush1.bf16.msra.mxu0 %v5279_v37  ;;  %1717 = vmatpush1.bf16.msra.mxu1 %v5280_v38 }
 0x5a1   :  { %1677 = vmatprep.subr.bf16.mxu0 %v5281_v49  ;;  %1718 = vmatprep.subr.bf16.mxu1 %v5282_v6 }
 0x5a4   :  { %1678 = vmatpush1.bf16.msra.mxu0 %v5283_v36  ;;  %1719 = vmatpush1.bf16.msra.mxu1 %v5284_v59 }
 0x5a5   :  { %1729 = vmatprep.subr.bf16.mxu0 %v5285_v60  ;;  %1770 = vmatprep.subr.bf16.mxu1 %v5286_v9 }
 0x5fa   :  { %v1422_v62 = vpop.f32.mrb[24].mxu0  ;;  %v1463_v4 = vpop.f32.mrb[32].mxu1 }
 0x5fb   :  { %v1424_v47 = vpop.f32.mrb[25].mxu0  ;;  %v1465_v61 = vpop.f32.mrb[33].mxu1 }
 0x5fc   :  { %v1560_v35 = vcombine.low %v1422_v62, %v1424_v47  ;;  %v1561_v37 = vcombine.low %v1463_v4, %v1465_v61  ;;  %v1426_v57 = vpop.f32.mrb[26].mxu0  ;;  %v1467_v38 = vpop.f32.mrb[34].mxu1  ;;  %v1372_v62 = vld [vmem:[#allocation2 + $0x4] ss:$8 sm:$0xf] }
 0x5fd   :  { %v1427_v34 = vpop.f32.mrb[27].mxu0  ;;  %v1468_v49 = vpop.f32.mrb[35].mxu1  ;;  %v1373_v4 = vld [vmem:[#allocation2 + $0x4] ss:$8 sm:$0xf0] }
 0x5fe   :  { %v1570_v6 = vrot.slane %v1560_v35, %v3542_v56  ;;  %v1577_v36 = vrot.slane %v1561_v37, %v3542_v56 }
 0x600   :  { %v1592_v33 = vcombine.low %v1570_v6, %v1577_v36  ;;  %v1374_v6 = vor.u32 %v1373_v4, %v1372_v62 }
 0x602   :  { %v1600_v61 = vrot.slane %v1592_v33, %v3542_v56 }
 0x63a   :  { %v1504_v59 = vpop.f32.mrb[28].mxu0  ;;  %v1545_v32 = vpop.f32.mrb[36].mxu1 }
 0x63b   :  { %v1506_v60 = vpop.f32.mrb[29].mxu0  ;;  %v1547_v31 = vpop.f32.mrb[37].mxu1 }
 0x63c   :  { %v1562_v9 = vcombine.low %v1504_v59, %v1506_v60  ;;  %v1563_v30 = vcombine.low %v1545_v32, %v1547_v31  ;;  %v1508_v29 = vpop.f32.mrb[30].mxu0  ;;  %v1549_v48 = vpop.f32.mrb[38].mxu1 }
 0x63d   :  { %v1509_v51 = vpop.f32.mrb[31].mxu0  ;;  %v1550_v47 = vpop.f32.mrb[39].mxu1 }
 0x63e   :  { %v1584_v57 = vrot.slane %v1562_v9, %v3542_v56  ;;  %v1591_v34 = vrot.slane %v1563_v30, %v3542_v56 }
 0x640   :  { %v1593_v35 = vcombine.low %v1584_v57, %v1591_v34 }
 0x642   :  { %v1607_v36 = vrot.slane %v1593_v35, %v3542_v56 }
 0x644   :  { %v1608_v37 = vcombine.low %v1600_v61, %v1607_v36  ;;  %v5288_v36 = vld [vmem:[#allocation43_spill] sm:$0xff] }
 0x646   :  { %v1610_v38 = vadd.f32 %v1608_v37, %v1374_v6  ;;  %v5289_v37 = vld [vmem:[#allocation44_spill] sm:$0xff] }
 0x648   :  { %2674 = vtanh.f32 %v1610_v38  ;;  %v5290_v38 = vld [vmem:[#allocation45_spill] sm:$0xff] }
 0x652   :  { %v2675_v31 = vpop.eup %2674 }
 0x653   :  { %v1612_v29 = vmul.f32 0.5, %v2675_v31  ;;  %v1615_v48 = vrot.slane %v2675_v31, 2  ;;  %v1624_v60 = vrot.slane %v2675_v31, 4  ;;  %v1619_v33 = vrot.slane %v2675_v31, 6  ;;  %v5291_v31 = vld [vmem:[#allocation46_spill] sm:$0xff] }
 0x655   :  { %v1613_v51 = vadd.f32 0.5, %v1612_v29  ;;  %v1617_v32 = vmul.f32 0.5, %v1615_v48  ;;  %v1621_v47 = vmul.f32 0.5, %v1619_v33  ;;  %v5292_v29 = vld [vmem:[#allocation47_spill] sm:$0xff]  ;;  %v5293_v48 = vld [vmem:[#allocation48_spill] sm:$0xff]  ;;  %v5300_v33 = vld [vmem:[#allocation62_spill] sm:$0xff] }
 0x657   :  { %v1618_v59 = vadd.f32 0.5, %v1617_v32  ;;  %v1626_v9 = vmul.f32 %v1624_v60, %v1613_v51  ;;  %v1622_v57 = vadd.f32 0.5, %v1621_v47  ;;  %v5294_v51 = vld [vmem:[#allocation49_spill] sm:$0xff]  ;;  %v5297_v60 = vld [vmem:[#allocation59_spill] sm:$0xff] }
 0x658   :  { %v5295_v32 = vld [vmem:[#allocation57_spill] sm:$0xff]  ;;  %v5301_v47 = vld [vmem:[#allocation63_spill] sm:$0xff] }
 0x659   :  { %v1623_v30 = vmul.f32 %v1618_v59, %v3978_v28  ;;  %v5287_v28 = vld [vmem:[#allocation42_spill] sm:$0xff] }
 0x65a   :  { %v5296_v59 = vld [vmem:[#allocation58_spill] sm:$0xff] }
 0x65b   :  { %v4248_v49 = vadd.f32 %v1626_v9, %v1623_v30  ;;  %v5298_v30 = vld [vmem:[#allocation60_spill] sm:$0xff]  ;;  %v5299_v9 = vld [vmem:[#allocation61_spill] sm:$0xff] }
 0x65d   :  { %2676 = vtanh.f32 %v4248_v49 }
 0x667   :  { %v2677_v34 = vpop.eup %2676 }
 0x668   :  { %v1629_v62 = vmul.f32 %v2677_v34, %v1622_v57  ;;  %v5302_v57 = vld [vmem:[#allocation64_spill] sm:$0xff]  ;;  %v5303_v34 = vld [vmem:[#allocation65_spill] sm:$0xff] }
 0x66a   :  { %v1642_v4 = vrot.slane %v1629_v62, %v5041_v5  ;;  %v1638_v35 = vrot.slane %v1629_v62, %v5042_v50  ;;  %v5304_v62 = vld [vmem:[#allocation66_spill] sm:$0xff] }
 0x66c   :  { %v1646_v61 = vpack.c.bf16 %v1642_v4, %v1642_v4  ;;  %v4253_v6 = vpack.c.bf16 %v1638_v35, %v1638_v35  ;;  %v5305_v4 = vld [vmem:[#allocation67_spill] sm:$0xff]  ;;  %v5306_v35 = vld [vmem:[#allocation68_spill] sm:$0xff] }
 0x66e   :  { %1679 = vmatprep.mubr.bf16.mxu0 %v1646_v61  ;;  %1720 = vmatprep.mubr.bf16.mxu1 %v1646_v61 }
 0x66f   :  { %1680 = vmatmul.mubr.bf16.vlgmr.msra.gmra.mrb[32].mxu0 %v4253_v6  ;;  %1721 = vmatmul.mubr.bf16.vlgmr.msra.gmra.mrb[40].mxu1 %v4253_v6 }
 0x670   :  { %1730 = vmatpush1.bf16.msra.mxu0 %v3987_v25  ;;  %1771 = vmatpush1.bf16.msra.mxu1 %v3990_v22 }
 0x671   :  { %1761 = vmatprep.mubr.bf16.mxu0 %v1646_v61  ;;  %1802 = vmatprep.mubr.bf16.mxu1 %v1646_v61  ;;  %v5307_v61 = vld [vmem:[#allocation69_spill] sm:$0xff] }
 0x672   :  { %1731 = vmatprep.subr.bf16.mxu0 %v3993_v23  ;;  %1772 = vmatprep.subr.bf16.mxu1 %v3996_v24 }
 0x674   :  { %1732 = vmatpush1.bf16.msra.mxu0 %v3999_v43  ;;  %1773 = vmatpush1.bf16.msra.mxu1 %v4002_v41 }
 0x675   :  { %1733 = vmatprep.subr.bf16.mxu0 %v4005_v40  ;;  %1774 = vmatprep.subr.bf16.mxu1 %v4008_v39 }
 0x678   :  { %1734 = vmatpush1.bf16.msra.mxu0 %v4011_v44  ;;  %1775 = vmatpush1.bf16.msra.mxu1 %v4014_v45 }
 0x679   :  { %1735 = vmatprep.subr.bf16.mxu0 %v4017_v26  ;;  %1776 = vmatprep.subr.bf16.mxu1 %v4020_v42 }
 0x67c   :  { %1736 = vmatpush1.bf16.msra.mxu0 %v4023_v27  ;;  %1777 = vmatpush1.bf16.msra.mxu1 %v4026_v46 }
 0x67d   :  { %1737 = vmatprep.subr.bf16.mxu0 %v4029_v20  ;;  %1778 = vmatprep.subr.bf16.mxu1 %v5287_v28 }
 0x680   :  { %1738 = vmatpush1.bf16.msra.mxu0 %v5288_v36  ;;  %1779 = vmatpush1.bf16.msra.mxu1 %v5289_v37 }
 0x681   :  { %1739 = vmatprep.subr.bf16.mxu0 %v5290_v38  ;;  %1780 = vmatprep.subr.bf16.mxu1 %v5291_v31 }
 0x684   :  { %1740 = vmatpush1.bf16.msra.mxu0 %v5292_v29  ;;  %1781 = vmatpush1.bf16.msra.mxu1 %v5293_v48 }
 0x685   :  { %1741 = vmatprep.subr.bf16.mxu0 %v5294_v51  ;;  %1782 = vmatprep.subr.bf16.mxu1 %v5295_v32 }
 0x688   :  { %1742 = vmatpush1.bf16.msra.mxu0 %v5296_v59  ;;  %1783 = vmatpush1.bf16.msra.mxu1 %v5297_v60  ;;  %v5308_v60 = vld [vmem:[#allocation70_spill] sm:$0xff] }
 0x689   :  { %1743 = vmatprep.subr.bf16.mxu0 %v5298_v30  ;;  %1784 = vmatprep.subr.bf16.mxu1 %v5299_v9  ;;  %v5309_v30 = vld [vmem:[#allocation71_spill] sm:$0xff]  ;;  %v5310_v9 = vld [vmem:[#allocation72_spill] sm:$0xff] }
 0x68c   :  { %1744 = vmatpush1.bf16.msra.mxu0 %v5300_v33  ;;  %1785 = vmatpush1.bf16.msra.mxu1 %v5301_v47  ;;  %v5311_v33 = vld [vmem:[#allocation73_spill] sm:$0xff]  ;;  %v5312_v47 = vld [vmem:[#allocation74_spill] sm:$0xff] }
 0x68d   :  { %1745 = vmatprep.subr.bf16.mxu0 %v5302_v57  ;;  %1786 = vmatprep.subr.bf16.mxu1 %v5303_v34  ;;  %v5313_v57 = vld [vmem:[#allocation75_spill] sm:$0xff]  ;;  %v5314_v34 = vld [vmem:[#allocation76_spill] sm:$0xff] }
 0x690   :  { %1746 = vmatpush1.bf16.msra.mxu0 %v5304_v62  ;;  %1787 = vmatpush1.bf16.msra.mxu1 %v5305_v4  ;;  %v5315_v62 = vld [vmem:[#allocation77_spill] sm:$0xff]  ;;  %v5316_v4 = vld [vmem:[#allocation78_spill] sm:$0xff] }
 0x691   :  { %1747 = vmatprep.subr.bf16.mxu0 %v5306_v35  ;;  %1788 = vmatprep.subr.bf16.mxu1 %v5307_v61  ;;  %v5317_v35 = vld [vmem:[#allocation79_spill] sm:$0xff]  ;;  %v5318_v61 = vld [vmem:[#allocation80_spill] sm:$0xff] }
 0x694   :  { %1748 = vmatpush1.bf16.msra.mxu0 %v5308_v60  ;;  %1789 = vmatpush1.bf16.msra.mxu1 %v5309_v30  ;;  %v5319_v60 = vld [vmem:[#allocation81_spill] sm:$0xff]  ;;  %v5320_v30 = vld [vmem:[#allocation82_spill] sm:$0xff] }
 0x695   :  { %1749 = vmatprep.subr.bf16.mxu0 %v5310_v9  ;;  %1790 = vmatprep.subr.bf16.mxu1 %v5311_v33  ;;  %v5321_v9 = vld [vmem:[#allocation83_spill] sm:$0xff]  ;;  %v5322_v33 = vld [vmem:[#allocation84_spill] sm:$0xff] }
 0x698   :  { %1750 = vmatpush1.bf16.msra.mxu0 %v5312_v47  ;;  %1791 = vmatpush1.bf16.msra.mxu1 %v5313_v57  ;;  %v5323_v47 = vld [vmem:[#allocation85_spill] sm:$0xff]  ;;  %v5324_v57 = vld [vmem:[#allocation86_spill] sm:$0xff] }
 0x699   :  { %1751 = vmatprep.subr.bf16.mxu0 %v5314_v34  ;;  %1792 = vmatprep.subr.bf16.mxu1 %v5315_v62  ;;  %v5325_v34 = vld [vmem:[#allocation87_spill] sm:$0xff]  ;;  %v5326_v62 = vld [vmem:[#allocation88_spill] sm:$0xff] }
 0x69c   :  { %1752 = vmatpush1.bf16.msra.mxu0 %v5316_v4  ;;  %1793 = vmatpush1.bf16.msra.mxu1 %v5317_v35  ;;  %v5327_v4 = vld [vmem:[#allocation89_spill] sm:$0xff] }
 0x69d   :  { %1753 = vmatprep.subr.bf16.mxu0 %v5318_v61  ;;  %1794 = vmatprep.subr.bf16.mxu1 %v5319_v60 }
 0x6a0   :  { %1754 = vmatpush1.bf16.msra.mxu0 %v5320_v30  ;;  %1795 = vmatpush1.bf16.msra.mxu1 %v5321_v9 }
 0x6a1   :  { %1755 = vmatprep.subr.bf16.mxu0 %v5322_v33  ;;  %1796 = vmatprep.subr.bf16.mxu1 %v5323_v47 }
 0x6a4   :  { %1756 = vmatpush1.bf16.msra.mxu0 %v5324_v57  ;;  %1797 = vmatpush1.bf16.msra.mxu1 %v5325_v34 }
 0x6a5   :  { %1757 = vmatprep.subr.bf16.mxu0 %v5326_v62  ;;  %1798 = vmatprep.subr.bf16.mxu1 %v5327_v4 }
 0x6a8   :  { %1758 = vmatpush1.bf16.msra.mxu0 %v4155_v18  ;;  %1799 = vmatpush1.bf16.msra.mxu1 %v4158_v17 }
 0x6a9   :  { %1759 = vmatprep.subr.bf16.mxu0 %v4161_v16  ;;  %1800 = vmatprep.subr.bf16.mxu1 %v4164_v15 }
 0x6ac   :  { %1760 = vmatpush1.bf16.msra.mxu0 %v4167_v21  ;;  %1801 = vmatpush1.bf16.msra.mxu1 %v4170_v19 }
 0x6ad   :  { %1906 = vmatprep.subr.bf16.mxu0 %v3771_v52  ;;  %1947 = vmatprep.subr.bf16.mxu1 %v3774_v12  ;;  %v5328_v52 = vld [vmem:[#allocation11_spill] sm:$0xff] }
 0x6ae   :  { %v5329_v12 = vld [vmem:[#allocation15_spill] sm:$0xff] }
 0x6af   :  { %1762 = vmatmul.mubr.bf16.vlgmr.msra.gmra.mrb[36].mxu0 %v4253_v6  ;;  %1803 = vmatmul.mubr.bf16.vlgmr.msra.gmra.mrb[44].mxu1 %v4253_v6  ;;  %v5345_v6 = vld [vmem:[#allocation97_spill] sm:$0xff] }
 0x6b0   :  { %1907 = vmatpush1.bf16.msra.mxu0 %v3779_v11  ;;  %1948 = vmatpush1.bf16.msra.mxu1 %v3782_v14  ;;  %v5330_v11 = vld [vmem:[#allocation14_spill] sm:$0xff]  ;;  %v5331_v14 = vld [vmem:[#allocation13_spill] sm:$0xff] }
 0x6b1   :  { %1908 = vmatprep.subr.bf16.mxu0 %v3785_v63  ;;  %1949 = vmatprep.subr.bf16.mxu1 %v3788_v0  ;;  %v5332_v63 = vld [vmem:[#allocation12_spill] sm:$0xff]  ;;  %v5333_v0 = vld [vmem:[#allocation50_spill] sm:$0xff] }
 0x6b4   :  { %1909 = vmatpush1.bf16.msra.mxu0 %v3791_v7  ;;  %1950 = vmatpush1.bf16.msra.mxu1 %v3794_v10  ;;  %v5334_v7 = vld [vmem:[#allocation51_spill] sm:$0xff]  ;;  %v5335_v10 = vld [vmem:[#allocation52_spill] sm:$0xff] }
 0x6b5   :  { %1910 = vmatprep.subr.bf16.mxu0 %v3797_v13  ;;  %1951 = vmatprep.subr.bf16.mxu1 %v3800_v54  ;;  %v5336_v13 = vld [vmem:[#allocation53_spill] sm:$0xff]  ;;  %v5337_v54 = vld [vmem:[#allocation54_spill] sm:$0xff] }
 0x6b8   :  { %1911 = vmatpush1.bf16.msra.mxu0 %v3803_v53  ;;  %1952 = vmatpush1.bf16.msra.mxu1 %v3806_v1  ;;  %v5338_v53 = vld [vmem:[#allocation55_spill] sm:$0xff]  ;;  %v5339_v1 = vld [vmem:[#allocation56_spill] sm:$0xff] }
 0x6b9   :  { %1912 = vmatprep.subr.bf16.mxu0 %v3809_v55  ;;  %1953 = vmatprep.subr.bf16.mxu1 %v3812_v2  ;;  %v5340_v55 = vld [vmem:[#allocation90_spill] sm:$0xff]  ;;  %v5341_v2 = vld [vmem:[#allocation93_spill] sm:$0xff] }
 0x6bc   :  { %1913 = vmatpush1.bf16.msra.mxu0 %v3815_v58  ;;  %1954 = vmatpush1.bf16.msra.mxu1 %v3818_v3  ;;  %v5342_v58 = vld [vmem:[#allocation94_spill] sm:$0xff]  ;;  %v5343_v3 = vld [vmem:[#allocation95_spill] sm:$0xff] }
 0x6bd   :  { %1914 = vmatprep.subr.bf16.mxu0 %v3821_v8  ;;  %1955 = vmatprep.subr.bf16.mxu1 %v5328_v52  ;;  %v5344_v8 = vld [vmem:[#allocation96_spill] sm:$0xff]  ;;  %v5346_v52 = vld [vmem:[#allocation98_spill] sm:$0xff] }
 0x6c0   :  { %1915 = vmatpush1.bf16.msra.mxu0 %v5329_v12  ;;  %1956 = vmatpush1.bf16.msra.mxu1 %v5330_v11  ;;  %v5347_v12 = vld [vmem:[#allocation99_spill] sm:$0xff]  ;;  %v5348_v11 = vld [vmem:[#allocation100_spill] sm:$0xff] }
 0x6c1   :  { %1916 = vmatprep.subr.bf16.mxu0 %v5331_v14  ;;  %1957 = vmatprep.subr.bf16.mxu1 %v5332_v63  ;;  %v5349_v14 = vld [vmem:[#allocation101_spill] sm:$0xff]  ;;  %v5350_v63 = vld [vmem:[#allocation102_spill] sm:$0xff] }
 0x6c4   :  { %1917 = vmatpush1.bf16.msra.mxu0 %v5333_v0  ;;  %1958 = vmatpush1.bf16.msra.mxu1 %v5334_v7  ;;  %v5351_v0 = vld [vmem:[#allocation16_spill] sm:$0xff]  ;;  %v5352_v7 = vld [vmem:[#allocation17_spill] sm:$0xff] }
 0x6c5   :  { %1918 = vmatprep.subr.bf16.mxu0 %v5335_v10  ;;  %1959 = vmatprep.subr.bf16.mxu1 %v5336_v13  ;;  %v5353_v10 = vld [vmem:[#allocation18_spill] sm:$0xff]  ;;  %v5354_v13 = vld [vmem:[#allocation19_spill] sm:$0xff] }
 0x6c8   :  { %1919 = vmatpush1.bf16.msra.mxu0 %v5337_v54  ;;  %1960 = vmatpush1.bf16.msra.mxu1 %v5338_v53  ;;  %v5355_v54 = vld [vmem:[#allocation20_spill] sm:$0xff]  ;;  %v5356_v53 = vld [vmem:[#allocation21_spill] sm:$0xff] }
 0x6c9   :  { %1920 = vmatprep.subr.bf16.mxu0 %v5339_v1  ;;  %1961 = vmatprep.subr.bf16.mxu1 %v5340_v55  ;;  %v5357_v1 = vld [vmem:[#allocation22_spill] sm:$0xff]  ;;  %v5358_v55 = vld [vmem:[#allocation23_spill] sm:$0xff] }
 0x6cc   :  { %1921 = vmatpush1.bf16.msra.mxu0 %v5341_v2  ;;  %1962 = vmatpush1.bf16.msra.mxu1 %v5342_v58  ;;  %v5359_v2 = vld [vmem:[#allocation24_spill] sm:$0xff]  ;;  %v5360_v58 = vld [vmem:[#allocation25_spill] sm:$0xff] }
 0x6cd   :  { %1922 = vmatprep.subr.bf16.mxu0 %v5343_v3  ;;  %1963 = vmatprep.subr.bf16.mxu1 %v5344_v8  ;;  %v5361_v3 = vld [vmem:[#allocation26_spill] sm:$0xff]  ;;  %v5362_v8 = vld [vmem:[#allocation27_spill] sm:$0xff] }
 0x6d0   :  { %1923 = vmatpush1.bf16.msra.mxu0 %v5345_v6  ;;  %1964 = vmatpush1.bf16.msra.mxu1 %v5346_v52  ;;  %v5363_v6 = vld [vmem:[#allocation28_spill] sm:$0xff]  ;;  %v5364_v52 = vld [vmem:[#allocation29_spill] sm:$0xff] }
 0x6d1   :  { %1924 = vmatprep.subr.bf16.mxu0 %v5347_v12  ;;  %1965 = vmatprep.subr.bf16.mxu1 %v5348_v11  ;;  %v5365_v12 = vld [vmem:[#allocation30_spill] sm:$0xff]  ;;  %v5366_v11 = vld [vmem:[#allocation31_spill] sm:$0xff] }
 0x6d4   :  { %1925 = vmatpush1.bf16.msra.mxu0 %v5349_v14  ;;  %1966 = vmatpush1.bf16.msra.mxu1 %v5350_v63  ;;  %v5367_v14 = vld [vmem:[#allocation32_spill] sm:$0xff]  ;;  %v5368_v63 = vld [vmem:[#allocation33_spill] sm:$0xff] }
 0x6d5   :  { %1926 = vmatprep.subr.bf16.mxu0 %v5351_v0  ;;  %1967 = vmatprep.subr.bf16.mxu1 %v5352_v7  ;;  %v5369_v0 = vld [vmem:[#allocation34_spill] sm:$0xff]  ;;  %v5370_v7 = vld [vmem:[#allocation35_spill] sm:$0xff] }
 0x6d8   :  { %1927 = vmatpush1.bf16.msra.mxu0 %v5353_v10  ;;  %1968 = vmatpush1.bf16.msra.mxu1 %v5354_v13  ;;  %v5371_v10 = vld [vmem:[#allocation36_spill] sm:$0xff]  ;;  %v5372_v13 = vld [vmem:[#allocation37_spill] sm:$0xff] }
 0x6d9   :  { %1928 = vmatprep.subr.bf16.mxu0 %v5355_v54  ;;  %1969 = vmatprep.subr.bf16.mxu1 %v5356_v53  ;;  %v5373_v54 = vld [vmem:[#allocation38_spill] sm:$0xff]  ;;  %v5374_v53 = vld [vmem:[#allocation39_spill] sm:$0xff] }
 0x6dc   :  { %1929 = vmatpush1.bf16.msra.mxu0 %v5357_v1  ;;  %1970 = vmatpush1.bf16.msra.mxu1 %v5358_v55  ;;  %v5375_v1 = vld [vmem:[#allocation40_spill] sm:$0xff]  ;;  %v5376_v55 = vld [vmem:[#allocation41_spill] sm:$0xff] }
 0x6dd   :  { %1930 = vmatprep.subr.bf16.mxu0 %v5359_v2  ;;  %1971 = vmatprep.subr.bf16.mxu1 %v5360_v58 }
 0x6e0   :  { %1931 = vmatpush1.bf16.msra.mxu0 %v5361_v3  ;;  %1972 = vmatpush1.bf16.msra.mxu1 %v5362_v8 }
 0x6e1   :  { %1932 = vmatprep.subr.bf16.mxu0 %v5363_v6  ;;  %1973 = vmatprep.subr.bf16.mxu1 %v5364_v52 }
 0x6e4   :  { %1933 = vmatpush1.bf16.msra.mxu0 %v5365_v12  ;;  %1974 = vmatpush1.bf16.msra.mxu1 %v5366_v11 }
 0x6e5   :  { %1934 = vmatprep.subr.bf16.mxu0 %v5367_v14  ;;  %1975 = vmatprep.subr.bf16.mxu1 %v5368_v63 }
 0x6e8   :  { %1935 = vmatpush1.bf16.msra.mxu0 %v5369_v0  ;;  %1976 = vmatpush1.bf16.msra.mxu1 %v5370_v7 }
 0x6e9   :  { %1936 = vmatprep.subr.bf16.mxu0 %v5371_v10  ;;  %1977 = vmatprep.subr.bf16.mxu1 %v5372_v13 }
 0x6ec   :  { %1937 = vmatpush1.bf16.msra.mxu0 %v5373_v54  ;;  %1978 = vmatpush1.bf16.msra.mxu1 %v5374_v53 }
 0x6ed   :  { %1988 = vmatprep.subr.bf16.mxu0 %v5375_v1  ;;  %2029 = vmatprep.subr.bf16.mxu1 %v5376_v55 }
 0x742   :  { %v1681_v2 = vpop.f32.mrb[32].mxu0  ;;  %v1722_v58 = vpop.f32.mrb[40].mxu1 }
 0x743   :  { %v1683_v3 = vpop.f32.mrb[33].mxu0  ;;  %v1724_v8 = vpop.f32.mrb[41].mxu1 }
 0x744   :  { %v1819_v6 = vcombine.low %v1681_v2, %v1683_v3  ;;  %v1820_v52 = vcombine.low %v1722_v58, %v1724_v8  ;;  %v1685_v12 = vpop.f32.mrb[34].mxu0  ;;  %v1726_v11 = vpop.f32.mrb[42].mxu1  ;;  %v1631_v8 = vld [vmem:[#allocation2 + $0x5] ss:$8 sm:$0xf] }
 0x745   :  { %v1686_v14 = vpop.f32.mrb[35].mxu0  ;;  %v1727_v63 = vpop.f32.mrb[43].mxu1  ;;  %v1632_v12 = vld [vmem:[#allocation2 + $0x5] ss:$8 sm:$0xf0] }
 0x746   :  { %v1829_v0 = vrot.slane %v1819_v6, %v3542_v56  ;;  %v1836_v7 = vrot.slane %v1820_v52, %v3542_v56  ;;  %v1633_v11 = vor.u32 %v1632_v12, %v1631_v8 }
 0x748   :  { %v1851_v10 = vcombine.low %v1829_v0, %v1836_v7 }
 0x74a   :  { %v1859_v52 = vrot.slane %v1851_v10, %v3542_v56 }
 0x782   :  { %v1763_v13 = vpop.f32.mrb[36].mxu0  ;;  %v1804_v54 = vpop.f32.mrb[44].mxu1 }
 0x783   :  { %v1765_v53 = vpop.f32.mrb[37].mxu0  ;;  %v1806_v1 = vpop.f32.mrb[45].mxu1 }
 0x784   :  { %v1821_v55 = vcombine.low %v1763_v13, %v1765_v53  ;;  %v1822_v19 = vcombine.low %v1804_v54, %v1806_v1  ;;  %v1767_v21 = vpop.f32.mrb[38].mxu0  ;;  %v1808_v15 = vpop.f32.mrb[46].mxu1 }
 0x785   :  { %v1768_v16 = vpop.f32.mrb[39].mxu0  ;;  %v1809_v2 = vpop.f32.mrb[47].mxu1 }
 0x786   :  { %v1843_v58 = vrot.slane %v1821_v55, %v3542_v56  ;;  %v1850_v3 = vrot.slane %v1822_v19, %v3542_v56 }
 0x788   :  { %v1852_v6 = vcombine.low %v1843_v58, %v1850_v3 }
 0x78a   :  { %v1866_v14 = vrot.slane %v1852_v6, %v3542_v56 }
 0x78c   :  { %v1867_v63 = vcombine.low %v1859_v52, %v1866_v14  ;;  %v2833_v14 = vld [vmem:[#allocation3 + $0xd0] sm:$0xff] }
 0x78e   :  { %v1869_v0 = vadd.f32 %v1867_v63, %v1633_v11  ;;  %v2834_v63 = vld [vmem:[#allocation3 + $0x108] sm:$0xff] }
 0x790   :  { %2678 = vtanh.f32 %v1869_v0  ;;  %v2835_v0 = vld [vmem:[#allocation3 + $0x118] sm:$0xff] }
 0x79a   :  { %v2679_v7 = vpop.eup %2678 }
 0x79b   :  { %v1871_v21 = vmul.f32 0.5, %v2679_v7  ;;  %v1874_v15 = vrot.slane %v2679_v7, 2  ;;  %v1883_v53 = vrot.slane %v2679_v7, 4  ;;  %v1878_v10 = vrot.slane %v2679_v7, 6  ;;  %v2836_v7 = vld [vmem:[#allocation3 + $0x100] sm:$0xff] }
 0x79d   :  { %v1872_v16 = vadd.f32 0.5, %v1871_v21  ;;  %v1876_v13 = vmul.f32 0.5, %v1874_v15  ;;  %v1880_v2 = vmul.f32 0.5, %v1878_v10  ;;  %v2837_v21 = vld [vmem:[#allocation3 + $0x110] sm:$0xff]  ;;  %v2838_v15 = vld [vmem:[#allocation3 + $0x148] sm:$0xff] }
 0x79e   :  { %v2845_v10 = vld [vmem:[#allocation3 + $0x190] sm:$0xff] }
 0x79f   :  { %v1877_v54 = vadd.f32 0.5, %v1876_v13  ;;  %v1885_v1 = vmul.f32 %v1883_v53, %v1872_v16  ;;  %v1881_v58 = vadd.f32 0.5, %v1880_v2  ;;  %v2839_v16 = vld [vmem:[#allocation3 + $0x158] sm:$0xff]  ;;  %v2840_v13 = vld [vmem:[#allocation3 + $0x140] sm:$0xff]  ;;  %v2842_v53 = vld [vmem:[#allocation3 + $0x188] sm:$0xff] }
 0x7a0   :  { %v2846_v2 = vld [vmem:[#allocation3 + $0x1c8] sm:$0xff] }
 0x7a1   :  { %v1882_v19 = vmul.f32 %v1877_v54, %v4248_v49  ;;  %v5392_v49 = vld [vmem:[#allocation74_spill] sm:$0xff]  ;;  %v2841_v54 = vld [vmem:[#allocation3 + $0x150] sm:$0xff] }
 0x7a3   :  { %v4394_v55 = vadd.f32 %v1885_v1, %v1882_v19  ;;  %v2843_v19 = vld [vmem:[#allocation3 + $0x198] sm:$0xff]  ;;  %v2844_v1 = vld [vmem:[#allocation3 + $0x180] sm:$0xff] }
 0x7a5   :  { %2680 = vtanh.f32 %v4394_v55 }
 0x7af   :  { %v2681_v3 = vpop.eup %2680 }
 0x7b0   :  { %v1888_v8 = vmul.f32 %v2681_v3, %v1881_v58  ;;  %v2847_v58 = vld [vmem:[#allocation3 + $0x1d8] sm:$0xff]  ;;  %v2848_v3 = vld [vmem:[#allocation3 + $0x1c0] sm:$0xff] }
 0x7b2   :  { %v1901_v12 = vrot.slane %v1888_v8, %v5041_v5  ;;  %v1897_v6 = vrot.slane %v1888_v8, %v5042_v50  ;;  %v2849_v8 = vld [vmem:[#allocation3 + $0x1d0] sm:$0xff] }
 0x7b4   :  { %v1905_v52 = vpack.c.bf16 %v1901_v12, %v1901_v12  ;;  %v4399_v11 = vpack.c.bf16 %v1897_v6, %v1897_v6  ;;  %v2850_v12 = vld [vmem:[#allocation3 + $0x208] sm:$0xff]  ;;  %v2851_v6 = vld [vmem:[#allocation3 + $0x218] sm:$0xff] }
 0x7b6   :  { %1938 = vmatprep.mubr.bf16.mxu0 %v1905_v52  ;;  %1979 = vmatprep.mubr.bf16.mxu1 %v1905_v52 }
 0x7b7   :  { %1939 = vmatmul.mubr.bf16.vlgmr.msra.gmra.mrb[40].mxu0 %v4399_v11  ;;  %1980 = vmatmul.mubr.bf16.vlgmr.msra.gmra.mrb[48].mxu1 %v4399_v11 }
 0x7b8   :  { %1989 = vmatpush1.bf16.msra.mxu0 %v3987_v25  ;;  %2030 = vmatpush1.bf16.msra.mxu1 %v3990_v22  ;;  %v5377_v25 = vld [vmem:[#allocation59_spill] sm:$0xff]  ;;  %v5378_v22 = vld [vmem:[#allocation60_spill] sm:$0xff] }
 0x7b9   :  { %2020 = vmatprep.mubr.bf16.mxu0 %v1905_v52  ;;  %2061 = vmatprep.mubr.bf16.mxu1 %v1905_v52  ;;  %v2852_v52 = vld [vmem:[#allocation3 + $0x200] sm:$0xff] }
 0x7ba   :  { %1990 = vmatprep.subr.bf16.mxu0 %v3993_v23  ;;  %2031 = vmatprep.subr.bf16.mxu1 %v3996_v24  ;;  %v5379_v23 = vld [vmem:[#allocation61_spill] sm:$0xff]  ;;  %v5380_v24 = vld [vmem:[#allocation62_spill] sm:$0xff] }
 0x7bc   :  { %1991 = vmatpush1.bf16.msra.mxu0 %v3999_v43  ;;  %2032 = vmatpush1.bf16.msra.mxu1 %v4002_v41  ;;  %v5381_v43 = vld [vmem:[#allocation63_spill] sm:$0xff]  ;;  %v5382_v41 = vld [vmem:[#allocation64_spill] sm:$0xff] }
 0x7bd   :  { %1992 = vmatprep.subr.bf16.mxu0 %v4005_v40  ;;  %2033 = vmatprep.subr.bf16.mxu1 %v4008_v39  ;;  %v5383_v40 = vld [vmem:[#allocation65_spill] sm:$0xff]  ;;  %v5384_v39 = vld [vmem:[#allocation66_spill] sm:$0xff] }
 0x7c0   :  { %1993 = vmatpush1.bf16.msra.mxu0 %v4011_v44  ;;  %2034 = vmatpush1.bf16.msra.mxu1 %v4014_v45  ;;  %v5385_v44 = vld [vmem:[#allocation67_spill] sm:$0xff]  ;;  %v5386_v45 = vld [vmem:[#allocation68_spill] sm:$0xff] }
 0x7c1   :  { %1994 = vmatprep.subr.bf16.mxu0 %v4017_v26  ;;  %2035 = vmatprep.subr.bf16.mxu1 %v4020_v42  ;;  %v5387_v26 = vld [vmem:[#allocation69_spill] sm:$0xff]  ;;  %v5388_v42 = vld [vmem:[#allocation70_spill] sm:$0xff] }
 0x7c4   :  { %1995 = vmatpush1.bf16.msra.mxu0 %v4023_v27  ;;  %2036 = vmatpush1.bf16.msra.mxu1 %v4026_v46  ;;  %v5389_v27 = vld [vmem:[#allocation71_spill] sm:$0xff]  ;;  %v5390_v46 = vld [vmem:[#allocation72_spill] sm:$0xff] }
 0x7c5   :  { %1996 = vmatprep.subr.bf16.mxu0 %v4029_v20  ;;  %2037 = vmatprep.subr.bf16.mxu1 %v5287_v28  ;;  %v5391_v20 = vld [vmem:[#allocation73_spill] sm:$0xff]  ;;  %v5393_v28 = vld [vmem:[#allocation75_spill] sm:$0xff] }
 0x7c8   :  { %1997 = vmatpush1.bf16.msra.mxu0 %v5288_v36  ;;  %2038 = vmatpush1.bf16.msra.mxu1 %v5289_v37  ;;  %v5394_v36 = vld [vmem:[#allocation76_spill] sm:$0xff]  ;;  %v5395_v37 = vld [vmem:[#allocation77_spill] sm:$0xff] }
 0x7c9   :  { %1998 = vmatprep.subr.bf16.mxu0 %v5290_v38  ;;  %2039 = vmatprep.subr.bf16.mxu1 %v5291_v31  ;;  %v5396_v38 = vld [vmem:[#allocation78_spill] sm:$0xff]  ;;  %v5397_v31 = vld [vmem:[#allocation91_spill] sm:$0xff] }
 0x7cc   :  { %1999 = vmatpush1.bf16.msra.mxu0 %v5292_v29  ;;  %2040 = vmatpush1.bf16.msra.mxu1 %v5293_v48  ;;  %v5398_v29 = vld [vmem:[#allocation92_spill] sm:$0xff]  ;;  %v5399_v48 = vld [vmem:[#allocation103_spill] sm:$0xff] }
 0x7cd   :  { %2000 = vmatprep.subr.bf16.mxu0 %v5294_v51  ;;  %2041 = vmatprep.subr.bf16.mxu1 %v5295_v32  ;;  %v5400_v51 = vld [vmem:[#allocation104_spill] sm:$0xff] }
 0x7ce   :  { %v2818_v32 = vld [vmem:[#allocation3 + $0x8] sm:$0xff] }
 0x7d0   :  { %2001 = vmatpush1.bf16.msra.mxu0 %v5296_v59  ;;  %2042 = vmatpush1.bf16.msra.mxu1 %v5377_v25  ;;  %v2819_v59 = vld [vmem:[#allocation3 + $0x18] sm:$0xff]  ;;  %v2854_v25 = vld [vmem:[#allocation3 + $0x248] sm:$0xff] }
 0x7d1   :  { %2002 = vmatprep.subr.bf16.mxu0 %v5378_v22  ;;  %2043 = vmatprep.subr.bf16.mxu1 %v5379_v23  ;;  %v2855_v22 = vld [vmem:[#allocation3 + $0x258] sm:$0xff]  ;;  %v2856_v23 = vld [vmem:[#allocation3 + $0x240] sm:$0xff] }
 0x7d4   :  { %2003 = vmatpush1.bf16.msra.mxu0 %v5380_v24  ;;  %2044 = vmatpush1.bf16.msra.mxu1 %v5381_v43  ;;  %v2857_v24 = vld [vmem:[#allocation3 + $0x250] sm:$0xff]  ;;  %v2858_v43 = vld [vmem:[#allocation3 + $0x288] sm:$0xff] }
 0x7d5   :  { %2004 = vmatprep.subr.bf16.mxu0 %v5382_v41  ;;  %2045 = vmatprep.subr.bf16.mxu1 %v5383_v40  ;;  %v2859_v41 = vld [vmem:[#allocation3 + $0x298] sm:$0xff]  ;;  %v2860_v40 = vld [vmem:[#allocation3 + $0x280] sm:$0xff] }
 0x7d8   :  { %2005 = vmatpush1.bf16.msra.mxu0 %v5384_v39  ;;  %2046 = vmatpush1.bf16.msra.mxu1 %v5385_v44  ;;  %v2861_v39 = vld [vmem:[#allocation3 + $0x290] sm:$0xff]  ;;  %v2862_v44 = vld [vmem:[#allocation3 + $0x2c8] sm:$0xff] }
 0x7d9   :  { %2006 = vmatprep.subr.bf16.mxu0 %v5386_v45  ;;  %2047 = vmatprep.subr.bf16.mxu1 %v5387_v26  ;;  %v2863_v45 = vld [vmem:[#allocation3 + $0x2d8] sm:$0xff]  ;;  %v2864_v26 = vld [vmem:[#allocation3 + $0x2c0] sm:$0xff] }
 0x7dc   :  { %2007 = vmatpush1.bf16.msra.mxu0 %v5388_v42  ;;  %2048 = vmatpush1.bf16.msra.mxu1 %v5389_v27  ;;  %v2865_v42 = vld [vmem:[#allocation3 + $0x2d0] sm:$0xff]  ;;  %v2866_v27 = vld [vmem:[#allocation3 + $0x308] sm:$0xff] }
 0x7dd   :  { %2008 = vmatprep.subr.bf16.mxu0 %v5390_v46  ;;  %2049 = vmatprep.subr.bf16.mxu1 %v5391_v20  ;;  %v2867_v46 = vld [vmem:[#allocation3 + $0x318] sm:$0xff]  ;;  %v2868_v20 = vld [vmem:[#allocation3 + $0x300] sm:$0xff] }
 0x7e0   :  { %2009 = vmatpush1.bf16.msra.mxu0 %v5392_v49  ;;  %2050 = vmatpush1.bf16.msra.mxu1 %v5393_v28  ;;  %v2869_v49 = vld [vmem:[#allocation3 + $0x310] sm:$0xff]  ;;  %v2870_v28 = vld [vmem:[#allocation3 + $0x348] sm:$0xff] }
 0x7e1   :  { %2010 = vmatprep.subr.bf16.mxu0 %v5394_v36  ;;  %2051 = vmatprep.subr.bf16.mxu1 %v5395_v37  ;;  %v2871_v36 = vld [vmem:[#allocation3 + $0x358] sm:$0xff]  ;;  %v2872_v37 = vld [vmem:[#allocation3 + $0x340] sm:$0xff] }
 0x7e4   :  { %2011 = vmatpush1.bf16.msra.mxu0 %v5396_v38  ;;  %2052 = vmatpush1.bf16.msra.mxu1 %v5317_v35  ;;  %v2831_v35 = vld [vmem:[#allocation3 + $0xd8] sm:$0xff]  ;;  %v2873_v38 = vld [vmem:[#allocation3 + $0x350] sm:$0xff] }
 0x7e5   :  { %2012 = vmatprep.subr.bf16.mxu0 %v5318_v61  ;;  %2053 = vmatprep.subr.bf16.mxu1 %v5319_v60  ;;  %v2820_v60 = vld [vmem:[#allocation3] sm:$0xff] }
 0x7e6   :  { %v2832_v61 = vld [vmem:[#allocation3 + $0xc0] sm:$0xff] }
 0x7e8   :  { %2013 = vmatpush1.bf16.msra.mxu0 %v5320_v30  ;;  %2054 = vmatpush1.bf16.msra.mxu1 %v5321_v9  ;;  %v2823_v30 = vld [vmem:[#allocation3 + $0x58] sm:$0xff]  ;;  %v2824_v9 = vld [vmem:[#allocation3 + $0x40] sm:$0xff] }
 0x7e9   :  { %2014 = vmatprep.subr.bf16.mxu0 %v5322_v33  ;;  %2055 = vmatprep.subr.bf16.mxu1 %v5323_v47  ;;  %v2825_v33 = vld [vmem:[#allocation3 + $0x50] sm:$0xff]  ;;  %v2826_v47 = vld [vmem:[#allocation3 + $0x88] sm:$0xff] }
 0x7ec   :  { %2015 = vmatpush1.bf16.msra.mxu0 %v5324_v57  ;;  %2056 = vmatpush1.bf16.msra.mxu1 %v5325_v34  ;;  %v2827_v57 = vld [vmem:[#allocation3 + $0x98] sm:$0xff]  ;;  %v2828_v34 = vld [vmem:[#allocation3 + $0x80] sm:$0xff] }
 0x7ed   :  { %2016 = vmatprep.subr.bf16.mxu0 %v5326_v62  ;;  %2057 = vmatprep.subr.bf16.mxu1 %v5327_v4  ;;  %v2829_v62 = vld [vmem:[#allocation3 + $0x90] sm:$0xff]  ;;  %v2830_v4 = vld [vmem:[#allocation3 + $0xc8] sm:$0xff] }
 0x7f0   :  { %2017 = vmatpush1.bf16.msra.mxu0 %v4155_v18  ;;  %2058 = vmatpush1.bf16.msra.mxu1 %v4158_v17  ;;  %v2821_v18 = vld [vmem:[#allocation3 + $0x10] sm:$0xff]  ;;  %v2822_v17 = vld [vmem:[#allocation3 + $0x48] sm:$0xff] }
 0x7f1   :  { %2018 = vmatprep.subr.bf16.mxu0 %v5397_v31  ;;  %2059 = vmatprep.subr.bf16.mxu1 %v5398_v29  ;;  %v2874_v31 = vld [vmem:[#allocation3 + $0x388] sm:$0xff]  ;;  %v2875_v29 = vld [vmem:[#allocation3 + $0x398] sm:$0xff] }
 0x7f4   :  { %2019 = vmatpush1.bf16.msra.mxu0 %v5399_v48  ;;  %2060 = vmatpush1.bf16.msra.mxu1 %v5400_v51  ;;  %v2876_v48 = vld [vmem:[#allocation3 + $0x380] sm:$0xff]  ;;  %v2877_v51 = vld [vmem:[#allocation3 + $0x390] sm:$0xff] }
 0x7f5   :  { %2165 = vmatprep.subr.bf16.mxu0 %v2818_v32  ;;  %2206 = vmatprep.subr.bf16.mxu1 %v2819_v59  ;;  %v2878_v32 = vld [vmem:[#allocation3 + $0x3c8] sm:$0xff]  ;;  %v2879_v59 = vld [vmem:[#allocation3 + $0x3d8] sm:$0xff] }
 0x7f7   :  { %2021 = vmatmul.mubr.bf16.vlgmr.msra.gmra.mrb[44].mxu0 %v4399_v11  ;;  %2062 = vmatmul.mubr.bf16.vlgmr.msra.gmra.mrb[52].mxu1 %v4399_v11  ;;  %v2853_v11 = vld [vmem:[#allocation3 + $0x210] sm:$0xff] }
 0x7f8   :  { %2166 = vmatpush1.bf16.msra.mxu0 %v2820_v60  ;;  %2207 = vmatpush1.bf16.msra.mxu1 %v2821_v18  ;;  %v2880_v60 = vld [vmem:[#allocation3 + $0x3c0] sm:$0xff]  ;;  %v2881_v18 = vld [vmem:[#allocation3 + $0x3d0] sm:$0xff] }
 0x7f9   :  { %2167 = vmatprep.subr.bf16.mxu0 %v2822_v17  ;;  %2208 = vmatprep.subr.bf16.mxu1 %v2823_v30  ;;  %v2882_v17 = vld [vmem:[#allocation3 + $0x28] sm:$0xff]  ;;  %v2883_v30 = vld [vmem:[#allocation3 + $0x38] sm:$0xff] }
 0x7fc   :  { %2168 = vmatpush1.bf16.msra.mxu0 %v2824_v9  ;;  %2209 = vmatpush1.bf16.msra.mxu1 %v2825_v33 }
 0x7fd   :  { %2169 = vmatprep.subr.bf16.mxu0 %v2826_v47  ;;  %2210 = vmatprep.subr.bf16.mxu1 %v2827_v57 }
 0x800   :  { %2170 = vmatpush1.bf16.msra.mxu0 %v2828_v34  ;;  %2211 = vmatpush1.bf16.msra.mxu1 %v2829_v62 }
 0x801   :  { %2171 = vmatprep.subr.bf16.mxu0 %v2830_v4  ;;  %2212 = vmatprep.subr.bf16.mxu1 %v2831_v35 }
 0x804   :  { %2172 = vmatpush1.bf16.msra.mxu0 %v2832_v61  ;;  %2213 = vmatpush1.bf16.msra.mxu1 %v2833_v14 }
 0x805   :  { %2173 = vmatprep.subr.bf16.mxu0 %v2834_v63  ;;  %2214 = vmatprep.subr.bf16.mxu1 %v2835_v0 }
 0x808   :  { %2174 = vmatpush1.bf16.msra.mxu0 %v2836_v7  ;;  %2215 = vmatpush1.bf16.msra.mxu1 %v2837_v21 }
 0x809   :  { %2175 = vmatprep.subr.bf16.mxu0 %v2838_v15  ;;  %2216 = vmatprep.subr.bf16.mxu1 %v2839_v16 }
 0x80c   :  { %2176 = vmatpush1.bf16.msra.mxu0 %v2840_v13  ;;  %2217 = vmatpush1.bf16.msra.mxu1 %v2841_v54 }
 0x80d   :  { %2177 = vmatprep.subr.bf16.mxu0 %v2842_v53  ;;  %2218 = vmatprep.subr.bf16.mxu1 %v2843_v19 }
 0x810   :  { %2178 = vmatpush1.bf16.msra.mxu0 %v2844_v1  ;;  %2219 = vmatpush1.bf16.msra.mxu1 %v2845_v10 }
 0x811   :  { %2179 = vmatprep.subr.bf16.mxu0 %v2846_v2  ;;  %2220 = vmatprep.subr.bf16.mxu1 %v2847_v58 }
 0x814   :  { %2180 = vmatpush1.bf16.msra.mxu0 %v2848_v3  ;;  %2221 = vmatpush1.bf16.msra.mxu1 %v2849_v8  ;;  %v1890_v8 = vld [vmem:[#allocation2 + $0x6] ss:$8 sm:$0xf] }
 0x815   :  { %2181 = vmatprep.subr.bf16.mxu0 %v2850_v12  ;;  %2222 = vmatprep.subr.bf16.mxu1 %v2851_v6  ;;  %v1891_v12 = vld [vmem:[#allocation2 + $0x6] ss:$8 sm:$0xf0] }
 0x818   :  { %2182 = vmatpush1.bf16.msra.mxu0 %v2852_v52  ;;  %2223 = vmatpush1.bf16.msra.mxu1 %v2853_v11  ;;  %v1892_v11 = vor.u32 %v1891_v12, %v1890_v8  ;;  %v2918_v8 = vld [vmem:[#allocation3 + $0x268] sm:$0xff]  ;;  %v2919_v12 = vld [vmem:[#allocation3 + $0x278] sm:$0xff] }
 0x819   :  { %2183 = vmatprep.subr.bf16.mxu0 %v2854_v25  ;;  %2224 = vmatprep.subr.bf16.mxu1 %v2855_v22 }
 0x81c   :  { %2184 = vmatpush1.bf16.msra.mxu0 %v2856_v23  ;;  %2225 = vmatpush1.bf16.msra.mxu1 %v2857_v24 }
 0x81d   :  { %2185 = vmatprep.subr.bf16.mxu0 %v2858_v43  ;;  %2226 = vmatprep.subr.bf16.mxu1 %v2859_v41 }
 0x820   :  { %2186 = vmatpush1.bf16.msra.mxu0 %v2860_v40  ;;  %2227 = vmatpush1.bf16.msra.mxu1 %v2861_v39 }
 0x821   :  { %2187 = vmatprep.subr.bf16.mxu0 %v2862_v44  ;;  %2228 = vmatprep.subr.bf16.mxu1 %v2863_v45 }
 0x824   :  { %2188 = vmatpush1.bf16.msra.mxu0 %v2864_v26  ;;  %2229 = vmatpush1.bf16.msra.mxu1 %v2865_v42 }
 0x825   :  { %2189 = vmatprep.subr.bf16.mxu0 %v2866_v27  ;;  %2230 = vmatprep.subr.bf16.mxu1 %v2867_v46 }
 0x828   :  { %2190 = vmatpush1.bf16.msra.mxu0 %v2868_v20  ;;  %2231 = vmatpush1.bf16.msra.mxu1 %v2869_v49 }
 0x829   :  { %2191 = vmatprep.subr.bf16.mxu0 %v2870_v28  ;;  %2232 = vmatprep.subr.bf16.mxu1 %v2871_v36 }
 0x82c   :  { %2192 = vmatpush1.bf16.msra.mxu0 %v2872_v37  ;;  %2233 = vmatpush1.bf16.msra.mxu1 %v2873_v38 }
 0x82d   :  { %2193 = vmatprep.subr.bf16.mxu0 %v2874_v31  ;;  %2234 = vmatprep.subr.bf16.mxu1 %v2875_v29 }
 0x830   :  { %2194 = vmatpush1.bf16.msra.mxu0 %v2876_v48  ;;  %2235 = vmatpush1.bf16.msra.mxu1 %v2877_v51  ;;  %v2885_v48 = vld [vmem:[#allocation3 + $0x30] sm:$0xff]  ;;  %v2886_v51 = vld [vmem:[#allocation3 + $0x68] sm:$0xff] }
 0x831   :  { %2195 = vmatprep.subr.bf16.mxu0 %v2878_v32  ;;  %2236 = vmatprep.subr.bf16.mxu1 %v2879_v59  ;;  %v2887_v32 = vld [vmem:[#allocation3 + $0x78] sm:$0xff]  ;;  %v2888_v59 = vld [vmem:[#allocation3 + $0x60] sm:$0xff] }
 0x834   :  { %2196 = vmatpush1.bf16.msra.mxu0 %v2880_v60  ;;  %2237 = vmatpush1.bf16.msra.mxu1 %v2881_v18  ;;  %v2889_v60 = vld [vmem:[#allocation3 + $0x70] sm:$0xff]  ;;  %v2890_v18 = vld [vmem:[#allocation3 + $0xa8] sm:$0xff] }
 0x835   :  { %2247 = vmatprep.subr.bf16.mxu0 %v2882_v17  ;;  %2288 = vmatprep.subr.bf16.mxu1 %v2883_v30  ;;  %v2891_v17 = vld [vmem:[#allocation3 + $0xb8] sm:$0xff]  ;;  %v2892_v30 = vld [vmem:[#allocation3 + $0xa0] sm:$0xff] }
 0x88a   :  { %v1940_v9 = vpop.f32.mrb[40].mxu0  ;;  %v1981_v33 = vpop.f32.mrb[48].mxu1 }
 0x88b   :  { %v1942_v47 = vpop.f32.mrb[41].mxu0  ;;  %v1983_v57 = vpop.f32.mrb[49].mxu1 }
 0x88c   :  { %v2078_v34 = vcombine.low %v1940_v9, %v1942_v47  ;;  %v2079_v62 = vcombine.low %v1981_v33, %v1983_v57  ;;  %v1944_v4 = vpop.f32.mrb[42].mxu0  ;;  %v1985_v35 = vpop.f32.mrb[50].mxu1  ;;  %v2893_v9 = vld [vmem:[#allocation3 + $0xb0] sm:$0xff]  ;;  %v2894_v33 = vld [vmem:[#allocation3 + $0xe8] sm:$0xff]  ;;  %v2895_v47 = vld [vmem:[#allocation3 + $0xf8] sm:$0xff] }
 0x88d   :  { %v1945_v61 = vpop.f32.mrb[43].mxu0  ;;  %v1986_v14 = vpop.f32.mrb[51].mxu1  ;;  %v2896_v57 = vld [vmem:[#allocation3 + $0xe0] sm:$0xff]  ;;  %v2899_v4 = vld [vmem:[#allocation3 + $0x138] sm:$0xff] }
 0x88e   :  { %v2088_v63 = vrot.slane %v2078_v34, %v3542_v56  ;;  %v2095_v0 = vrot.slane %v2079_v62, %v3542_v56  ;;  %v2897_v34 = vld [vmem:[#allocation3 + $0xf0] sm:$0xff]  ;;  %v2898_v62 = vld [vmem:[#allocation3 + $0x128] sm:$0xff]  ;;  %v2900_v35 = vld [vmem:[#allocation3 + $0x120] sm:$0xff] }
 0x88f   :  { %v2901_v61 = vld [vmem:[#allocation3 + $0x130] sm:$0xff]  ;;  %v2902_v14 = vld [vmem:[#allocation3 + $0x168] sm:$0xff] }
 0x890   :  { %v2110_v7 = vcombine.low %v2088_v63, %v2095_v0  ;;  %v2903_v63 = vld [vmem:[#allocation3 + $0x178] sm:$0xff]  ;;  %v2904_v0 = vld [vmem:[#allocation3 + $0x160] sm:$0xff] }
 0x892   :  { %v2118_v52 = vrot.slane %v2110_v7, %v3542_v56  ;;  %v2905_v7 = vld [vmem:[#allocation3 + $0x170] sm:$0xff] }
 0x8ca   :  { %v2022_v21 = vpop.f32.mrb[44].mxu0  ;;  %v2063_v15 = vpop.f32.mrb[52].mxu1 }
 0x8cb   :  { %v2024_v16 = vpop.f32.mrb[45].mxu0  ;;  %v2065_v13 = vpop.f32.mrb[53].mxu1 }
 0x8cc   :  { %v2080_v54 = vcombine.low %v2022_v21, %v2024_v16  ;;  %v2081_v53 = vcombine.low %v2063_v15, %v2065_v13  ;;  %v2026_v19 = vpop.f32.mrb[46].mxu0  ;;  %v2067_v1 = vpop.f32.mrb[54].mxu1  ;;  %v2906_v21 = vld [vmem:[#allocation3 + $0x1a8] sm:$0xff]  ;;  %v2907_v15 = vld [vmem:[#allocation3 + $0x1b8] sm:$0xff]  ;;  %v2908_v16 = vld [vmem:[#allocation3 + $0x1a0] sm:$0xff] }
 0x8cd   :  { %v2027_v10 = vpop.f32.mrb[47].mxu0  ;;  %v2068_v2 = vpop.f32.mrb[55].mxu1  ;;  %v2909_v13 = vld [vmem:[#allocation3 + $0x1b0] sm:$0xff]  ;;  %v2912_v19 = vld [vmem:[#allocation3 + $0x1e0] sm:$0xff] }
 0x8ce   :  { %v2102_v58 = vrot.slane %v2080_v54, %v3542_v56  ;;  %v2109_v3 = vrot.slane %v2081_v53, %v3542_v56  ;;  %v2910_v54 = vld [vmem:[#allocation3 + $0x1e8] sm:$0xff]  ;;  %v2911_v53 = vld [vmem:[#allocation3 + $0x1f8] sm:$0xff]  ;;  %v2913_v1 = vld [vmem:[#allocation3 + $0x1f0] sm:$0xff] }
 0x8cf   :  { %v2914_v10 = vld [vmem:[#allocation3 + $0x228] sm:$0xff]  ;;  %v2915_v2 = vld [vmem:[#allocation3 + $0x238] sm:$0xff] }
 0x8d0   :  { %v2111_v6 = vcombine.low %v2102_v58, %v2109_v3  ;;  %v2916_v58 = vld [vmem:[#allocation3 + $0x220] sm:$0xff]  ;;  %v2917_v3 = vld [vmem:[#allocation3 + $0x230] sm:$0xff] }
 0x8d2   :  { %v2125_v25 = vrot.slane %v2111_v6, %v3542_v56  ;;  %v2920_v6 = vld [vmem:[#allocation3 + $0x260] sm:$0xff] }
 0x8d4   :  { %v2126_v22 = vcombine.low %v2118_v52, %v2125_v25  ;;  %v2921_v52 = vld [vmem:[#allocation3 + $0x270] sm:$0xff]  ;;  %v2923_v25 = vld [vmem:[#allocation3 + $0x2b8] sm:$0xff] }
 0x8d6   :  { %v2128_v23 = vadd.f32 %v2126_v22, %v1892_v11  ;;  %v2922_v11 = vld [vmem:[#allocation3 + $0x2a8] sm:$0xff]  ;;  %v2924_v22 = vld [vmem:[#allocation3 + $0x2a0] sm:$0xff] }
 0x8d8   :  { %2682 = vtanh.f32 %v2128_v23  ;;  %v2925_v23 = vld [vmem:[#allocation3 + $0x2b0] sm:$0xff] }
 0x8e2   :  { %v2683_v24 = vpop.eup %2682 }
 0x8e3   :  { %v2130_v43 = vmul.f32 0.5, %v2683_v24  ;;  %v2133_v41 = vrot.slane %v2683_v24, 2  ;;  %v2142_v45 = vrot.slane %v2683_v24, 4  ;;  %v2137_v46 = vrot.slane %v2683_v24, 6  ;;  %v2926_v24 = vld [vmem:[#allocation3 + $0x2e8] sm:$0xff] }
 0x8e5   :  { %v2131_v40 = vadd.f32 0.5, %v2130_v43  ;;  %v2135_v39 = vmul.f32 0.5, %v2133_v41  ;;  %v2139_v20 = vmul.f32 0.5, %v2137_v46  ;;  %v2927_v43 = vld [vmem:[#allocation3 + $0x2f8] sm:$0xff]  ;;  %v2928_v41 = vld [vmem:[#allocation3 + $0x2e0] sm:$0xff] }
 0x8e6   :  { %v2935_v46 = vld [vmem:[#allocation3 + $0x378] sm:$0xff] }
 0x8e7   :  { %v2136_v44 = vadd.f32 0.5, %v2135_v39  ;;  %v2144_v42 = vmul.f32 %v2142_v45, %v2131_v40  ;;  %v2140_v49 = vadd.f32 0.5, %v2139_v20  ;;  %v2929_v40 = vld [vmem:[#allocation3 + $0x2f0] sm:$0xff]  ;;  %v2930_v39 = vld [vmem:[#allocation3 + $0x328] sm:$0xff]  ;;  %v2932_v45 = vld [vmem:[#allocation3 + $0x320] sm:$0xff] }
 0x8e8   :  { %v2936_v20 = vld [vmem:[#allocation3 + $0x360] sm:$0xff] }
 0x8e9   :  { %v2141_v26 = vmul.f32 %v2136_v44, %v4394_v55  ;;  %v2884_v55 = vld [vmem:[#allocation3 + $0x20] sm:$0xff]  ;;  %v2931_v44 = vld [vmem:[#allocation3 + $0x338] sm:$0xff] }
 0x8eb   :  { %v4474_v27 = vadd.f32 %v2144_v42, %v2141_v26  ;;  %v2933_v26 = vld [vmem:[#allocation3 + $0x330] sm:$0xff]  ;;  %v2934_v42 = vld [vmem:[#allocation3 + $0x368] sm:$0xff] }
 0x8ed   :  { %2684 = vtanh.f32 %v4474_v27 }
 0x8f7   :  { %v2685_v28 = vpop.eup %2684 }
 0x8f8   :  { %v2147_v36 = vmul.f32 %v2685_v28, %v2140_v49  ;;  %v2937_v49 = vld [vmem:[#allocation3 + $0x370] sm:$0xff]  ;;  %v2938_v28 = vld [vmem:[#allocation3 + $0x3a8] sm:$0xff] }
 0x8fa   :  { %v2160_v37 = vrot.slane %v2147_v36, %v5041_v5  ;;  %v2156_v38 = vrot.slane %v2147_v36, %v5042_v50  ;;  %v2939_v36 = vld [vmem:[#allocation3 + $0x3b8] sm:$0xff] }
 0x8fc   :  { %v2164_v31 = vpack.c.bf16 %v2160_v37, %v2160_v37  ;;  %v4479_v29 = vpack.c.bf16 %v2156_v38, %v2156_v38  ;;  %v2940_v37 = vld [vmem:[#allocation3 + $0x3a0] sm:$0xff]  ;;  %v2941_v38 = vld [vmem:[#allocation3 + $0x3b0] sm:$0xff] }
 0x8fe   :  { %2197 = vmatprep.mubr.bf16.mxu0 %v2164_v31  ;;  %2238 = vmatprep.mubr.bf16.mxu1 %v2164_v31 }
 0x8ff   :  { %2198 = vmatmul.mubr.bf16.vlgmr.msra.gmra.mrb[48].mxu0 %v4479_v29  ;;  %2239 = vmatmul.mubr.bf16.vlgmr.msra.gmra.mrb[56].mxu1 %v4479_v29 }
 0x900   :  { %2248 = vmatpush1.bf16.msra.mxu0 %v2884_v55  ;;  %2289 = vmatpush1.bf16.msra.mxu1 %v2885_v48  ;;  %v2943_v55 = vld [vmem:[#allocation3 + $0x3f8] sm:$0xff]  ;;  %v2944_v48 = vld [vmem:[#allocation3 + $0x3e0] sm:$0xff] }
 0x901   :  { %2279 = vmatprep.mubr.bf16.mxu0 %v2164_v31  ;;  %2320 = vmatprep.mubr.bf16.mxu1 %v2164_v31  ;;  %v2942_v31 = vld [vmem:[#allocation3 + $0x3e8] sm:$0xff] }
 0x902   :  { %2249 = vmatprep.subr.bf16.mxu0 %v2886_v51  ;;  %2290 = vmatprep.subr.bf16.mxu1 %v2887_v32  ;;  %v2945_v51 = vld [vmem:[#allocation3 + $0x3f0] sm:$0xff]  ;;  %v2423_v32 = vld [vmem:[%s4609_s4 + $0x80] sm:$0xff] }
 0x904   :  { %2250 = vmatpush1.bf16.msra.mxu0 %v2888_v59  ;;  %2291 = vmatpush1.bf16.msra.mxu1 %v2889_v60  ;;  %v2424_v59 = vld [vmem:[%s4609_s4 + $0x88] sm:$0xff]  ;;  %v2407_v60 = vld [vmem:[%s4609_s4] sm:$0xff] }
 0x905   :  { %2251 = vmatprep.subr.bf16.mxu0 %v2890_v18  ;;  %2292 = vmatprep.subr.bf16.mxu1 %v2891_v17  ;;  %v2593_v18 = vpack.c.bf16 %v2424_v59, %v2423_v32  ;;  %v2408_v17 = vld [vmem:[%s4609_s4 + $0x8] sm:$0xff] }
 0x908   :  { %2252 = vmatpush1.bf16.msra.mxu0 %v2892_v30  ;;  %2293 = vmatpush1.bf16.msra.mxu1 %v2893_v9  ;;  %v2426_v30 = vld [vmem:[%s4609_s4 + $0x98] sm:$0xff]  ;;  %v2595_v9 = vpack.c.bf16 %v2408_v17, %v2407_v60 }
 0x909   :  { %2253 = vmatprep.subr.bf16.mxu0 %v2894_v33  ;;  %2294 = vmatprep.subr.bf16.mxu1 %v2895_v47  ;;  %v2409_v47 = vld [vmem:[%s4609_s4 + $0x10] sm:$0xff] }
 0x90c   :  { %2254 = vmatpush1.bf16.msra.mxu0 %v2896_v57  ;;  %2295 = vmatpush1.bf16.msra.mxu1 %v2897_v34  ;;  %v2410_v57 = vld [vmem:[%s4609_s4 + $0x18] sm:$0xff]  ;;  %v2427_v34 = vld [vmem:[%s4609_s4 + $0xa0] sm:$0xff] }
 0x90d   :  { %2255 = vmatprep.subr.bf16.mxu0 %v2898_v62  ;;  %2296 = vmatprep.subr.bf16.mxu1 %v2899_v4  ;;  %v2428_v62 = vld [vmem:[%s4609_s4 + $0xa8] sm:$0xff]  ;;  %v2599_v4 = vpack.c.bf16 %v2410_v57, %v2409_v47 }
 0x910   :  { %2256 = vmatpush1.bf16.msra.mxu0 %v2900_v35  ;;  %2297 = vmatpush1.bf16.msra.mxu1 %v2901_v61  ;;  %v2601_v35 = vpack.c.bf16 %v2428_v62, %v2427_v34  ;;  %v2411_v61 = vld [vmem:[%s4609_s4 + $0x20] sm:$0xff] }
 0x911   :  { %2257 = vmatprep.subr.bf16.mxu0 %v2902_v14  ;;  %2298 = vmatprep.subr.bf16.mxu1 %v2903_v63  ;;  %v2412_v14 = vld [vmem:[%s4609_s4 + $0x28] sm:$0xff]  ;;  %v2429_v63 = vld [vmem:[%s4609_s4 + $0xb0] sm:$0xff] }
 0x914   :  { %2258 = vmatpush1.bf16.msra.mxu0 %v2904_v0  ;;  %2299 = vmatpush1.bf16.msra.mxu1 %v2905_v7  ;;  %v2430_v0 = vld [vmem:[%s4609_s4 + $0xb8] sm:$0xff]  ;;  %v2603_v7 = vpack.c.bf16 %v2412_v14, %v2411_v61 }
 0x915   :  { %2259 = vmatprep.subr.bf16.mxu0 %v2906_v21  ;;  %2300 = vmatprep.subr.bf16.mxu1 %v2907_v15  ;;  %v2605_v21 = vpack.c.bf16 %v2430_v0, %v2429_v63  ;;  %v2413_v15 = vld [vmem:[%s4609_s4 + $0x30] sm:$0xff] }
 0x918   :  { %2260 = vmatpush1.bf16.msra.mxu0 %v2908_v16  ;;  %2301 = vmatpush1.bf16.msra.mxu1 %v2909_v13  ;;  %v2414_v16 = vld [vmem:[%s4609_s4 + $0x38] sm:$0xff]  ;;  %v2431_v13 = vld [vmem:[%s4609_s4 + $0xc0] sm:$0xff] }
 0x919   :  { %2261 = vmatprep.subr.bf16.mxu0 %v2910_v54  ;;  %2302 = vmatprep.subr.bf16.mxu1 %v2911_v53  ;;  %v2432_v54 = vld [vmem:[%s4609_s4 + $0xc8] sm:$0xff]  ;;  %v2607_v53 = vpack.c.bf16 %v2414_v16, %v2413_v15 }
 0x91c   :  { %2262 = vmatpush1.bf16.msra.mxu0 %v2912_v19  ;;  %2303 = vmatpush1.bf16.msra.mxu1 %v2913_v1  ;;  %v2609_v19 = vpack.c.bf16 %v2432_v54, %v2431_v13  ;;  %v2415_v1 = vld [vmem:[%s4609_s4 + $0x40] sm:$0xff] }
 0x91d   :  { %2263 = vmatprep.subr.bf16.mxu0 %v2914_v10  ;;  %2304 = vmatprep.subr.bf16.mxu1 %v2915_v2  ;;  %v2416_v10 = vld [vmem:[%s4609_s4 + $0x48] sm:$0xff]  ;;  %v2433_v2 = vld [vmem:[%s4609_s4 + $0xd0] sm:$0xff] }
 0x920   :  { %2264 = vmatpush1.bf16.msra.mxu0 %v2916_v58  ;;  %2305 = vmatpush1.bf16.msra.mxu1 %v2917_v3  ;;  %v2434_v58 = vld [vmem:[%s4609_s4 + $0xd8] sm:$0xff]  ;;  %v2611_v3 = vpack.c.bf16 %v2416_v10, %v2415_v1 }
 0x921   :  { %2265 = vmatprep.subr.bf16.mxu0 %v2918_v8  ;;  %2306 = vmatprep.subr.bf16.mxu1 %v2919_v12  ;;  %v2613_v8 = vpack.c.bf16 %v2434_v58, %v2433_v2  ;;  %v2417_v12 = vld [vmem:[%s4609_s4 + $0x50] sm:$0xff] }
 0x924   :  { %2266 = vmatpush1.bf16.msra.mxu0 %v2920_v6  ;;  %2307 = vmatpush1.bf16.msra.mxu1 %v2921_v52  ;;  %v2418_v6 = vld [vmem:[%s4609_s4 + $0x58] sm:$0xff]  ;;  %v2435_v52 = vld [vmem:[%s4609_s4 + $0xe0] sm:$0xff] }
 0x925   :  { %2267 = vmatprep.subr.bf16.mxu0 %v2922_v11  ;;  %2308 = vmatprep.subr.bf16.mxu1 %v2923_v25  ;;  %v2436_v11 = vld [vmem:[%s4609_s4 + $0xe8] sm:$0xff]  ;;  %v2615_v25 = vpack.c.bf16 %v2418_v6, %v2417_v12 }
 0x928   :  { %2268 = vmatpush1.bf16.msra.mxu0 %v2924_v22  ;;  %2309 = vmatpush1.bf16.msra.mxu1 %v2925_v23  ;;  %v2617_v22 = vpack.c.bf16 %v2436_v11, %v2435_v52  ;;  %v2419_v23 = vld [vmem:[%s4609_s4 + $0x60] sm:$0xff] }
 0x929   :  { %2269 = vmatprep.subr.bf16.mxu0 %v2926_v24  ;;  %2310 = vmatprep.subr.bf16.mxu1 %v2927_v43  ;;  %v2420_v24 = vld [vmem:[%s4609_s4 + $0x68] sm:$0xff]  ;;  %v2437_v43 = vld [vmem:[%s4609_s4 + $0xf0] sm:$0xff] }
 0x92c   :  { %2270 = vmatpush1.bf16.msra.mxu0 %v2928_v41  ;;  %2311 = vmatpush1.bf16.msra.mxu1 %v2929_v40  ;;  %v2438_v41 = vld [vmem:[%s4609_s4 + $0xf8] sm:$0xff]  ;;  %v2619_v40 = vpack.c.bf16 %v2420_v24, %v2419_v23 }
 0x92d   :  { %2271 = vmatprep.subr.bf16.mxu0 %v2930_v39  ;;  %2312 = vmatprep.subr.bf16.mxu1 %v2931_v44  ;;  %v2621_v39 = vpack.c.bf16 %v2438_v41, %v2437_v43  ;;  %v2421_v44 = vld [vmem:[%s4609_s4 + $0x70] sm:$0xff] }
 0x930   :  { %2272 = vmatpush1.bf16.msra.mxu0 %v2932_v45  ;;  %2313 = vmatpush1.bf16.msra.mxu1 %v2933_v26  ;;  %v2422_v45 = vld [vmem:[%s4609_s4 + $0x78] sm:$0xff] }
 0x931   :  { %2273 = vmatprep.subr.bf16.mxu0 %v2934_v42  ;;  %2314 = vmatprep.subr.bf16.mxu1 %v2935_v46  ;;  %v2623_v26 = vpack.c.bf16 %v2422_v45, %v2421_v44 }
 0x934   :  { %2274 = vmatpush1.bf16.msra.mxu0 %v2936_v20  ;;  %2315 = vmatpush1.bf16.msra.mxu1 %v2937_v49 }
 0x935   :  { %2275 = vmatprep.subr.bf16.mxu0 %v2938_v28  ;;  %2316 = vmatprep.subr.bf16.mxu1 %v2939_v36 }
 0x938   :  { %2276 = vmatpush1.bf16.msra.mxu0 %v2940_v37  ;;  %2317 = vmatpush1.bf16.msra.mxu1 %v2941_v38 }
 0x939   :  { %2277 = vmatprep.subr.bf16.mxu0 %v2942_v31  ;;  %2318 = vmatprep.subr.bf16.mxu1 %v2943_v55 }
 0x93c   :  { %2278 = vmatpush1.bf16.msra.mxu0 %v2944_v48  ;;  %2319 = vmatpush1.bf16.msra.mxu1 %v2945_v51 }
 0x93d   :  { %2594 = vmatprep.subr.bf16.mxu0 %v2593_v18 }
 0x93f   :  { %2280 = vmatmul.mubr.bf16.vlgmr.msra.gmra.mrb[52].mxu0 %v4479_v29  ;;  %2321 = vmatmul.mubr.bf16.vlgmr.msra.gmra.mrb[60].mxu1 %v4479_v29  ;;  %v2425_v29 = vld [vmem:[%s4609_s4 + $0x90] sm:$0xff] }
 0x940   :  { %v2597_v33 = vpack.c.bf16 %v2426_v30, %v2425_v29  ;;  %2596 = vmatpush3.bf16.msra.mxu0 %v2595_v9 }
 0x942   :  { %2598 = vmatprep.subr.bf16.mxu0 %v2597_v33 }
 0x944   :  { %2600 = vmatpush3.bf16.msra.mxu0 %v2599_v4  ;;  %v2149_v4 = vld [vmem:[#allocation2 + $0x7] ss:$8 sm:$0xf] }
 0x945   :  { %2602 = vmatprep.subr.bf16.mxu0 %v2601_v35  ;;  %v2150_v35 = vld [vmem:[#allocation2 + $0x7] ss:$8 sm:$0xf0] }
 0x946   :  { %v2151_v63 = vor.u32 %v2150_v35, %v2149_v4 }
 0x948   :  { %2604 = vmatpush3.bf16.msra.mxu0 %v2603_v7 }
 0x949   :  { %2606 = vmatprep.subr.bf16.mxu0 %v2605_v21 }
 0x94c   :  { %2608 = vmatpush3.bf16.msra.mxu0 %v2607_v53 }
 0x94d   :  { %2610 = vmatprep.subr.bf16.mxu0 %v2609_v19 }
 0x950   :  { %2612 = vmatpush3.bf16.msra.mxu0 %v2611_v3 }
 0x951   :  { %2614 = vmatprep.subr.bf16.mxu0 %v2613_v8 }
 0x954   :  { %2616 = vmatpush3.bf16.msra.mxu0 %v2615_v25 }
 0x955   :  { %2618 = vmatprep.subr.bf16.mxu0 %v2617_v22  ;;  %v2439_v22 = vld [vmem:[%s4610_s5] sm:$0x1] }
 0x958   :  { %2620 = vmatpush3.bf16.msra.mxu0 %v2619_v40 }
 0x959   :  { %2622 = vmatprep.subr.bf16.mxu0 %v2621_v39 }
 0x95c   :  { %2624 = vmatpush3.bf16.msra.mxu0 %v2623_v26 }
 0x9d2   :  { %v2199_v42 = vpop.f32.mrb[48].mxu0  ;;  %v2240_v46 = vpop.f32.mrb[56].mxu1 }
 0x9d3   :  { %v2201_v20 = vpop.f32.mrb[49].mxu0  ;;  %v2242_v49 = vpop.f32.mrb[57].mxu1 }
 0x9d4   :  { %v2337_v28 = vcombine.low %v2199_v42, %v2201_v20  ;;  %v2338_v36 = vcombine.low %v2240_v46, %v2242_v49  ;;  %v2203_v37 = vpop.f32.mrb[50].mxu0  ;;  %v2244_v38 = vpop.f32.mrb[58].mxu1 }
 0x9d5   :  { %v2204_v31 = vpop.f32.mrb[51].mxu0  ;;  %v2245_v55 = vpop.f32.mrb[59].mxu1 }
 0x9d6   :  { %v2347_v48 = vrot.slane %v2337_v28, %v3542_v56  ;;  %v2354_v51 = vrot.slane %v2338_v36, %v3542_v56 }
 0x9d8   :  { %v2369_v32 = vcombine.low %v2347_v48, %v2354_v51 }
 0x9da   :  { %v2377_v14 = vrot.slane %v2369_v32, %v3542_v56 }
 0xa12   :  { %v2281_v59 = vpop.f32.mrb[52].mxu0  ;;  %v2322_v60 = vpop.f32.mrb[60].mxu1 }
 0xa13   :  { %v2283_v18 = vpop.f32.mrb[53].mxu0  ;;  %v2324_v17 = vpop.f32.mrb[61].mxu1 }
 0xa14   :  { %v2339_v29 = vcombine.low %v2281_v59, %v2283_v18  ;;  %v2340_v30 = vcombine.low %v2322_v60, %v2324_v17  ;;  %v2285_v9 = vpop.f32.mrb[54].mxu0  ;;  %v2326_v33 = vpop.f32.mrb[62].mxu1 }
 0xa15   :  { %v2286_v47 = vpop.f32.mrb[55].mxu0  ;;  %v2327_v57 = vpop.f32.mrb[63].mxu1 }
 0xa16   :  { %v2361_v34 = vrot.slane %v2339_v29, %v3542_v56  ;;  %v2368_v62 = vrot.slane %v2340_v30, %v3542_v56 }
 0xa18   :  { %v2370_v61 = vcombine.low %v2361_v34, %v2368_v62 }
 0xa1a   :  { %v2384_v0 = vrot.slane %v2370_v61, %v3542_v56 }
 0xa1c   :  { %v2385_v7 = vcombine.low %v2377_v14, %v2384_v0 }
 0xa1e   :  { %v2387_v21 = vadd.f32 %v2385_v7, %v2151_v63 }
 0xa20   :  { %2686 = vtanh.f32 %v2387_v21 }
 0xa2a   :  { %v2687_v15 = vpop.eup %2686 }
 0xa2b   :  { %v2389_v16 = vmul.f32 0.5, %v2687_v15  ;;  %v2392_v13 = vrot.slane %v2687_v15, 2  ;;  %v2401_v1 = vrot.slane %v2687_v15, 4  ;;  %v2396_v3 = vrot.slane %v2687_v15, 6 }
 0xa2d   :  { %v2390_v54 = vadd.f32 0.5, %v2389_v16  ;;  %v2394_v53 = vmul.f32 0.5, %v2392_v13  ;;  %v2398_v8 = vmul.f32 0.5, %v2396_v3 }
 0xa2f   :  { %v2395_v19 = vadd.f32 0.5, %v2394_v53  ;;  %v2403_v2 = vmul.f32 %v2401_v1, %v2390_v54  ;;  %v2399_v12 = vadd.f32 0.5, %v2398_v8 }
 0xa31   :  { %v2400_v10 = vmul.f32 %v2395_v19, %v4474_v27 }
 0xa33   :  { %v2404_v58 = vadd.f32 %v2403_v2, %v2400_v10 }
 0xa35   :  { %2688 = vtanh.f32 %v2404_v58 }
 0xa3f   :  { %v2689_v6 = vpop.eup %2688 }
 0xa40   :  { %v2406_v56 = vmul.f32 %v2689_v6, %v2399_v12 }
 0xa42   :  { %v2448_v52 = vrot.slane %v2406_v56, %v5041_v5  ;;  %v2444_v11 = vrot.slane %v2406_v56, %v5042_v50 }
 0xa44   :  { %2515 = vmatprep.mubr.f32.mxu0 %v2448_v52 }
 0xa45   :  { %2516 = vmatmul.mubr.f32.vlgmr.msra.gmra.mrb[56].mxu0 %v2444_v11 }
 0xb18   :  { %v2590_v25 = vpop.f32.mrb[56].mxu0 }
 0xb19   :  { %v2591_v27 = vpop.f32.mrb[57].mxu0 }
 0xb1a   :  { %v2592_v23 = vadd.f32 %v2591_v27, %v2590_v25 }
 0xb1c   :  { %v2518_v24 = vadd.f32 %v2592_v23, %v2439_v22 }
 0xb1e   :  { %2522 = vst.msk [vmem:[#allocation5] sm:$0x1] %vm2521_vm2, %v2518_v24 }
 0xb1f   :  { %2957 = shalt.err (!%p2954_p4)
}
 0xb20   :  { %s2958_s5 = scalar_lea.hbm %s4611_s6, 16 }
 0xb21   :  { %p2959_p5 = scmp.ne.s32.totalorder %s4611_s6, %s2958_s5  ;;  %p2962_p6 = scmp.lt.u32.totalorder %s2958_s5, %s4611_s6 }
 0xb23   :  { %p2964_p7 = pnand %p2962_p6, %p2959_p5 }
 0xb25   :  { %2967 = shalt.err (!%p2964_p7)
}
 0xb26   :  { %2532 = dma.vmem_to_hbm [thread:$0]  %s2530_s7, 16, %s4611_s6, [#allocation6]  }
 0xb27   :  { %2970 = dma.done.wait [#allocation6], 16  }
 0xb28   :  { %2971 = vsyncadd [#allocation6], 4294967280 }
 0xb29   :  { %2536 = vsyncpa [#allocation6], 1 }
 0xb2a   :  { %2537 = vsyncmov [#allocation4] }
 0xb2d   :  { %s2538_s18 = vpop.sfrf %2537 }
 0xb2e   :  { %p2557_p8 = scmp.ne.s32.totalorder %s2538_s18, 0 }
 0xb30   :  { %2542 = shalt.err (%p2557_p8)  }

</bundles_post_ra>
